<compile_context>
chip_gen: v7x
topology: tpu7x:2x2x1
jax: 0.10.0
libtpu: 0.0.40
codegen_flags: <defaults>
</compile_context>

<pallas_src>
import numpy as np

import jax
import jax.numpy as jnp
from jax.experimental import pallas as pl
from jax.experimental.pallas import tpu as pltpu

BN_EPS = 1e-5


# --------------------------------------------------------------------------
# Fused Block kernel (built per static Block configuration)
# --------------------------------------------------------------------------
def make_block_kernel(unit_cfgs, has_skip, strides, bt, H, W):
    """Returns a Pallas kernel closing over the static Block structure.

    Kernel ref order:
      x_ref,
      (dw_i, pw_i, bias_i) for every unit,          # BN already folded in
      (w_skip, b_skip)      if has_skip,
      o_ref,
      pad_ref (VMEM scratch, zero-padded halo buffer)
    """
    n_units = len(unit_cfgs)

    def kernel(*refs):
        x_ref = refs[0]
        idx = 1
        unit_refs = []
        for _ in range(n_units):
            unit_refs.append((refs[idx], refs[idx + 1], refs[idx + 2]))
            idx += 3
        if has_skip:
            wskip_ref, bskip_ref = refs[idx], refs[idx + 1]
            idx += 2
        o_ref = refs[idx]
        pad_ref = refs[idx + 1]
        assert idx + 2 == len(refs)  # trace-time sanity check

        # Zero the halo buffer once per grid step; only the 1-px border is
        # actually consumed as zeros (interiors are overwritten every unit).
        pad_ref[...] = jnp.zeros_like(pad_ref)

        h = x_ref[...].astype(jnp.float32)          # (bt, H, W, Cin0)
        Hc, Wc = H, W

        for cfg, (dw_ref, pw_ref, b_ref) in zip(unit_cfgs, unit_refs):
            cin, cout = cfg["cin"], cfg["cout"]

            if cfg["relu"]:
                h = jnp.maximum(h, 0.0)

            # In-kernel zero padding: write the interior of the VMEM scratch.
            pad_ref[:, 1:Hc + 1, 1:Wc + 1, :cin] = h
            xp = pad_ref[:, :, :, :cin]             # (bt, H+2, W+2, cin)

            # Depthwise 3x3 conv (pad=1) as a static shift-and-accumulate.
            dw = dw_ref[...].astype(jnp.float32)    # (3, 3, cin)
            acc = jnp.zeros((bt, Hc, Wc, cin), jnp.float32)
            for di in range(3):
                for dj in range(3):
                    acc = acc + xp[:, di:di + Hc, dj:dj + Wc, :] * dw[di, dj, :]

            if cfg["stride"] == 2:
                # Subsample BEFORE the pointwise matmul (k=3, pad=1 ->
                # stride-2 output == stride-1 output at even positions).
                acc = acc[:, ::2, ::2, :]
                Hc = (Hc - 1) // 2 + 1
                Wc = (Wc - 1) // 2 + 1

            # Pointwise 1x1 conv with both BNs folded into pw & bias (MXU).
            y = jnp.dot(acc.reshape(bt * Hc * Wc, cin), pw_ref[...],
                        preferred_element_type=jnp.float32)
            y = y + b_ref[...]                      # (1, cout) broadcast
            h = y.reshape(bt, Hc, Wc, cout)

        # Fused residual / skip branch.
        if has_skip:
            inp = x_ref[...].astype(jnp.float32)
            if strides != 1:
                inp = inp[:, ::strides, ::strides, :]
            cin0 = inp.shape[-1]
            skip = jnp.dot(inp.reshape(bt * Hc * Wc, cin0), wskip_ref[...],
                           preferred_element_type=jnp.float32)
            skip = skip + bskip_ref[...]
            h = h + skip.reshape(bt, Hc, Wc, skip.shape[-1])
        else:
            h = h + x_ref[...].astype(jnp.float32)

        o_ref[...] = h.astype(o_ref.dtype)

    return kernel


# --------------------------------------------------------------------------
# Parameter prep (BN folding) + pallas_call wrapper
# --------------------------------------------------------------------------
def _fold_unit(p):
    """Fold BN1 (post-depthwise) and BN2 (post-pointwise) into pw & a bias."""
    pw_f = (p["bn1_scale"][:, None] * p["pw"]) * p["bn2_scale"][None, :]
    bias_f = (p["bn1_shift"] @ p["pw"]) * p["bn2_scale"] + p["bn2_shift"]
    return p["dw"], pw_f, bias_f.reshape(1, -1)


def block_forward(x_nhwc, params, units, strides, *, batch_tile=1):
    """x_nhwc: (N, H, W, Cin)  ->  (N, H', W', Cout)  (single fused kernel)."""
    N, H, W, Cin0 = x_nhwc.shape
    CoutF = units[-1]["cout"]
    Hout = (H - 1) // strides + 1
    Wout = (W - 1) // strides + 1
    Cmax = max(max(u["cin"], u["cout"]) for u in units)
    has_skip = params["skip"] is not None

    bt = batch_tile
    assert N % bt == 0, "batch_tile must divide the batch size"

    inputs = [x_nhwc]
    in_specs = [pl.BlockSpec((bt, H, W, Cin0), lambda n: (n, 0, 0, 0))]
    for u, p in zip(units, params["units"]):
        dw, pw_f, b_f = _fold_unit(p)
        inputs += [dw, pw_f, b_f]
        cin, cout = u["cin"], u["cout"]
        in_specs += [
            pl.BlockSpec((3, 3, cin), lambda n: (0, 0, 0)),
            pl.BlockSpec((cin, cout), lambda n: (0, 0)),
            pl.BlockSpec((1, cout), lambda n: (0, 0)),
        ]
    if has_skip:
        sp = params["skip"]
        w_f = sp["w"] * sp["bn_scale"][None, :]
        b_f = sp["bn_shift"].reshape(1, -1)
        inputs += [w_f, b_f]
        in_specs += [
            pl.BlockSpec((Cin0, CoutF), lambda n: (0, 0)),
            pl.BlockSpec((1, CoutF), lambda n: (0, 0)),
        ]

    kernel = make_block_kernel(units, has_skip, strides, bt, H, W)

    return pl.pallas_call(
        kernel,
        out_shape=jax.ShapeDtypeStruct((N, Hout, Wout, CoutF), jnp.float32),
        grid=(N // bt,),
        in_specs=in_specs,
        out_specs=pl.BlockSpec((bt, Hout, Wout, CoutF),
                               lambda n: (n, 0, 0, 0)),
        scratch_shapes=[pltpu.VMEM((bt, H + 2, W + 2, Cmax), jnp.float32)],
        compiler_params=pltpu.CompilerParams(
            dimension_semantics=("parallel",)),
    )(*inputs)


# --------------------------------------------------------------------------
# Block construction (mirrors the PyTorch __init__ logic) + parameter init
# --------------------------------------------------------------------------
def build_unit_configs(in_filters, out_filters, reps, strides=1, dilation=1,
                       start_with_relu=True, grow_first=True, is_last=False):
    # TODO(synk): only dilation=1 is supported by the depthwise kernel here.
    units = []
    filters = in_filters
    if grow_first:
        units.append(dict(cin=in_filters, cout=out_filters, stride=1, relu=True))
        filters = out_filters
    for _ in range(reps - 1):
        units.append(dict(cin=filters, cout=filters, stride=1, relu=True))
    if not grow_first:
        units.append(dict(cin=in_filters, cout=out_filters, stride=1, relu=True))
    if strides != 1:
        units.append(dict(cin=out_filters, cout=out_filters, stride=2, relu=True))
    if strides == 1 and is_last:
        units.append(dict(cin=out_filters, cout=out_filters, stride=1, relu=True))
    if not start_with_relu:
        units[0]["relu"] = False
    has_skip = (out_filters != in_filters) or (strides != 1)
    return units, has_skip


def _fold_bn(key, c):
    kg, kb, km, kv = jax.random.split(key, 4)
    gamma = 1.0 + 0.2 * jax.random.normal(kg, (c,), jnp.float32)
    beta = 0.1 * jax.random.normal(kb, (c,), jnp.float32)
    mean = 0.1 * jax.random.normal(km, (c,), jnp.float32)
    var = 0.5 + jax.random.uniform(kv, (c,), jnp.float32)
    scale = gamma / jnp.sqrt(var + BN_EPS)
    shift = beta - mean * scale
    return scale, shift


def init_block_params(key, units, has_skip, in_filters, out_filters):
    params = {"units": [], "skip": None}
    for u in units:
        cin, cout = u["cin"], u["cout"]
        key, k1, k2, k3, k4 = jax.random.split(key, 5)
        dw = jax.random.normal(k1, (3, 3, cin), jnp.float32) / 3.0
        pw = jax.random.normal(k2, (cin, cout), jnp.float32) / jnp.sqrt(float(cin))
        s1, b1 = _fold_bn(k3, cin)
        s2, b2 = _fold_bn(k4, cout)
        params["units"].append(dict(dw=dw, pw=pw, bn1_scale=s1, bn1_shift=b1,
                                    bn2_scale=s2, bn2_shift=b2))
    if has_skip:
        key, k1, k2 = jax.random.split(key, 3)
        w = jax.random.normal(k1, (in_filters, out_filters), jnp.float32) \
            / jnp.sqrt(float(in_filters))
        s, b = _fold_bn(k2, out_filters)
        params["skip"] = dict(w=w, bn_scale=s, bn_shift=b)
    return params


# --------------------------------------------------------------------------
# Pure-JAX reference (unfolded BN math, no Pallas) for a correctness check
# --------------------------------------------------------------------------
def _sepconv_unit_ref(x, p, relu, stride):
    if relu:
        x = jnp.maximum(x, 0.0)
    N, H, W, Cin = x.shape
    xp = jnp.pad(x, ((0, 0), (1, 1), (1, 1), (0, 0)))
    acc = jnp.zeros((N, H, W, Cin), jnp.float32)
    for di in range(3):
        for dj in range(3):
            acc = acc + xp[:, di:di + H, dj:dj + W, :] * p["dw"][di, dj, :]
    y = acc * p["bn1_scale"] + p["bn1_shift"]
    y = jnp.einsum("nhwc,cd->nhwd", y, p["pw"])
    y = y * p["bn2_scale"] + p["bn2_shift"]
    if stride == 2:
        y = y[:, ::2, ::2, :]
    return y


def block_forward_ref(x_nhwc, params, units, strides):
    h = x_nhwc
    for p, c in zip(params["units"], units):
        h = _sepconv_unit_ref(h, p, c["relu"], c["stride"])
    if params["skip"] is not None:
        inp = x_nhwc[:, ::strides, ::strides, :] if strides != 1 else x_nhwc
        sp = params["skip"]
        skip = jnp.einsum("nhwc,cd->nhwd", inp, sp["w"])
        skip = skip * sp["bn_scale"] + sp["bn_shift"]
        return h + skip
    return h + x_nhwc


# --------------------------------------------------------------------------
if __name__ == "__main__":
    # Block(in_filters=8, out_filters=16, reps=2, strides=1, dilation=1,
    #       start_with_relu=True, grow_first=True, is_last=False)
    N, Cin, H, W = 2, 8, 16, 16
    Cout, REPS, STRIDES = 16, 2, 1

    key = jax.random.PRNGKey(0)
    kx, kp = jax.random.split(key)

    # PyTorch-style NCHW input, transposed to NHWC for the kernel.
    x_nchw = jax.random.normal(kx, (N, Cin, H, W), jnp.float32)
    x_nhwc = jnp.transpose(x_nchw, (0, 2, 3, 1))

    units, has_skip = build_unit_configs(Cin, Cout, REPS, strides=STRIDES,
                                         dilation=1, start_with_relu=True,
                                         grow_first=True, is_last=False)
    params = init_block_params(kp, units, has_skip, Cin, Cout)

    out = block_forward(x_nhwc, params, units, STRIDES, batch_tile=1)
    out = jax.block_until_ready(out)

    ref = block_forward_ref(x_nhwc, params, units, STRIDES)
    np.testing.assert_allclose(np.asarray(out), np.asarray(ref),
                               rtol=2e-3, atol=2e-3)
    assert out.shape == (N, H, W, Cout)

    print("KERNEL_OK")
</pallas_src>

<mosaic_0001>
module attributes {stable_mosaic.version = 11 : i64} {
  func.func @kernel(%arg0: i32, %arg1: memref<1x16x16x8xf32, #tpu.memory_space<vmem>>, %arg2: memref<3x3x8xf32, #tpu.memory_space<vmem>>, %arg3: memref<8x16xf32, #tpu.memory_space<vmem>>, %arg4: memref<1x16xf32, #tpu.memory_space<vmem>>, %arg5: memref<3x3x16xf32, #tpu.memory_space<vmem>>, %arg6: memref<16x16xf32, #tpu.memory_space<vmem>>, %arg7: memref<1x16xf32, #tpu.memory_space<vmem>>, %arg8: memref<8x16xf32, #tpu.memory_space<vmem>>, %arg9: memref<1x16xf32, #tpu.memory_space<vmem>>, %arg10: memref<1x16x16x16xf32, #tpu.memory_space<vmem>>, %arg11: memref<1x18x18x16xf32, #tpu.memory_space<vmem>>) attributes {dimension_semantics = [#tpu.dimension_semantics<parallel>], iteration_bounds = array<i64: 2>, scalar_prefetch = 0 : i64, scratch_operands = 1 : i64, tpu.core_type = #tpu.core_type<tc>, window_params = [{transform_indices = @transform_0, window_bounds = array<i64: 1, 16, 16, 8>}, {pipeline_mode = #tpu.pipeline_mode<synchronous>, transform_indices = @transform_1, window_bounds = array<i64: 3, 3, 8>}, {pipeline_mode = #tpu.pipeline_mode<synchronous>, transform_indices = @transform_2, window_bounds = array<i64: 8, 16>}, {pipeline_mode = #tpu.pipeline_mode<synchronous>, transform_indices = @transform_3, window_bounds = array<i64: 1, 16>}, {pipeline_mode = #tpu.pipeline_mode<synchronous>, transform_indices = @transform_4, window_bounds = array<i64: 3, 3, 16>}, {pipeline_mode = #tpu.pipeline_mode<synchronous>, transform_indices = @transform_5, window_bounds = array<i64: 16, 16>}, {pipeline_mode = #tpu.pipeline_mode<synchronous>, transform_indices = @transform_6, window_bounds = array<i64: 1, 16>}, {pipeline_mode = #tpu.pipeline_mode<synchronous>, transform_indices = @transform_7, window_bounds = array<i64: 8, 16>}, {pipeline_mode = #tpu.pipeline_mode<synchronous>, transform_indices = @transform_8, window_bounds = array<i64: 1, 16>}, {transform_indices = @transform_9, window_bounds = array<i64: 1, 16, 16, 16>}]} {
    %cst = arith.constant 0.000000e+00 : f32
    %0 = vector.broadcast %cst : f32 to vector<1x18x18x16xf32>
    %c0 = arith.constant 0 : index
    %c0_0 = arith.constant 0 : index
    %c0_1 = arith.constant 0 : index
    %c0_2 = arith.constant 0 : index
    %1 = vector.load %arg11[%c0, %c0_0, %c0_1, %c0_2] : memref<1x18x18x16xf32, #tpu.memory_space<vmem>>, vector<1x18x18x16xf32>
    tpu.vector_store %arg11[%c0, %c0_0, %c0_1, %c0_2], %0 {strides = array<i32>} : memref<1x18x18x16xf32, #tpu.memory_space<vmem>>, vector<1x18x18x16xf32>,
    %c0_3 = arith.constant 0 : index
    %c0_4 = arith.constant 0 : index
    %c0_5 = arith.constant 0 : index
    %c0_6 = arith.constant 0 : index
    %2 = vector.load %arg1[%c0_3, %c0_4, %c0_5, %c0_6] : memref<1x16x16x8xf32, #tpu.memory_space<vmem>>, vector<1x16x16x8xf32>
    %cst_7 = arith.constant 0.000000e+00 : f32
    %3 = vector.broadcast %cst_7 : f32 to vector<1x16x16x8xf32>
    %4 = arith.maximumf %2, %3 : vector<1x16x16x8xf32>
    %c0_8 = arith.constant 0 : index
    %c1 = arith.constant 1 : index
    %c1_9 = arith.constant 1 : index
    %c0_10 = arith.constant 0 : index
    %5 = vector.load %arg11[%c0_8, %c1, %c1_9, %c0_10] : memref<1x18x18x16xf32, #tpu.memory_space<vmem>>, vector<1x16x16x8xf32>
    tpu.vector_store %arg11[%c0_8, %c1, %c1_9, %c0_10], %4 {strides = array<i32>} : memref<1x18x18x16xf32, #tpu.memory_space<vmem>>, vector<1x16x16x8xf32>,
    %c0_11 = arith.constant 0 : index
    %c0_12 = arith.constant 0 : index
    %c0_13 = arith.constant 0 : index
    %c0_14 = arith.constant 0 : index
    %6 = vector.load %arg11[%c0_11, %c0_12, %c0_13, %c0_14] : memref<1x18x18x16xf32, #tpu.memory_space<vmem>>, vector<1x18x18x8xf32>
    %c0_15 = arith.constant 0 : index
    %c0_16 = arith.constant 0 : index
    %c0_17 = arith.constant 0 : index
    %7 = vector.load %arg2[%c0_15, %c0_16, %c0_17] : memref<3x3x8xf32, #tpu.memory_space<vmem>>, vector<3x3x8xf32>
    %cst_18 = arith.constant 0.000000e+00 : f32
    %8 = vector.broadcast %cst_18 : f32 to vector<1x16x16x8xf32>
    %9 = vector.extract_strided_slice %6 {offsets = [0, 0, 0, 0], sizes = [1, 16, 16, 8], strides = [1, 1, 1, 1]} : vector<1x18x18x8xf32> to vector<1x16x16x8xf32>
    %10 = vector.extract_strided_slice %7 {offsets = [0, 0, 0], sizes = [1, 1, 8], strides = [1, 1, 1]} : vector<3x3x8xf32> to vector<1x1x8xf32>
    %11 = vector.shape_cast %10 : vector<1x1x8xf32> to vector<8xf32>
    %12 = vector.shape_cast %11 : vector<8xf32> to vector<1x1x1x8xf32>
    %13 = vector.broadcast %12 : vector<1x1x1x8xf32> to vector<1x16x16x8xf32>
    %14 = arith.mulf %9, %13 : vector<1x16x16x8xf32>
    %15 = arith.addf %8, %14 : vector<1x16x16x8xf32>
    %16 = vector.extract_strided_slice %6 {offsets = [0, 0, 1, 0], sizes = [1, 16, 16, 8], strides = [1, 1, 1, 1]} : vector<1x18x18x8xf32> to vector<1x16x16x8xf32>
    %17 = vector.extract_strided_slice %7 {offsets = [0, 1, 0], sizes = [1, 1, 8], strides = [1, 1, 1]} : vector<3x3x8xf32> to vector<1x1x8xf32>
    %18 = vector.shape_cast %17 : vector<1x1x8xf32> to vector<8xf32>
    %19 = vector.shape_cast %18 : vector<8xf32> to vector<1x1x1x8xf32>
    %20 = vector.broadcast %19 : vector<1x1x1x8xf32> to vector<1x16x16x8xf32>
    %21 = arith.mulf %16, %20 : vector<1x16x16x8xf32>
    %22 = arith.addf %15, %21 : vector<1x16x16x8xf32>
    %23 = vector.extract_strided_slice %6 {offsets = [0, 0, 2, 0], sizes = [1, 16, 16, 8], strides = [1, 1, 1, 1]} : vector<1x18x18x8xf32> to vector<1x16x16x8xf32>
    %24 = vector.extract_strided_slice %7 {offsets = [0, 2, 0], sizes = [1, 1, 8], strides = [1, 1, 1]} : vector<3x3x8xf32> to vector<1x1x8xf32>
    %25 = vector.shape_cast %24 : vector<1x1x8xf32> to vector<8xf32>
    %26 = vector.shape_cast %25 : vector<8xf32> to vector<1x1x1x8xf32>
    %27 = vector.broadcast %26 : vector<1x1x1x8xf32> to vector<1x16x16x8xf32>
    %28 = arith.mulf %23, %27 : vector<1x16x16x8xf32>
    %29 = arith.addf %22, %28 : vector<1x16x16x8xf32>
    %30 = vector.extract_strided_slice %6 {offsets = [0, 1, 0, 0], sizes = [1, 16, 16, 8], strides = [1, 1, 1, 1]} : vector<1x18x18x8xf32> to vector<1x16x16x8xf32>
    %31 = vector.extract_strided_slice %7 {offsets = [1, 0, 0], sizes = [1, 1, 8], strides = [1, 1, 1]} : vector<3x3x8xf32> to vector<1x1x8xf32>
    %32 = vector.shape_cast %31 : vector<1x1x8xf32> to vector<8xf32>
    %33 = vector.shape_cast %32 : vector<8xf32> to vector<1x1x1x8xf32>
    %34 = vector.broadcast %33 : vector<1x1x1x8xf32> to vector<1x16x16x8xf32>
    %35 = arith.mulf %30, %34 : vector<1x16x16x8xf32>
    %36 = arith.addf %29, %35 : vector<1x16x16x8xf32>
    %37 = vector.extract_strided_slice %6 {offsets = [0, 1, 1, 0], sizes = [1, 16, 16, 8], strides = [1, 1, 1, 1]} : vector<1x18x18x8xf32> to vector<1x16x16x8xf32>
    %38 = vector.extract_strided_slice %7 {offsets = [1, 1, 0], sizes = [1, 1, 8], strides = [1, 1, 1]} : vector<3x3x8xf32> to vector<1x1x8xf32>
    %39 = vector.shape_cast %38 : vector<1x1x8xf32> to vector<8xf32>
    %40 = vector.shape_cast %39 : vector<8xf32> to vector<1x1x1x8xf32>
    %41 = vector.broadcast %40 : vector<1x1x1x8xf32> to vector<1x16x16x8xf32>
    %42 = arith.mulf %37, %41 : vector<1x16x16x8xf32>
    %43 = arith.addf %36, %42 : vector<1x16x16x8xf32>
    %44 = vector.extract_strided_slice %6 {offsets = [0, 1, 2, 0], sizes = [1, 16, 16, 8], strides = [1, 1, 1, 1]} : vector<1x18x18x8xf32> to vector<1x16x16x8xf32>
    %45 = vector.extract_strided_slice %7 {offsets = [1, 2, 0], sizes = [1, 1, 8], strides = [1, 1, 1]} : vector<3x3x8xf32> to vector<1x1x8xf32>
    %46 = vector.shape_cast %45 : vector<1x1x8xf32> to vector<8xf32>
    %47 = vector.shape_cast %46 : vector<8xf32> to vector<1x1x1x8xf32>
    %48 = vector.broadcast %47 : vector<1x1x1x8xf32> to vector<1x16x16x8xf32>
    %49 = arith.mulf %44, %48 : vector<1x16x16x8xf32>
    %50 = arith.addf %43, %49 : vector<1x16x16x8xf32>
    %51 = vector.extract_strided_slice %6 {offsets = [0, 2, 0, 0], sizes = [1, 16, 16, 8], strides = [1, 1, 1, 1]} : vector<1x18x18x8xf32> to vector<1x16x16x8xf32>
    %52 = vector.extract_strided_slice %7 {offsets = [2, 0, 0], sizes = [1, 1, 8], strides = [1, 1, 1]} : vector<3x3x8xf32> to vector<1x1x8xf32>
    %53 = vector.shape_cast %52 : vector<1x1x8xf32> to vector<8xf32>
    %54 = vector.shape_cast %53 : vector<8xf32> to vector<1x1x1x8xf32>
    %55 = vector.broadcast %54 : vector<1x1x1x8xf32> to vector<1x16x16x8xf32>
    %56 = arith.mulf %51, %55 : vector<1x16x16x8xf32>
    %57 = arith.addf %50, %56 : vector<1x16x16x8xf32>
    %58 = vector.extract_strided_slice %6 {offsets = [0, 2, 1, 0], sizes = [1, 16, 16, 8], strides = [1, 1, 1, 1]} : vector<1x18x18x8xf32> to vector<1x16x16x8xf32>
    %59 = vector.extract_strided_slice %7 {offsets = [2, 1, 0], sizes = [1, 1, 8], strides = [1, 1, 1]} : vector<3x3x8xf32> to vector<1x1x8xf32>
    %60 = vector.shape_cast %59 : vector<1x1x8xf32> to vector<8xf32>
    %61 = vector.shape_cast %60 : vector<8xf32> to vector<1x1x1x8xf32>
    %62 = vector.broadcast %61 : vector<1x1x1x8xf32> to vector<1x16x16x8xf32>
    %63 = arith.mulf %58, %62 : vector<1x16x16x8xf32>
    %64 = arith.addf %57, %63 : vector<1x16x16x8xf32>
    %65 = vector.extract_strided_slice %6 {offsets = [0, 2, 2, 0], sizes = [1, 16, 16, 8], strides = [1, 1, 1, 1]} : vector<1x18x18x8xf32> to vector<1x16x16x8xf32>
    %66 = vector.extract_strided_slice %7 {offsets = [2, 2, 0], sizes = [1, 1, 8], strides = [1, 1, 1]} : vector<3x3x8xf32> to vector<1x1x8xf32>
    %67 = vector.shape_cast %66 : vector<1x1x8xf32> to vector<8xf32>
    %68 = vector.shape_cast %67 : vector<8xf32> to vector<1x1x1x8xf32>
    %69 = vector.broadcast %68 : vector<1x1x1x8xf32> to vector<1x16x16x8xf32>
    %70 = arith.mulf %65, %69 : vector<1x16x16x8xf32>
    %71 = arith.addf %64, %70 : vector<1x16x16x8xf32>
    %72 = vector.shape_cast %71 : vector<1x16x16x8xf32> to vector<256x8xf32>
    %c0_19 = arith.constant 0 : index
    %c0_20 = arith.constant 0 : index
    %73 = vector.load %arg3[%c0_19, %c0_20] : memref<8x16xf32, #tpu.memory_space<vmem>>, vector<8x16xf32>
    %cst_21 = arith.constant dense<0.000000e+00> : vector<256x16xf32>
    %74 = tpu.matmul %72, %73, %cst_21 {dimension_numbers = #tpu.dot_dimension_numbers<[1], [0], [0], [1], [0, 0, 1, 1], [], []>} : vector<256x8xf32>, vector<8x16xf32>, vector<256x16xf32> -> vector<256x16xf32>
    %c0_22 = arith.constant 0 : index
    %c0_23 = arith.constant 0 : index
    %75 = vector.load %arg4[%c0_22, %c0_23] : memref<1x16xf32, #tpu.memory_space<vmem>>, vector<1x16xf32>
    %76 = vector.broadcast %75 : vector<1x16xf32> to vector<256x16xf32>
    %77 = arith.addf %74, %76 : vector<256x16xf32>
    %78 = vector.shape_cast %77 : vector<256x16xf32> to vector<1x16x16x16xf32>
    %cst_24 = arith.constant 0.000000e+00 : f32
    %79 = vector.broadcast %cst_24 : f32 to vector<1x16x16x16xf32>
    %80 = arith.maximumf %78, %79 : vector<1x16x16x16xf32>
    %c0_25 = arith.constant 0 : index
    %c1_26 = arith.constant 1 : index
    %c1_27 = arith.constant 1 : index
    %c0_28 = arith.constant 0 : index
    %81 = vector.load %arg11[%c0_25, %c1_26, %c1_27, %c0_28] : memref<1x18x18x16xf32, #tpu.memory_space<vmem>>, vector<1x16x16x16xf32>
    tpu.vector_store %arg11[%c0_25, %c1_26, %c1_27, %c0_28], %80 {strides = array<i32>} : memref<1x18x18x16xf32, #tpu.memory_space<vmem>>, vector<1x16x16x16xf32>,
    %c0_29 = arith.constant 0 : index
    %c0_30 = arith.constant 0 : index
    %c0_31 = arith.constant 0 : index
    %c0_32 = arith.constant 0 : index
    %82 = vector.load %arg11[%c0_29, %c0_30, %c0_31, %c0_32] : memref<1x18x18x16xf32, #tpu.memory_space<vmem>>, vector<1x18x18x16xf32>
    %c0_33 = arith.constant 0 : index
    %c0_34 = arith.constant 0 : index
    %c0_35 = arith.constant 0 : index
    %83 = vector.load %arg5[%c0_33, %c0_34, %c0_35] : memref<3x3x16xf32, #tpu.memory_space<vmem>>, vector<3x3x16xf32>
    %cst_36 = arith.constant 0.000000e+00 : f32
    %84 = vector.broadcast %cst_36 : f32 to vector<1x16x16x16xf32>
    %85 = vector.extract_strided_slice %82 {offsets = [0, 0, 0, 0], sizes = [1, 16, 16, 16], strides = [1, 1, 1, 1]} : vector<1x18x18x16xf32> to vector<1x16x16x16xf32>
    %86 = vector.extract_strided_slice %83 {offsets = [0, 0, 0], sizes = [1, 1, 16], strides = [1, 1, 1]} : vector<3x3x16xf32> to vector<1x1x16xf32>
    %87 = vector.shape_cast %86 : vector<1x1x16xf32> to vector<16xf32>
    %88 = vector.shape_cast %87 : vector<16xf32> to vector<1x1x1x16xf32>
    %89 = vector.broadcast %88 : vector<1x1x1x16xf32> to vector<1x16x16x16xf32>
    %90 = arith.mulf %85, %89 : vector<1x16x16x16xf32>
    %91 = arith.addf %84, %90 : vector<1x16x16x16xf32>
    %92 = vector.extract_strided_slice %82 {offsets = [0, 0, 1, 0], sizes = [1, 16, 16, 16], strides = [1, 1, 1, 1]} : vector<1x18x18x16xf32> to vector<1x16x16x16xf32>
    %93 = vector.extract_strided_slice %83 {offsets = [0, 1, 0], sizes = [1, 1, 16], strides = [1, 1, 1]} : vector<3x3x16xf32> to vector<1x1x16xf32>
    %94 = vector.shape_cast %93 : vector<1x1x16xf32> to vector<16xf32>
    %95 = vector.shape_cast %94 : vector<16xf32> to vector<1x1x1x16xf32>
    %96 = vector.broadcast %95 : vector<1x1x1x16xf32> to vector<1x16x16x16xf32>
    %97 = arith.mulf %92, %96 : vector<1x16x16x16xf32>
    %98 = arith.addf %91, %97 : vector<1x16x16x16xf32>
    %99 = vector.extract_strided_slice %82 {offsets = [0, 0, 2, 0], sizes = [1, 16, 16, 16], strides = [1, 1, 1, 1]} : vector<1x18x18x16xf32> to vector<1x16x16x16xf32>
    %100 = vector.extract_strided_slice %83 {offsets = [0, 2, 0], sizes = [1, 1, 16], strides = [1, 1, 1]} : vector<3x3x16xf32> to vector<1x1x16xf32>
    %101 = vector.shape_cast %100 : vector<1x1x16xf32> to vector<16xf32>
    %102 = vector.shape_cast %101 : vector<16xf32> to vector<1x1x1x16xf32>
    %103 = vector.broadcast %102 : vector<1x1x1x16xf32> to vector<1x16x16x16xf32>
    %104 = arith.mulf %99, %103 : vector<1x16x16x16xf32>
    %105 = arith.addf %98, %104 : vector<1x16x16x16xf32>
    %106 = vector.extract_strided_slice %82 {offsets = [0, 1, 0, 0], sizes = [1, 16, 16, 16], strides = [1, 1, 1, 1]} : vector<1x18x18x16xf32> to vector<1x16x16x16xf32>
    %107 = vector.extract_strided_slice %83 {offsets = [1, 0, 0], sizes = [1, 1, 16], strides = [1, 1, 1]} : vector<3x3x16xf32> to vector<1x1x16xf32>
    %108 = vector.shape_cast %107 : vector<1x1x16xf32> to vector<16xf32>
    %109 = vector.shape_cast %108 : vector<16xf32> to vector<1x1x1x16xf32>
    %110 = vector.broadcast %109 : vector<1x1x1x16xf32> to vector<1x16x16x16xf32>
    %111 = arith.mulf %106, %110 : vector<1x16x16x16xf32>
    %112 = arith.addf %105, %111 : vector<1x16x16x16xf32>
    %113 = vector.extract_strided_slice %82 {offsets = [0, 1, 1, 0], sizes = [1, 16, 16, 16], strides = [1, 1, 1, 1]} : vector<1x18x18x16xf32> to vector<1x16x16x16xf32>
    %114 = vector.extract_strided_slice %83 {offsets = [1, 1, 0], sizes = [1, 1, 16], strides = [1, 1, 1]} : vector<3x3x16xf32> to vector<1x1x16xf32>
    %115 = vector.shape_cast %114 : vector<1x1x16xf32> to vector<16xf32>
    %116 = vector.shape_cast %115 : vector<16xf32> to vector<1x1x1x16xf32>
    %117 = vector.broadcast %116 : vector<1x1x1x16xf32> to vector<1x16x16x16xf32>
    %118 = arith.mulf %113, %117 : vector<1x16x16x16xf32>
    %119 = arith.addf %112, %118 : vector<1x16x16x16xf32>
    %120 = vector.extract_strided_slice %82 {offsets = [0, 1, 2, 0], sizes = [1, 16, 16, 16], strides = [1, 1, 1, 1]} : vector<1x18x18x16xf32> to vector<1x16x16x16xf32>
    %121 = vector.extract_strided_slice %83 {offsets = [1, 2, 0], sizes = [1, 1, 16], strides = [1, 1, 1]} : vector<3x3x16xf32> to vector<1x1x16xf32>
    %122 = vector.shape_cast %121 : vector<1x1x16xf32> to vector<16xf32>
    %123 = vector.shape_cast %122 : vector<16xf32> to vector<1x1x1x16xf32>
    %124 = vector.broadcast %123 : vector<1x1x1x16xf32> to vector<1x16x16x16xf32>
    %125 = arith.mulf %120, %124 : vector<1x16x16x16xf32>
    %126 = arith.addf %119, %125 : vector<1x16x16x16xf32>
    %127 = vector.extract_strided_slice %82 {offsets = [0, 2, 0, 0], sizes = [1, 16, 16, 16], strides = [1, 1, 1, 1]} : vector<1x18x18x16xf32> to vector<1x16x16x16xf32>
    %128 = vector.extract_strided_slice %83 {offsets = [2, 0, 0], sizes = [1, 1, 16], strides = [1, 1, 1]} : vector<3x3x16xf32> to vector<1x1x16xf32>
    %129 = vector.shape_cast %128 : vector<1x1x16xf32> to vector<16xf32>
    %130 = vector.shape_cast %129 : vector<16xf32> to vector<1x1x1x16xf32>
    %131 = vector.broadcast %130 : vector<1x1x1x16xf32> to vector<1x16x16x16xf32>
    %132 = arith.mulf %127, %131 : vector<1x16x16x16xf32>
    %133 = arith.addf %126, %132 : vector<1x16x16x16xf32>
    %134 = vector.extract_strided_slice %82 {offsets = [0, 2, 1, 0], sizes = [1, 16, 16, 16], strides = [1, 1, 1, 1]} : vector<1x18x18x16xf32> to vector<1x16x16x16xf32>
    %135 = vector.extract_strided_slice %83 {offsets = [2, 1, 0], sizes = [1, 1, 16], strides = [1, 1, 1]} : vector<3x3x16xf32> to vector<1x1x16xf32>
    %136 = vector.shape_cast %135 : vector<1x1x16xf32> to vector<16xf32>
    %137 = vector.shape_cast %136 : vector<16xf32> to vector<1x1x1x16xf32>
    %138 = vector.broadcast %137 : vector<1x1x1x16xf32> to vector<1x16x16x16xf32>
    %139 = arith.mulf %134, %138 : vector<1x16x16x16xf32>
    %140 = arith.addf %133, %139 : vector<1x16x16x16xf32>
    %141 = vector.extract_strided_slice %82 {offsets = [0, 2, 2, 0], sizes = [1, 16, 16, 16], strides = [1, 1, 1, 1]} : vector<1x18x18x16xf32> to vector<1x16x16x16xf32>
    %142 = vector.extract_strided_slice %83 {offsets = [2, 2, 0], sizes = [1, 1, 16], strides = [1, 1, 1]} : vector<3x3x16xf32> to vector<1x1x16xf32>
    %143 = vector.shape_cast %142 : vector<1x1x16xf32> to vector<16xf32>
    %144 = vector.shape_cast %143 : vector<16xf32> to vector<1x1x1x16xf32>
    %145 = vector.broadcast %144 : vector<1x1x1x16xf32> to vector<1x16x16x16xf32>
    %146 = arith.mulf %141, %145 : vector<1x16x16x16xf32>
    %147 = arith.addf %140, %146 : vector<1x16x16x16xf32>
    %148 = vector.shape_cast %147 : vector<1x16x16x16xf32> to vector<256x16xf32>
    %c0_37 = arith.constant 0 : index
    %c0_38 = arith.constant 0 : index
    %149 = vector.load %arg6[%c0_37, %c0_38] : memref<16x16xf32, #tpu.memory_space<vmem>>, vector<16x16xf32>
    %cst_39 = arith.constant dense<0.000000e+00> : vector<256x16xf32>
    %150 = tpu.matmul %148, %149, %cst_39 {dimension_numbers = #tpu.dot_dimension_numbers<[1], [0], [0], [1], [0, 0, 1, 1], [], []>} : vector<256x16xf32>, vector<16x16xf32>, vector<256x16xf32> -> vector<256x16xf32>
    %c0_40 = arith.constant 0 : index
    %c0_41 = arith.constant 0 : index
    %151 = vector.load %arg7[%c0_40, %c0_41] : memref<1x16xf32, #tpu.memory_space<vmem>>, vector<1x16xf32>
    %152 = vector.broadcast %151 : vector<1x16xf32> to vector<256x16xf32>
    %153 = arith.addf %150, %152 : vector<256x16xf32>
    %154 = vector.shape_cast %153 : vector<256x16xf32> to vector<1x16x16x16xf32>
    %c0_42 = arith.constant 0 : index
    %c0_43 = arith.constant 0 : index
    %c0_44 = arith.constant 0 : index
    %c0_45 = arith.constant 0 : index
    %155 = vector.load %arg1[%c0_42, %c0_43, %c0_44, %c0_45] : memref<1x16x16x8xf32, #tpu.memory_space<vmem>>, vector<1x16x16x8xf32>
    %156 = vector.shape_cast %155 : vector<1x16x16x8xf32> to vector<256x8xf32>
    %c0_46 = arith.constant 0 : index
    %c0_47 = arith.constant 0 : index
    %157 = vector.load %arg8[%c0_46, %c0_47] : memref<8x16xf32, #tpu.memory_space<vmem>>, vector<8x16xf32>
    %cst_48 = arith.constant dense<0.000000e+00> : vector<256x16xf32>
    %158 = tpu.matmul %156, %157, %cst_48 {dimension_numbers = #tpu.dot_dimension_numbers<[1], [0], [0], [1], [0, 0, 1, 1], [], []>} : vector<256x8xf32>, vector<8x16xf32>, vector<256x16xf32> -> vector<256x16xf32>
    %c0_49 = arith.constant 0 : index
    %c0_50 = arith.constant 0 : index
    %159 = vector.load %arg9[%c0_49, %c0_50] : memref<1x16xf32, #tpu.memory_space<vmem>>, vector<1x16xf32>
    %160 = vector.broadcast %159 : vector<1x16xf32> to vector<256x16xf32>
    %161 = arith.addf %158, %160 : vector<256x16xf32>
    %162 = vector.shape_cast %161 : vector<256x16xf32> to vector<1x16x16x16xf32>
    %163 = arith.addf %154, %162 : vector<1x16x16x16xf32>
    %c0_51 = arith.constant 0 : index
    %c0_52 = arith.constant 0 : index
    %c0_53 = arith.constant 0 : index
    %c0_54 = arith.constant 0 : index
    %164 = vector.load %arg10[%c0_51, %c0_52, %c0_53, %c0_54] : memref<1x16x16x16xf32, #tpu.memory_space<vmem>>, vector<1x16x16x16xf32>
    tpu.vector_store %arg10[%c0_51, %c0_52, %c0_53, %c0_54], %163 {strides = array<i32>} : memref<1x16x16x16xf32, #tpu.memory_space<vmem>>, vector<1x16x16x16xf32>,
    return
  }
  func.func @transform_0(%arg0: i32) -> (i32, i32, i32, i32) {
    %c0_i32 = arith.constant 0 : i32
    %c0_i32_0 = arith.constant 0 : i32
    %c0_i32_1 = arith.constant 0 : i32
    %c0_i32_2 = arith.constant 0 : i32
    return %arg0, %c0_i32, %c0_i32_0, %c0_i32_1 : i32, i32, i32, i32
  }
  func.func @transform_1(%arg0: i32) -> (i32, i32, i32) {
    %c0_i32 = arith.constant 0 : i32
    %c0_i32_0 = arith.constant 0 : i32
    %c0_i32_1 = arith.constant 0 : i32
    %c0_i32_2 = arith.constant 0 : i32
    return %c0_i32, %c0_i32_0, %c0_i32_1 : i32, i32, i32
  }
  func.func @transform_2(%arg0: i32) -> (i32, i32) {
    %c0_i32 = arith.constant 0 : i32
    %c0_i32_0 = arith.constant 0 : i32
    %c0_i32_1 = arith.constant 0 : i32
    return %c0_i32, %c0_i32_0 : i32, i32
  }
  func.func @transform_3(%arg0: i32) -> (i32, i32) {
    %c0_i32 = arith.constant 0 : i32
    %c0_i32_0 = arith.constant 0 : i32
    %c0_i32_1 = arith.constant 0 : i32
    return %c0_i32, %c0_i32_0 : i32, i32
  }
  func.func @transform_4(%arg0: i32) -> (i32, i32, i32) {
    %c0_i32 = arith.constant 0 : i32
    %c0_i32_0 = arith.constant 0 : i32
    %c0_i32_1 = arith.constant 0 : i32
    %c0_i32_2 = arith.constant 0 : i32
    return %c0_i32, %c0_i32_0, %c0_i32_1 : i32, i32, i32
  }
  func.func @transform_5(%arg0: i32) -> (i32, i32) {
    %c0_i32 = arith.constant 0 : i32
    %c0_i32_0 = arith.constant 0 : i32
    %c0_i32_1 = arith.constant 0 : i32
    return %c0_i32, %c0_i32_0 : i32, i32
  }
  func.func @transform_6(%arg0: i32) -> (i32, i32) {
    %c0_i32 = arith.constant 0 : i32
    %c0_i32_0 = arith.constant 0 : i32
    %c0_i32_1 = arith.constant 0 : i32
    return %c0_i32, %c0_i32_0 : i32, i32
  }
  func.func @transform_7(%arg0: i32) -> (i32, i32) {
    %c0_i32 = arith.constant 0 : i32
    %c0_i32_0 = arith.constant 0 : i32
    %c0_i32_1 = arith.constant 0 : i32
    return %c0_i32, %c0_i32_0 : i32, i32
  }
  func.func @transform_8(%arg0: i32) -> (i32, i32) {
    %c0_i32 = arith.constant 0 : i32
    %c0_i32_0 = arith.constant 0 : i32
    %c0_i32_1 = arith.constant 0 : i32
    return %c0_i32, %c0_i32_0 : i32, i32
  }
  func.func @transform_9(%arg0: i32) -> (i32, i32, i32, i32) {
    %c0_i32 = arith.constant 0 : i32
    %c0_i32_0 = arith.constant 0 : i32
    %c0_i32_1 = arith.constant 0 : i32
    %c0_i32_2 = arith.constant 0 : i32
    return %arg0, %c0_i32, %c0_i32_0, %c0_i32_1 : i32, i32, i32, i32
  }
}

</mosaic_0001>

<bundles_post_ra>
// kernel: tpu_custom_call.1
= control target key start
LH: loop header
LB: loop body
LE: loop exit
PB: predicated region body
PF: predicated region fallthrough
CT: control target
= control target key end

     0   :  { %14 = vsyncpa [#allocation4], 0  ;;  %s8885_s0 = inlined_call_operand.vmem [shape: f32[2,16,16,8], index: 0, kind: input, shape index: {}]   ;;  %s8886_s1 = inlined_call_operand.vmem [shape: f32[3,3,8], index: 1, kind: input, shape index: {}]   ;;  %s8887_s2 = inlined_call_operand.vmem [shape: f32[8,16], index: 2, kind: input, shape index: {}]   ;;  %s8888_s3 = inlined_call_operand.vmem [shape: f32[1,16], index: 3, kind: input, shape index: {}]   ;;  %s8889_s4 = inlined_call_operand.vmem [shape: f32[3,3,16], index: 4, kind: input, shape index: {}]   ;;  %s8890_s5 = inlined_call_operand.vmem [shape: f32[16,16], index: 5, kind: input, shape index: {}]   ;;  %s8891_s6 = inlined_call_operand.vmem [shape: f32[1,16], index: 6, kind: input, shape index: {}]   ;;  %s8892_s7 = inlined_call_operand.vmem [shape: f32[8,16], index: 7, kind: input, shape index: {}]   ;;  %s8893_s8 = inlined_call_operand.vmem [shape: f32[1,16], index: 8, kind: input, shape index: {}]   ;;  %s8894_s9 = inlined_call_operand.hbm [shape: f32[2,16,16,16], index: 9, kind: output, shape index: {}]  }
   0x1   :  { %16 = vsyncpa [#allocation4 + $0x1], 0  ;;  %s5789_s30 = smov 0   ;;  %s5791_s10 = smov 0  }
   0x2   :  { %s5793_s11 = smov 0   ;;  %s5795_s12 = smov 0  }
   0x3 LB: > { %s5810_s13 = sadd.s32 4294967295, %s5733_s12   ;;  %s5161_s14 = sadd.s32 4294967294, %s5733_s12   ;;  %s5733_s12 = sphi %s5795_s12, %s8900_s12   ;;  %s5729_s11 = sphi %s5793_s11, %s8899_s11   ;;  %s5725_s10 = sphi %s5791_s10, %s8898_s10   ;;  %s5721_s30 = sphi %s5789_s30, %s8897_s30  }
   0x4   : > { %s5814_s15 = sadd.s32 1, %s5733_s12   ;;  %s223_s16 = sadd.s32 1, %s5729_s11 }
   0x5   : > { %s220_s17 = ssub.s32 %s5733_s12, %s5814_s15  ;;  %p233_p0 = scmp.ne.s32.totalorder %s5729_s11, %s5725_s10 }
   0x6   : > { %p221_p1 = scmp.eq.s32.totalorder %s220_s17, 0  ;;  %p234_p2 = scmp.eq.s32.totalorder %s5810_s13, 1 }
   0x7   : > { %p239_p3 = scmp.ne.s32.totalorder %s5725_s10, %s5721_s30  ;;  %p240_p4 = scmp.eq.s32.totalorder %s5161_s14, 1 }
   0x8   : > { %s5825_s18 = scalar_select %p221_p1, %s5729_s11, %s223_s16  }
   0x9   : > { %p5827_p5 = por %p234_p2, %p233_p0  ;;  %p5831_p6 = por %p240_p4, %p239_p3 }
   0xa   : > { %p5164_p7 = scmp.ge.s32.totalorder %s5733_s12, 1  ;;  %p290_p8 = scmp.lt.s32.totalorder %s5733_s12, 3 }
   0xc   : > { %p291_p9 = pnand %p5164_p7, %p290_p8 }
   0xd   : > { %v2212_v0 = vld [vmem:[%s8887_s2] sm:$0xff] (!%p291_p9)  ;;  %p326_p10 = scmp.lt.s32.totalorder (!%p291_p9), %s5810_s13, 1  ;;  %vm331_vm0 = vcmask (!%p291_p9), 130048   ;;  %vm334_vm1 = vcmask (!%p291_p9), 123904   ;;  %v5735_v1 = vmov (!%p291_p9), 0.0   ;;  %v542_v2 = vlaneseq (!%p291_p9)  ;;  %s323_s29 = sand.u32 (!%p291_p9), 1, %s5725_s10  }
   0xe   : > { %294 = sbr.rel (%p291_p9) target bundleno = 932 (0x3a4), region = 56  ;;  %5374 = vmatprep.subr.mxu0 (!%p291_p9), %v2212_v0  ;;  %332 = vst.msk [vmem:[#allocation2] sm:$0xff] (!%p291_p9), %vm331_vm0, %v5735_v1  ;;  %333 = vst.msk [vmem:[#allocation2 + $0x8] sm:$0xff] (!%p291_p9), %vm331_vm0, %v5735_v1  ;;  %v539_v4 = vld [vmem:[%s8886_s1] sm:$0x7] (!%p291_p9)  ;;  %vm452_vm2 = vcmask (!%p291_p9), 64512  }
   0xf   : > { %336 = vst.msk [vmem:[#allocation2 + $0x18] sm:$0xff] (!%p291_p9), %vm331_vm0, %v5735_v1  ;;  %337 = vst.msk [vmem:[#allocation2 + $0x20] sm:$0xff] (!%p291_p9), %vm331_vm0, %v5735_v1  ;;  %5375 = vmatpush3.msra.mxu0 (!%p291_p9), %v2212_v0  ;;  %v543_v3 = vshrl.u32 (!%p291_p9), %v542_v2, 7  ;;  %v540_v5 = vld [vmem:[%s8886_s1 + $0x4] sm:$0x7] (!%p291_p9)  ;;  %vm710_vm3 = vcmask (!%p291_p9), 1046528  }
  0x10   : > { %338 = vst.msk [vmem:[#allocation2 + $0x28] sm:$0x3] (!%p291_p9), %vm334_vm1, %v5735_v1  ;;  %341 = vst.msk [vmem:[#allocation2 + $0x40] sm:$0x3] (!%p291_p9), %vm334_vm1, %v5735_v1  ;;  %v541_v6 = vld [vmem:[%s8886_s1 + $0x8] sm:$0x7] (!%p291_p9) }
  0x11   : > { %339 = vst.msk [vmem:[#allocation2 + $0x30] sm:$0xff] (!%p291_p9), %vm331_vm0, %v5735_v1  ;;  %340 = vst.msk [vmem:[#allocation2 + $0x38] sm:$0xff] (!%p291_p9), %vm331_vm0, %v5735_v1  ;;  %v5912_v7 = vsub.s32 (!%p291_p9), 0, %v543_v3  ;;  %v5914_v8 = vsub.s32 (!%p291_p9), 1, %v543_v3  ;;  %v5916_v9 = vsub.s32 (!%p291_p9), 2, %v543_v3  ;;  %vm955_vm4 = vcmask (!%p291_p9), 1045504  }
  0x12   : > { %335 = vst.msk [vmem:[#allocation2 + $0x10] sm:$0x3] (!%p291_p9), %vm334_vm1, %v5735_v1  ;;  %344 = vst.msk [vmem:[#allocation2 + $0x58] sm:$0x3] (!%p291_p9), %vm334_vm1, %v5735_v1  ;;  %s5273_s22 = sshll.u32 (!%p291_p9), %s5810_s13, 12  ;;  %s5736_s28 = smov (!%p291_p9), [#allocation3]  }
  0x13   : > { %342 = vst.msk [vmem:[#allocation2 + $0x48] sm:$0xff] (!%p291_p9), %vm331_vm0, %v5735_v1  ;;  %343 = vst.msk [vmem:[#allocation2 + $0x50] sm:$0xff] (!%p291_p9), %vm331_vm0, %v5735_v1  ;;  %v5923_v17 = vrot.slane (!%p291_p9), %v539_v4, %v5912_v7  ;;  %v5926_v21 = vrot.slane (!%p291_p9), %v539_v4, %v5914_v8  ;;  %v5929_v22 = vrot.slane (!%p291_p9), %v539_v4, %v5916_v9  ;;  %s8834_s26 = scalar_lea.hbm (!%p291_p9), %s8894_s9, %s5273_s22 }
  0x14   : > { %345 = vst.msk [vmem:[#allocation2 + $0x60] sm:$0xff] (!%p291_p9), %vm331_vm0, %v5735_v1  ;;  %346 = vst.msk [vmem:[#allocation2 + $0x68] sm:$0xff] (!%p291_p9), %vm331_vm0, %v5735_v1  ;;  %v5932_v23 = vrot.slane (!%p291_p9), %v540_v5, %v5912_v7  ;;  %v5939_v26 = vrot.slane (!%p291_p9), %v540_v5, %v5914_v8  ;;  %v5942_v27 = vrot.slane (!%p291_p9), %v540_v5, %v5916_v9 }
  0x15   : > { %347 = vst.msk [vmem:[#allocation2 + $0x70] sm:$0x3] %vm334_vm1, %v5735_v1  ;;  %350 = vst.msk [vmem:[#allocation2 + $0x88] sm:$0x3] %vm334_vm1, %v5735_v1  ;;  %s327_s23 = scalar_select %p326_p10, %s5810_s13, 1  ;;  %v485_v19 = vld [vmem:[#allocation2] sm:$0xff]  ;;  %v5945_v28 = vrot.slane %v541_v6, %v5912_v7  ;;  %v5957_v35 = vrot.slane %v541_v6, %v5914_v8  ;;  %v5960_v36 = vrot.slane %v541_v6, %v5916_v9 }
  0x16   : > { %348 = vst.msk [vmem:[#allocation2 + $0x78] sm:$0xff] %vm331_vm0, %v5735_v1  ;;  %349 = vst.msk [vmem:[#allocation2 + $0x80] sm:$0xff] %vm331_vm0, %v5735_v1  ;;  %v486_v20 = vld [vmem:[#allocation2 + $0x8] sm:$0xff]  ;;  %v546_v25 = vmul.f32 %v5923_v17, %v485_v19  ;;  %v614_v29 = vmul.f32 %v5926_v21, %v485_v19  ;;  %v859_v31 = vmul.f32 %v5929_v22, %v485_v19  ;;  %s8844_s13 = scalar_lea.sflag [#allocation4], %s323_s29 }
  0x17   : > { %351 = vst.msk [vmem:[#allocation2 + $0x90] sm:$0xff] %vm331_vm0, %v5735_v1  ;;  %352 = vst.msk [vmem:[#allocation2 + $0x98] sm:$0xff] %vm331_vm0, %v5735_v1  ;;  %s5272_s24 = sshll.u32 %s327_s23, 8  ;;  %v615_v30 = vmul.f32 %v5926_v21, %v486_v20  ;;  %v5952_v32 = vmul.f32 %v5929_v22, %v486_v20  ;;  %v547_v37 = vmul.f32 %v5923_v17, %v486_v20 }
  0x18   : > { %353 = vst.msk [vmem:[#allocation2 + $0xa0] sm:$0x3] %vm334_vm1, %v5735_v1  ;;  %356 = vst.msk [vmem:[#allocation2 + $0xb8] sm:$0x3] %vm334_vm1, %v5735_v1  ;;  %s5907_s16 = scalar_lea.vmem %s8885_s0, %s5272_s24  ;;  %v711_v41 = vrot.slane %v614_v29, 1  ;;  %v956_v43 = vrot.slane %v859_v31, 2 }
  0x19   : > { %354 = vst.msk [vmem:[#allocation2 + $0xa8] sm:$0xff] %vm331_vm0, %v5735_v1  ;;  %355 = vst.msk [vmem:[#allocation2 + $0xb0] sm:$0xff] %vm331_vm0, %v5735_v1  ;;  %v387_v10 = vld [vmem:[%s5907_s16] sm:$0xff]  ;;  %v388_v11 = vld [vmem:[%s5907_s16 + $0x8] sm:$0xff]  ;;  %v712_v42 = vrot.slane %v615_v30, 1  ;;  %v957_v44 = vrot.slane %v5952_v32, 2 }
  0x1a   : > { %357 = vst.msk [vmem:[#allocation2 + $0xc0] sm:$0xff] %vm331_vm0, %v5735_v1  ;;  %358 = vst.msk [vmem:[#allocation2 + $0xc8] sm:$0xff] %vm331_vm0, %v5735_v1  ;;  %v389_v12 = vld [vmem:[%s5907_s16 + $0x10] sm:$0xff]  ;;  %v390_v13 = vld [vmem:[%s5907_s16 + $0x18] sm:$0xff]  ;;  %v419_v14 = vmax.f32 %v387_v10, 0.0  ;;  %v420_v15 = vmax.f32 %v388_v11, 0.0 }
  0x1b   : > { %359 = vst.msk [vmem:[#allocation2 + $0xd0] sm:$0x3] %vm334_vm1, %v5735_v1  ;;  %362 = vst.msk [vmem:[#allocation2 + $0xe8] sm:$0x3] %vm334_vm1, %v5735_v1  ;;  %v421_v16 = vmax.f32 %v389_v12, 0.0  ;;  %v422_v18 = vmax.f32 %v390_v13, 0.0  ;;  %v713_v53 = vsel %vm710_vm3, %v711_v41, %v712_v42  ;;  %v958_v54 = vsel %vm955_vm4, %v956_v43, %v957_v44 }
  0x1c   : > { %360 = vst.msk [vmem:[#allocation2 + $0xd8] sm:$0xff] %vm331_vm0, %v5735_v1  ;;  %361 = vst.msk [vmem:[#allocation2 + $0xe0] sm:$0xff] %vm331_vm0, %v5735_v1  ;;  %v487_v24 = vld [vmem:[#allocation2 + $0x10] sm:$0x3]  ;;  %v391_v33 = vld [vmem:[%s5907_s16 + $0x20] sm:$0xff]  ;;  %v823_v57 = vadd.f32 %v713_v53, %v546_v25 }
  0x1d   : > { %363 = vst.msk [vmem:[#allocation2 + $0xf0] sm:$0xff] %vm331_vm0, %v5735_v1  ;;  %364 = vst.msk [vmem:[#allocation2 + $0xf8] sm:$0xff] %vm331_vm0, %v5735_v1  ;;  %v392_v34 = vld [vmem:[%s5907_s16 + $0x28] sm:$0xff]  ;;  %v616_v38 = vmul.f32 %v5926_v21, %v487_v24  ;;  %v393_v39 = vld [vmem:[%s5907_s16 + $0x30] sm:$0xff]  ;;  %v861_v47 = vmul.f32 %v5929_v22, %v487_v24  ;;  %v423_v48 = vmax.f32 %v391_v33, 0.0 }
  0x1e   : > { %365 = vst.msk [vmem:[#allocation2 + $0x100] sm:$0x3] %vm334_vm1, %v5735_v1  ;;  %368 = vst.msk [vmem:[#allocation2 + $0x118] sm:$0x3] %vm334_vm1, %v5735_v1  ;;  %v394_v40 = vld [vmem:[%s5907_s16 + $0x38] sm:$0xff]  ;;  %v395_v45 = vld [vmem:[%s5907_s16 + $0x40] sm:$0xff]  ;;  %v1068_v4 = vadd.f32 %v958_v54, %v823_v57 }
  0x1f   : > { %366 = vst.msk [vmem:[#allocation2 + $0x108] sm:$0xff] %vm331_vm0, %v5735_v1  ;;  %367 = vst.msk [vmem:[#allocation2 + $0x110] sm:$0xff] %vm331_vm0, %v5735_v1  ;;  %v714_v46 = vrot.slane %v616_v38, 1  ;;  %v424_v49 = vmax.f32 %v392_v34, 0.0  ;;  %v396_v50 = vld [vmem:[%s5907_s16 + $0x48] sm:$0xff]  ;;  %v397_v51 = vld [vmem:[%s5907_s16 + $0x50] sm:$0xff] }
  0x20   : > { %369 = vst.msk [vmem:[#allocation2 + $0x120] sm:$0xff] %vm331_vm0, %v5735_v1  ;;  %370 = vst.msk [vmem:[#allocation2 + $0x128] sm:$0xff] %vm331_vm0, %v5735_v1  ;;  %v398_v52 = vld [vmem:[%s5907_s16 + $0x58] sm:$0xff]  ;;  %v425_v55 = vmax.f32 %v393_v39, 0.0  ;;  %v426_v56 = vmax.f32 %v394_v40, 0.0  ;;  %v959_v59 = vrot.slane %v861_v47, 2 }
  0x21   : > { %371 = vst.msk [vmem:[#allocation2 + $0x130] sm:$0x3] %vm334_vm1, %v5735_v1  ;;  %374 = vst.msk [vmem:[#allocation2 + $0x148] sm:$0x3] %vm334_vm1, %v5735_v1  ;;  %v715_v58 = vsel %vm710_vm3, %v712_v42, %v714_v46  ;;  %v427_v60 = vmax.f32 %v395_v45, 0.0  ;;  %v428_v0 = vmax.f32 %v396_v50, 0.0 }
  0x22   : > { %372 = vst.msk [vmem:[#allocation2 + $0x138] sm:$0xff] %vm331_vm0, %v5735_v1  ;;  %373 = vst.msk [vmem:[#allocation2 + $0x140] sm:$0xff] %vm331_vm0, %v5735_v1  ;;  %v824_v63 = vadd.f32 %v715_v58, %v547_v37  ;;  %v430_v2 = vmax.f32 %v398_v52, 0.0  ;;  %v960_v37 = vsel %vm955_vm4, %v957_v44, %v959_v59 }
  0x23   : > { %375 = vst.msk [vmem:[#allocation2 + $0x150] sm:$0xff] %vm331_vm0, %v5735_v1  ;;  %376 = vst.msk [vmem:[#allocation2 + $0x158] sm:$0xff] %vm331_vm0, %v5735_v1 }
  0x24   : > { %377 = vst.msk [vmem:[#allocation2 + $0x160] sm:$0x3] %vm334_vm1, %v5735_v1  ;;  %380 = vst.msk [vmem:[#allocation2 + $0x178] sm:$0x3] %vm334_vm1, %v5735_v1  ;;  %v1069_v41 = vadd.f32 %v960_v37, %v824_v63 }
  0x25   : > { %378 = vst.msk [vmem:[#allocation2 + $0x168] sm:$0xff] %vm331_vm0, %v5735_v1  ;;  %379 = vst.msk [vmem:[#allocation2 + $0x170] sm:$0xff] %vm331_vm0, %v5735_v1 }
  0x26   : > { %381 = vst.msk [vmem:[#allocation2 + $0x180] sm:$0xff] %vm331_vm0, %v5735_v1  ;;  %382 = vst.msk [vmem:[#allocation2 + $0x188] sm:$0xff] %vm331_vm0, %v5735_v1 }
  0x27   : > { %383 = vst.msk [vmem:[#allocation2 + $0x190] sm:$0x3] %vm334_vm1, %v5735_v1  ;;  %386 = vst.msk [vmem:[#allocation2 + $0x1a8] sm:$0x3] %vm334_vm1, %v5735_v1 }
  0x28   : > { %384 = vst.msk [vmem:[#allocation2 + $0x198] sm:$0xff] %vm331_vm0, %v5735_v1  ;;  %385 = vst.msk [vmem:[#allocation2 + $0x1a0] sm:$0xff] %vm331_vm0, %v5735_v1  ;;  %v429_v1 = vmax.f32 %v397_v51, 0.0 }
  0x29   : > { %453 = vst.msk [vmem:[#allocation2 + $0x19] sm:$0xff] %vm452_vm2, %v419_v14  ;;  %454 = vst.msk [vmem:[#allocation2 + $0x21] sm:$0xff] %vm452_vm2, %v420_v15 }
  0x2a   : > { %455 = vst.msk [vmem:[#allocation2 + $0x31] sm:$0xff] %vm452_vm2, %v421_v16  ;;  %456 = vst.msk [vmem:[#allocation2 + $0x39] sm:$0xff] %vm452_vm2, %v422_v18 }
  0x2b   : > { %457 = vst.msk [vmem:[#allocation2 + $0x49] sm:$0xff] %vm452_vm2, %v423_v48  ;;  %458 = vst.msk [vmem:[#allocation2 + $0x51] sm:$0xff] %vm452_vm2, %v424_v49 }
  0x2c   : > { %459 = vst.msk [vmem:[#allocation2 + $0x61] sm:$0xff] %vm452_vm2, %v425_v55  ;;  %460 = vst.msk [vmem:[#allocation2 + $0x69] sm:$0xff] %vm452_vm2, %v426_v56 }
  0x2d   : > { %461 = vst.msk [vmem:[#allocation2 + $0x79] sm:$0xff] %vm452_vm2, %v427_v60  ;;  %462 = vst.msk [vmem:[#allocation2 + $0x81] sm:$0xff] %vm452_vm2, %v428_v0 }
  0x2e   : > { %463 = vst.msk [vmem:[#allocation2 + $0x91] sm:$0xff] %vm452_vm2, %v429_v1  ;;  %464 = vst.msk [vmem:[#allocation2 + $0x99] sm:$0xff] %vm452_vm2, %v430_v2 }
  0x30   : > { %v5977_v61 = vld [vmem:[#allocation2 + $0x18] sm:$0xff]  ;;  %v5979_v62 = vld [vmem:[#allocation2 + $0x20] sm:$0xff]  ;;  %v6009_v31 = vld [vmem:[#allocation2 + $0x28] sm:$0x3] }
  0x31   : > { %v5983_v3 = vld [vmem:[#allocation2 + $0x30] sm:$0xff]  ;;  %v1104_v5 = vmul.f32 %v5932_v23, %v5977_v61  ;;  %v1172_v6 = vmul.f32 %v5939_v26, %v5977_v61  ;;  %v1173_v10 = vmul.f32 %v5939_v26, %v5979_v62  ;;  %v5992_v11 = vld [vmem:[#allocation2 + $0x38] sm:$0xff]  ;;  %v1416_v12 = vmul.f32 %v5942_v27, %v5977_v61  ;;  %v6017_v45 = vld [vmem:[#allocation2 + $0x40] sm:$0x3] }
  0x32   : > { %v1417_v13 = vmul.f32 %v5942_v27, %v5979_v62  ;;  %v1660_v14 = vmul.f32 %v5945_v28, %v5983_v3  ;;  %v1728_v15 = vmul.f32 %v5957_v35, %v5983_v3  ;;  %v1729_v20 = vmul.f32 %v5957_v35, %v5992_v11 }
  0x33   : > { %v1136_v16 = vadd.f32 %v1104_v5, %v1068_v4  ;;  %v1268_v18 = vrot.slane %v1172_v6, 1  ;;  %v1269_v19 = vrot.slane %v1173_v10, 1  ;;  %v1512_v24 = vrot.slane %v1416_v12, 2 }
  0x34   : > { %v1513_v25 = vrot.slane %v1417_v13, 2  ;;  %v1824_v29 = vrot.slane %v1728_v15, 1  ;;  %v1972_v30 = vmul.f32 %v5960_v36, %v5983_v3  ;;  %v1825_v33 = vrot.slane %v1729_v20, 1 }
  0x35   : > { %v1270_v32 = vsel %vm710_vm3, %v1268_v18, %v1269_v19  ;;  %v1973_v34 = vmul.f32 %v5960_v36, %v5992_v11  ;;  %v1105_v46 = vmul.f32 %v5932_v23, %v5979_v62  ;;  %v1174_v47 = vmul.f32 %v5939_v26, %v6009_v31 }
  0x36   : > { %v1380_v38 = vadd.f32 %v1270_v32, %v1136_v16  ;;  %v1514_v39 = vsel %vm955_vm4, %v1512_v24, %v1513_v25  ;;  %v2068_v40 = vrot.slane %v1972_v30, 2  ;;  %v1826_v42 = vsel %vm710_vm3, %v1824_v29, %v1825_v33  ;;  %v6057_v29 = vld [vmem:[#allocation2 + $0x48] sm:$0xff] }
  0x37   : > { %v2069_v43 = vrot.slane %v1973_v34, 2  ;;  %v1418_v44 = vmul.f32 %v5942_v27, %v6009_v31  ;;  %v1661_v49 = vmul.f32 %v5945_v28, %v5992_v11  ;;  %v1730_v50 = vmul.f32 %v5957_v35, %v6017_v45 }
  0x38   : > { %v1624_v48 = vadd.f32 %v1514_v39, %v1380_v38  ;;  %v1137_v52 = vadd.f32 %v1105_v46, %v1069_v41  ;;  %v1271_v53 = vrot.slane %v1174_v47, 1  ;;  %v1974_v54 = vmul.f32 %v5960_v36, %v6017_v45  ;;  %v6065_v41 = vld [vmem:[#allocation2 + $0x50] sm:$0xff] }
  0x39   : > { %v2070_v51 = vsel %vm955_vm4, %v2068_v40, %v2069_v43  ;;  %v1515_v56 = vrot.slane %v1418_v44, 2  ;;  %v1827_v57 = vrot.slane %v1730_v50, 1  ;;  %v548_v58 = vmul.f32 %v5923_v17, %v5977_v61 }
  0x3a   : > { %v1692_v55 = vadd.f32 %v1660_v14, %v1624_v48  ;;  %v1272_v59 = vsel %vm710_vm3, %v1269_v19, %v1271_v53  ;;  %v2071_v60 = vrot.slane %v1974_v54, 2  ;;  %v617_v63 = vmul.f32 %v5926_v21, %v5977_v61 }
  0x3b   : > { %v6039_v0 = vmul.f32 %v5926_v21, %v5979_v62  ;;  %v1381_v2 = vadd.f32 %v1272_v59, %v1137_v52  ;;  %v1516_v4 = vsel %vm955_vm4, %v1513_v25, %v1515_v56  ;;  %v1828_v5 = vsel %vm710_vm3, %v1825_v33, %v1827_v57 }
  0x3c   : > { %v1936_v1 = vadd.f32 %v1826_v42, %v1692_v55  ;;  %v2072_v6 = vsel %vm955_vm4, %v2069_v43, %v2071_v60  ;;  %v716_v10 = vrot.slane %v617_v63, 1  ;;  %v862_v13 = vmul.f32 %v5929_v22, %v5977_v61 }
  0x3d   : > { %v717_v12 = vrot.slane %v6039_v0, 1  ;;  %v1625_v15 = vadd.f32 %v1516_v4, %v1381_v2  ;;  %v863_v16 = vmul.f32 %v5929_v22, %v5979_v62  ;;  %v1106_v18 = vmul.f32 %v5932_v23, %v5983_v3 }
  0x3e   : > { %v2180_v14 = vadd.f32 %v2070_v51, %v1936_v1  ;;  %v961_v20 = vrot.slane %v862_v13, 2  ;;  %v1175_v24 = vmul.f32 %v5939_v26, %v5983_v3  ;;  %v1176_v25 = vmul.f32 %v5939_v26, %v5992_v11 }
  0x3f   : > { %v718_v19 = vsel %vm710_vm3, %v716_v10, %v717_v12  ;;  %v1693_v61 = vadd.f32 %v1661_v49, %v1625_v15  ;;  %v962_v32 = vrot.slane %v863_v16, 2  ;;  %v1419_v33 = vmul.f32 %v5942_v27, %v5983_v3 }
  0x40   : > { %5376 = vmatprep.mubr.msk.f32.mxu0 %vm452_vm2, %v2180_v14  ;;  %v825_v30 = vadd.f32 %v718_v19, %v548_v58  ;;  %v1273_v34 = vrot.slane %v1175_v24, 1  ;;  %v1274_v37 = vrot.slane %v1176_v25, 1  ;;  %v1420_v38 = vmul.f32 %v5942_v27, %v5992_v11 }
  0x41   : > { %v1662_v39 = vmul.f32 %v5945_v28, %v6057_v29  ;;  %v1937_v40 = vadd.f32 %v1828_v5, %v1693_v61  ;;  %v963_v42 = vsel %vm955_vm4, %v961_v20, %v962_v32  ;;  %v1517_v43 = vrot.slane %v1419_v33, 2  ;;  %v6091_v5 = vld [vmem:[#allocation2 + $0x58] sm:$0x3] }
  0x42   : > { %v1731_v46 = vmul.f32 %v5957_v35, %v6057_v29  ;;  %v1070_v47 = vadd.f32 %v963_v42, %v825_v30  ;;  %v1275_v48 = vsel %vm710_vm3, %v1273_v34, %v1274_v37  ;;  %v1518_v44 = vrot.slane %v1420_v38, 2 }
  0x43   : > { %v1732_v49 = vmul.f32 %v5957_v35, %v6065_v41  ;;  %v2181_v50 = vadd.f32 %v2072_v6, %v1937_v40  ;;  %v1975_v52 = vmul.f32 %v5960_v36, %v6057_v29  ;;  %v1976_v53 = vmul.f32 %v5960_v36, %v6065_v41 }
  0x44   : > { %v1829_v51 = vrot.slane %v1731_v46, 1  ;;  %v1138_v54 = vadd.f32 %v1106_v18, %v1070_v47  ;;  %v1519_v55 = vsel %vm955_vm4, %v1517_v43, %v1518_v44  ;;  %v549_v57 = vmul.f32 %v5923_v17, %v5979_v62 }
  0x45   : > { %v1830_v56 = vrot.slane %v1732_v49, 1  ;;  %5377 = vmatmul.mubr.msk.f32.vlgmr.msra.gmra.mrb[0].mxu0 %vm452_vm2, %v2181_v50  ;;  %v2073_v58 = vrot.slane %v1975_v52, 2  ;;  %v2074_v59 = vrot.slane %v1976_v53, 2  ;;  %v619_v60 = vmul.f32 %v5926_v21, %v6009_v31 }
  0x46   : > { %v864_v63 = vmul.f32 %v5929_v22, %v6009_v31  ;;  %v1382_v0 = vadd.f32 %v1275_v48, %v1138_v54  ;;  %v1107_v2 = vmul.f32 %v5932_v23, %v5992_v11  ;;  %v1177_v4 = vmul.f32 %v5939_v26, %v6017_v45 }
  0x47   : > { %v1831_v1 = vsel %vm710_vm3, %v1829_v51, %v1830_v56  ;;  %v2075_v62 = vsel %vm955_vm4, %v2073_v58, %v2074_v59  ;;  %v719_v6 = vrot.slane %v619_v60, 1  ;;  %v1421_v13 = vmul.f32 %v5942_v27, %v6017_v45 }
  0x48   : > { %v964_v10 = vrot.slane %v864_v63, 2  ;;  %v1626_v14 = vadd.f32 %v1519_v55, %v1382_v0  ;;  %v1276_v31 = vrot.slane %v1177_v4, 1  ;;  %v1663_v15 = vmul.f32 %v5945_v28, %v6065_v41  ;;  %v6132_v4 = vld [vmem:[#allocation2 + $0x68] sm:$0xff] }
  0x49   : > { %v1733_v16 = vmul.f32 %v5957_v35, %v6091_v5  ;;  %v720_v18 = vsel %vm710_vm3, %v717_v12, %v719_v6  ;;  %v1520_v20 = vrot.slane %v1421_v13, 2  ;;  %v1977_v24 = vmul.f32 %v5960_v36, %v6091_v5 }
  0x4a   : > { %v965_v19 = vsel %vm955_vm4, %v962_v32, %v964_v10  ;;  %v1694_v25 = vadd.f32 %v1662_v39, %v1626_v14  ;;  %v826_v61 = vadd.f32 %v720_v18, %v549_v57  ;;  %v1277_v30 = vsel %vm710_vm3, %v1274_v37, %v1276_v31 }
  0x4b   : > { %v1832_v33 = vrot.slane %v1733_v16, 1  ;;  %v1521_v34 = vsel %vm955_vm4, %v1518_v44, %v1520_v20  ;;  %v2076_v38 = vrot.slane %v1977_v24, 2  ;;  %v550_v40 = vmul.f32 %v5923_v17, %v5983_v3 }
  0x4c   : > { %v620_v12 = vmul.f32 %v5926_v21, %v5983_v3  ;;  %v1938_v42 = vadd.f32 %v1831_v1, %v1694_v25  ;;  %v1071_v32 = vadd.f32 %v965_v19, %v826_v61  ;;  %v621_v39 = vmul.f32 %v5926_v21, %v5992_v11 }
  0x4d   : > { %v1833_v43 = vsel %vm710_vm3, %v1830_v56, %v1832_v33  ;;  %v2077_v46 = vsel %vm955_vm4, %v2074_v59, %v2076_v38  ;;  %v865_v47 = vmul.f32 %v5929_v22, %v5983_v3  ;;  %v866_v48 = vmul.f32 %v5929_v22, %v5992_v11  ;;  %v6129_v59 = vld [vmem:[#allocation2 + $0x60] sm:$0xff] }
  0x4e   : > { %v721_v37 = vrot.slane %v620_v12, 1  ;;  %v2182_v44 = vadd.f32 %v2075_v62, %v1938_v42  ;;  %v1139_v49 = vadd.f32 %v1107_v2, %v1071_v32  ;;  %v722_v50 = vrot.slane %v621_v39, 1 }
  0x4f   : > { %v1108_v51 = vmul.f32 %v5932_v23, %v6057_v29  ;;  %v966_v52 = vrot.slane %v865_v47, 2  ;;  %v967_v53 = vrot.slane %v866_v48, 2  ;;  %v1178_v54 = vmul.f32 %v5939_v26, %v6057_v29 }
  0x50   : > { %v1179_v55 = vmul.f32 %v5939_v26, %v6065_v41  ;;  %5379 = vmatprep.mubr.msk.f32.mxu0 %vm452_vm2, %v2182_v44  ;;  %v1383_v3 = vadd.f32 %v1277_v30, %v1139_v49  ;;  %v723_v56 = vsel %vm710_vm3, %v721_v37, %v722_v50  ;;  %v1422_v57 = vmul.f32 %v5942_v27, %v6057_v29  ;;  %v6158_v44 = vld [vmem:[#allocation2 + $0x70] sm:$0x3] }
  0x51   : > { %v1423_v58 = vmul.f32 %v5942_v27, %v6065_v41  ;;  %v827_v60 = vadd.f32 %v723_v56, %v550_v40  ;;  %v968_v63 = vsel %vm955_vm4, %v966_v52, %v967_v53  ;;  %v1278_v0 = vrot.slane %v1178_v54, 1 }
  0x52   : > { %v1279_v1 = vrot.slane %v1179_v55, 1  ;;  %v1627_v2 = vadd.f32 %v1521_v34, %v1383_v3  ;;  %v1522_v62 = vrot.slane %v1422_v57, 2  ;;  %v1664_v10 = vmul.f32 %v5945_v28, %v6129_v59 }
  0x53   : > { %v1523_v6 = vrot.slane %v1423_v58, 2  ;;  %v1072_v13 = vadd.f32 %v968_v63, %v827_v60  ;;  %v1734_v31 = vmul.f32 %v5957_v35, %v6129_v59  ;;  %v1735_v16 = vmul.f32 %v5957_v35, %v6132_v4 }
  0x54   : > { %v1280_v14 = vsel %vm710_vm3, %v1278_v0, %v1279_v1  ;;  %v1695_v18 = vadd.f32 %v1663_v15, %v1627_v2  ;;  %v1978_v20 = vmul.f32 %v5960_v36, %v6129_v59  ;;  %v1979_v24 = vmul.f32 %v5960_v36, %v6132_v4 }
  0x55   : > { %v1524_v19 = vsel %vm955_vm4, %v1522_v62, %v1523_v6  ;;  %v1140_v25 = vadd.f32 %v1108_v51, %v1072_v13  ;;  %v1834_v61 = vrot.slane %v1734_v31, 1  ;;  %v1835_v30 = vrot.slane %v1735_v16, 1 }
  0x56   : > { %v551_v33 = vmul.f32 %v5923_v17, %v5992_v11  ;;  %v1939_v34 = vadd.f32 %v1833_v43, %v1695_v18  ;;  %v2078_v38 = vrot.slane %v1978_v20, 2  ;;  %v2079_v40 = vrot.slane %v1979_v24, 2 }
  0x57   : > { %v622_v15 = vmul.f32 %v5926_v21, %v6017_v45  ;;  %v1384_v12 = vadd.f32 %v1280_v14, %v1140_v25  ;;  %v1836_v42 = vsel %vm710_vm3, %v1834_v61, %v1835_v30  ;;  %v867_v32 = vmul.f32 %v5929_v22, %v6017_v45 }
  0x58   : > { %v1109_v39 = vmul.f32 %v5932_v23, %v6065_v41  ;;  %v2183_v37 = vadd.f32 %v2077_v46, %v1939_v34  ;;  %v2080_v47 = vsel %vm955_vm4, %v2078_v38, %v2079_v40  ;;  %v1180_v11 = vmul.f32 %v5939_v26, %v6091_v5 }
  0x59   : > { %v724_v48 = vrot.slane %v622_v15, 1  ;;  %v1628_v43 = vadd.f32 %v1524_v19, %v1384_v12  ;;  %v969_v49 = vrot.slane %v867_v32, 2  ;;  %v1424_v51 = vmul.f32 %v5942_v27, %v6091_v5 }
  0x5a   : > { %v1665_v45 = vmul.f32 %v5945_v28, %v6132_v4  ;;  %5380 = vmatmul.mubr.msk.f32.gmra.mrb[2].mxu0 %vm452_vm2, %v2183_v37  ;;  %v1281_v52 = vrot.slane %v1180_v11, 1  ;;  %v1736_v54 = vmul.f32 %v5957_v35, %v6158_v44  ;;  %v1980_v55 = vmul.f32 %v5960_v36, %v6158_v44 }
  0x5b   : > { %v725_v46 = vsel %vm710_vm3, %v722_v50, %v724_v48  ;;  %v1696_v3 = vadd.f32 %v1664_v10, %v1628_v43  ;;  %v970_v57 = vsel %vm955_vm4, %v967_v53, %v969_v49  ;;  %v1525_v58 = vrot.slane %v1424_v51, 2 }
  0x5c   : > { %v828_v56 = vadd.f32 %v725_v46, %v551_v33  ;;  %v1282_v60 = vsel %vm710_vm3, %v1279_v1, %v1281_v52  ;;  %v1837_v63 = vrot.slane %v1736_v54, 1  ;;  %v2081_v0 = vrot.slane %v1980_v55, 2  ;;  %v6190_v33 = vld [vmem:[#allocation2 + $0x78] sm:$0xff] }
  0x5d   : > { %v552_v2 = vmul.f32 %v5923_v17, %v6057_v29  ;;  %v1940_v50 = vadd.f32 %v1836_v42, %v1696_v3  ;;  %v1526_v13 = vsel %vm955_vm4, %v1523_v6, %v1525_v58  ;;  %v623_v14 = vmul.f32 %v5926_v21, %v6057_v29 }
  0x5e   : > { %v1073_v62 = vadd.f32 %v970_v57, %v828_v56  ;;  %v1838_v10 = vsel %vm710_vm3, %v1835_v30, %v1837_v63  ;;  %v2082_v31 = vsel %vm955_vm4, %v2079_v40, %v2081_v0  ;;  %v624_v53 = vmul.f32 %v5926_v21, %v6065_v41 }
  0x5f   : > { %v868_v1 = vmul.f32 %v5929_v22, %v6057_v29  ;;  %v2184_v16 = vadd.f32 %v2080_v47, %v1940_v50  ;;  %v726_v19 = vrot.slane %v623_v14, 1  ;;  %v869_v20 = vmul.f32 %v5929_v22, %v6065_v41 }
  0x60   : > { %v1141_v18 = vadd.f32 %v1109_v39, %v1073_v62  ;;  %v727_v6 = vrot.slane %v624_v53, 1  ;;  %v1110_v25 = vmul.f32 %v5932_v23, %v6129_v59  ;;  %v1181_v61 = vmul.f32 %v5939_v26, %v6129_v59  ;;  %v6201_v39 = vld [vmem:[#allocation2 + $0x80] sm:$0xff] }
  0x61   : > { %v971_v24 = vrot.slane %v868_v1, 2  ;;  %5382 = vmatprep.mubr.msk.f32.mxu0 %vm452_vm2, %v2184_v16  ;;  %v972_v29 = vrot.slane %v869_v20, 2  ;;  %v1182_v34 = vmul.f32 %v5939_v26, %v6132_v4  ;;  %v1425_v38 = vmul.f32 %v5942_v27, %v6129_v59 }
  0x62   : > { %v1385_v30 = vadd.f32 %v1282_v60, %v1141_v18  ;;  %v728_v40 = vsel %vm710_vm3, %v726_v19, %v727_v6  ;;  %v1283_v15 = vrot.slane %v1181_v61, 1  ;;  %v1426_v12 = vmul.f32 %v5942_v27, %v6132_v4 }
  0x63   : > { %v1666_v42 = vmul.f32 %v5945_v28, %v6190_v33  ;;  %v829_v37 = vadd.f32 %v728_v40, %v552_v2  ;;  %v973_v47 = vsel %vm955_vm4, %v971_v24, %v972_v29  ;;  %v1284_v48 = vrot.slane %v1182_v34, 1 }
  0x64   : > { %v1629_v32 = vadd.f32 %v1526_v13, %v1385_v30  ;;  %v1527_v11 = vrot.slane %v1425_v38, 2  ;;  %v1528_v43 = vrot.slane %v1426_v12, 2  ;;  %v1737_v49 = vmul.f32 %v5957_v35, %v6190_v33 }
  0x65   : > { %v1738_v51 = vmul.f32 %v5957_v35, %v6201_v39  ;;  %v1074_v52 = vadd.f32 %v973_v47, %v829_v37  ;;  %v1285_v54 = vsel %vm710_vm3, %v1283_v15, %v1284_v48  ;;  %v1981_v55 = vmul.f32 %v5960_v36, %v6190_v33 }
  0x66   : > { %v1697_v46 = vadd.f32 %v1665_v45, %v1629_v32  ;;  %v1529_v3 = vsel %vm955_vm4, %v1527_v11, %v1528_v43  ;;  %v1839_v56 = vrot.slane %v1737_v49, 1  ;;  %v1982_v58 = vmul.f32 %v5960_v36, %v6201_v39 }
  0x67   : > { %v1840_v57 = vrot.slane %v1738_v51, 1  ;;  %v1142_v63 = vadd.f32 %v1110_v25, %v1074_v52  ;;  %v2083_v0 = vrot.slane %v1981_v55, 2  ;;  %v553_v2 = vmul.f32 %v5923_v17, %v6065_v41  ;;  %v6226_v41 = vld [vmem:[#allocation2 + $0x88] sm:$0x3] }
  0x68   : > { %v1941_v60 = vadd.f32 %v1838_v10, %v1697_v46  ;;  %v2084_v50 = vrot.slane %v1982_v58, 2  ;;  %v625_v62 = vmul.f32 %v5926_v21, %v6091_v5  ;;  %v870_v13 = vmul.f32 %v5929_v22, %v6091_v5 }
  0x69   : > { %v1841_v45 = vsel %vm710_vm3, %v1839_v56, %v1840_v57  ;;  %v1386_v53 = vadd.f32 %v1285_v54, %v1142_v63  ;;  %v1111_v1 = vmul.f32 %v5932_v23, %v6132_v4  ;;  %v1183_v10 = vmul.f32 %v5939_v26, %v6158_v44 }
  0x6a   : > { %v2185_v14 = vadd.f32 %v2082_v31, %v1941_v60  ;;  %v2085_v16 = vsel %vm955_vm4, %v2083_v0, %v2084_v50  ;;  %v729_v18 = vrot.slane %v625_v62, 1  ;;  %v974_v19 = vrot.slane %v870_v13, 2 }
  0x6b   : > { %v1427_v20 = vmul.f32 %v5942_v27, %v6158_v44  ;;  %v1630_v5 = vadd.f32 %v1529_v3, %v1386_v53  ;;  %v1286_v31 = vrot.slane %v1183_v10, 1  ;;  %v1667_v24 = vmul.f32 %v5945_v28, %v6201_v39  ;;  %v6271_v10 = vld [vmem:[#allocation2 + $0x98] sm:$0xff] }
  0x6c   : > { %5383 = vmatmul.mubr.msk.f32.gmra.mrb[4].mxu0 %vm452_vm2, %v2185_v14  ;;  %v1739_v25 = vmul.f32 %v5957_v35, %v6226_v41  ;;  %v730_v61 = vsel %vm710_vm3, %v727_v6, %v729_v18  ;;  %v975_v30 = vsel %vm955_vm4, %v972_v29, %v974_v19  ;;  %v1983_v38 = vmul.f32 %v5960_v36, %v6226_v41 }
  0x6d   : > { %v1530_v34 = vrot.slane %v1427_v20, 2  ;;  %v1698_v40 = vadd.f32 %v1666_v42, %v1630_v5  ;;  %v830_v15 = vadd.f32 %v730_v61, %v553_v2  ;;  %v1287_v12 = vsel %vm710_vm3, %v1284_v48, %v1286_v31 }
  0x6e   : > { %v1842_v32 = vrot.slane %v1739_v25, 1  ;;  %v2086_v47 = vrot.slane %v1983_v38, 2  ;;  %v554_v11 = vmul.f32 %v5923_v17, %v6129_v59  ;;  %v626_v6 = vmul.f32 %v5926_v21, %v6129_v59 }
  0x6f   : > { %v1531_v37 = vsel %vm955_vm4, %v1528_v43, %v1530_v34  ;;  %v1942_v49 = vadd.f32 %v1841_v45, %v1698_v40  ;;  %v1075_v29 = vadd.f32 %v975_v30, %v830_v15  ;;  %v627_v42 = vmul.f32 %v5926_v21, %v6132_v4 }
  0x70   : > { %v1843_v51 = vsel %vm710_vm3, %v1840_v57, %v1842_v32  ;;  %v2087_v46 = vsel %vm955_vm4, %v2084_v50, %v2086_v47  ;;  %v731_v48 = vrot.slane %v626_v6, 1  ;;  %v871_v43 = vmul.f32 %v5929_v22, %v6129_v59  ;;  %v6268_v50 = vld [vmem:[#allocation2 + $0x90] sm:$0xff] }
  0x71   : > { %v6253_v52 = vmul.f32 %v5929_v22, %v6132_v4  ;;  %v2186_v54 = vadd.f32 %v2085_v16, %v1942_v49  ;;  %v1143_v55 = vadd.f32 %v1111_v1, %v1075_v29  ;;  %v732_v3 = vrot.slane %v627_v42, 1 }
  0x72   : > { %v1112_v56 = vmul.f32 %v5932_v23, %v6190_v33  ;;  %v976_v57 = vrot.slane %v871_v43, 2  ;;  %v1184_v60 = vmul.f32 %v5939_v26, %v6190_v33  ;;  %v1185_v63 = vmul.f32 %v5939_v26, %v6201_v39 }
  0x73   : > { %v977_v58 = vrot.slane %v6253_v52, 2  ;;  %5385 = vmatprep.mubr.msk.f32.mxu0 %vm452_vm2, %v2186_v54  ;;  %v1387_v59 = vadd.f32 %v1287_v12, %v1143_v55  ;;  %v733_v0 = vsel %vm710_vm3, %v731_v48, %v732_v3  ;;  %v1428_v2 = vmul.f32 %v5942_v27, %v6190_v33  ;;  %v6297_v54 = vld [vmem:[#allocation2 + $0xa0] sm:$0x3] }
  0x74   : > { %v1429_v45 = vmul.f32 %v5942_v27, %v6201_v39  ;;  %v831_v62 = vadd.f32 %v733_v0, %v554_v11  ;;  %v1288_v14 = vrot.slane %v1184_v60, 1  ;;  %v1289_v53 = vrot.slane %v1185_v63, 1  ;;  %v400_v0 = vld [vmem:[%s5907_s16 + $0x68] sm:$0xff] }
  0x75   : > { %v978_v13 = vsel %vm955_vm4, %v976_v57, %v977_v58  ;;  %v1631_v1 = vadd.f32 %v1531_v37, %v1387_v59  ;;  %v1532_v16 = vrot.slane %v1428_v2, 2  ;;  %v1668_v19 = vmul.f32 %v5945_v28, %v6268_v50  ;;  %v399_v57 = vld [vmem:[%s5907_s16 + $0x60] sm:$0xff] }
  0x76   : > { %v1533_v18 = vrot.slane %v1429_v45, 2  ;;  %v1076_v20 = vadd.f32 %v978_v13, %v831_v62  ;;  %v1290_v5 = vsel %vm710_vm3, %v1288_v14, %v1289_v53  ;;  %v1740_v31 = vmul.f32 %v5957_v35, %v6268_v50 }
  0x77   : > { %v1741_v25 = vmul.f32 %v5957_v35, %v6271_v10  ;;  %v1699_v61 = vadd.f32 %v1667_v24, %v1631_v1  ;;  %v1984_v34 = vmul.f32 %v5960_v36, %v6268_v50  ;;  %v1985_v38 = vmul.f32 %v5960_v36, %v6271_v10 }
  0x78   : > { %v1534_v30 = vsel %vm955_vm4, %v1532_v16, %v1533_v18  ;;  %v1144_v40 = vadd.f32 %v1112_v56, %v1076_v20  ;;  %v1844_v15 = vrot.slane %v1740_v31, 1  ;;  %v555_v32 = vmul.f32 %v5923_v17, %v6132_v4 }
  0x79   : > { %v1845_v12 = vrot.slane %v1741_v25, 1  ;;  %v1943_v37 = vadd.f32 %v1843_v51, %v1699_v61  ;;  %v2088_v47 = vrot.slane %v1984_v34, 2  ;;  %v2089_v11 = vrot.slane %v1985_v38, 2 }
  0x7a   : > { %v628_v24 = vmul.f32 %v5926_v21, %v6158_v44  ;;  %v1388_v6 = vadd.f32 %v1290_v5, %v1144_v40  ;;  %v873_v29 = vmul.f32 %v5929_v22, %v6158_v44  ;;  %v1113_v42 = vmul.f32 %v5932_v23, %v6201_v39 }
  0x7b   : > { %v1846_v49 = vsel %vm710_vm3, %v1844_v15, %v1845_v12  ;;  %v2187_v48 = vadd.f32 %v2087_v46, %v1943_v37  ;;  %v2090_v4 = vsel %vm955_vm4, %v2088_v47, %v2089_v11  ;;  %v1186_v43 = vmul.f32 %v5939_v26, %v6226_v41 }
  0x7c   : > { %v734_v51 = vrot.slane %v628_v24, 1  ;;  %v1632_v52 = vadd.f32 %v1534_v30, %v1388_v6  ;;  %v979_v55 = vrot.slane %v873_v29, 2  ;;  %v1430_v56 = vmul.f32 %v5942_v27, %v6226_v41 }
  0x7d   : > { %v1669_v44 = vmul.f32 %v5945_v28, %v6271_v10  ;;  %5386 = vmatmul.mubr.msk.f32.gmra.mrb[6].mxu0 %vm452_vm2, %v2187_v48  ;;  %v1291_v60 = vrot.slane %v1186_v43, 1  ;;  %v1742_v63 = vmul.f32 %v5957_v35, %v6297_v54  ;;  %v1986_v59 = vmul.f32 %v5960_v36, %v6297_v54 }
  0x7e   : > { %v735_v46 = vsel %vm710_vm3, %v732_v3, %v734_v51  ;;  %v1700_v2 = vadd.f32 %v1668_v19, %v1632_v52  ;;  %v980_v62 = vsel %vm955_vm4, %v977_v58, %v979_v55  ;;  %v1535_v13 = vrot.slane %v1430_v56, 2 }
  0x7f   : > { %v832_v45 = vadd.f32 %v735_v46, %v555_v32  ;;  %v1292_v14 = vsel %vm710_vm3, %v1289_v53, %v1291_v60  ;;  %v1847_v1 = vrot.slane %v1742_v63, 1  ;;  %v2091_v16 = vrot.slane %v1986_v59, 2 }
  0x80   : > { %v431_v20 = vmax.f32 %v399_v57, 0.0  ;;  %v1944_v5 = vadd.f32 %v1846_v49, %v1700_v2  ;;  %v1536_v31 = vsel %vm955_vm4, %v1533_v18, %v1535_v13  ;;  %v432_v25 = vmax.f32 %v400_v0, 0.0 }
  0x81   : > { %v1077_v3 = vadd.f32 %v980_v62, %v832_v45  ;;  %v1848_v61 = vsel %vm710_vm3, %v1845_v12, %v1847_v1  ;;  %v2092_v30 = vsel %vm955_vm4, %v2089_v11, %v2091_v16  ;;  %v556_v58 = vmul.f32 %v5923_v17, %v6190_v33 }
  0x82   : > { %465 = vst.msk [vmem:[#allocation2 + $0xa9] sm:$0xff] %vm452_vm2, %v431_v20  ;;  %v629_v53 = vmul.f32 %v5926_v21, %v6190_v33  ;;  %v2188_v19 = vadd.f32 %v2090_v4, %v1944_v5  ;;  %466 = vst.msk [vmem:[#allocation2 + $0xb1] sm:$0xff] %vm452_vm2, %v432_v25  ;;  %v630_v18 = vmul.f32 %v5926_v21, %v6201_v39 }
  0x83   : > { %v1145_v34 = vadd.f32 %v1113_v42, %v1077_v3  ;;  %v874_v38 = vmul.f32 %v5929_v22, %v6190_v33  ;;  %v875_v15 = vmul.f32 %v5929_v22, %v6201_v39  ;;  %v1114_v12 = vmul.f32 %v5932_v23, %v6268_v50 }
  0x84   : > { %v736_v40 = vrot.slane %v629_v53, 1  ;;  %v1187_v32 = vmul.f32 %v5939_v26, %v6268_v50  ;;  %5388 = vmatprep.mubr.msk.f32.mxu0 %vm452_vm2, %v2188_v19  ;;  %v737_v47 = vrot.slane %v630_v18, 1  ;;  %v1188_v24 = vmul.f32 %v5939_v26, %v6271_v10  ;;  %v401_v18 = vld [vmem:[%s5907_s16 + $0x70] sm:$0xff] }
  0x85   : > { %v1389_v37 = vadd.f32 %v1292_v14, %v1145_v34  ;;  %v981_v11 = vrot.slane %v874_v38, 2  ;;  %v982_v6 = vrot.slane %v875_v15, 2  ;;  %v1431_v49 = vmul.f32 %v5942_v27, %v6268_v50 }
  0x86   : > { %v1293_v33 = vrot.slane %v1187_v32, 1  ;;  %v6339_v29 = vmul.f32 %v5942_v27, %v6271_v10  ;;  %v738_v48 = vsel %vm710_vm3, %v736_v40, %v737_v47  ;;  %v1294_v4 = vrot.slane %v1188_v24, 1  ;;  %v402_v32 = vld [vmem:[%s5907_s16 + $0x78] sm:$0xff] }
  0x87   : > { %v1633_v42 = vadd.f32 %v1536_v31, %v1389_v37  ;;  %v557_v51 = vmul.f32 %v5923_v17, %v6201_v39  ;;  %v833_v43 = vadd.f32 %v738_v48, %v556_v58  ;;  %v983_v52 = vsel %vm955_vm4, %v981_v11, %v982_v6 }
  0x88   : > { %v1537_v55 = vrot.slane %v1431_v49, 2  ;;  %v1538_v56 = vrot.slane %v6339_v29, 2  ;;  %v1295_v60 = vsel %vm710_vm3, %v1293_v33, %v1294_v4  ;;  %v631_v63 = vmul.f32 %v5926_v21, %v6226_v41 }
  0x89   : > { %v1701_v57 = vadd.f32 %v1669_v44, %v1633_v42  ;;  %v6346_v46 = vld [vmem:[#allocation2 + $0xa8] sm:$0xff]  ;;  %v876_v59 = vmul.f32 %v5929_v22, %v6226_v41  ;;  %v6353_v0 = vld [vmem:[#allocation2 + $0xb0] sm:$0xff]  ;;  %v1078_v39 = vadd.f32 %v983_v52, %v833_v43  ;;  %v1115_v34 = vmul.f32 %v5932_v23, %v6271_v10  ;;  %v6374_v15 = vld [vmem:[#allocation2 + $0xb8] sm:$0x3] }
  0x8a   : > { %v1539_v2 = vsel %vm955_vm4, %v1537_v55, %v1538_v56  ;;  %v1670_v45 = vmul.f32 %v5945_v28, %v6346_v46  ;;  %v1743_v44 = vmul.f32 %v5957_v35, %v6346_v46  ;;  %v1744_v13 = vmul.f32 %v5957_v35, %v6353_v0 }
  0x8b   : > { %v1945_v62 = vadd.f32 %v1848_v61, %v1701_v57  ;;  %v1987_v14 = vmul.f32 %v5960_v36, %v6346_v46  ;;  %v1988_v41 = vmul.f32 %v5960_v36, %v6353_v0  ;;  %v1146_v1 = vadd.f32 %v1114_v12, %v1078_v39 }
  0x8c   : > { %v1849_v16 = vrot.slane %v1743_v44, 1  ;;  %v739_v20 = vrot.slane %v631_v63, 1  ;;  %v984_v5 = vrot.slane %v876_v59, 2  ;;  %v1850_v31 = vrot.slane %v1744_v13, 1 }
  0x8d   : > { %v2189_v3 = vadd.f32 %v2092_v30, %v1945_v62  ;;  %v2093_v25 = vrot.slane %v1987_v14, 2  ;;  %v2094_v58 = vrot.slane %v1988_v41, 2  ;;  %v1390_v61 = vadd.f32 %v1295_v60, %v1146_v1 }
  0x8e   : > { %v740_v53 = vsel %vm710_vm3, %v737_v47, %v739_v20  ;;  %v985_v19 = vsel %vm955_vm4, %v982_v6, %v984_v5  ;;  %v1851_v38 = vsel %vm710_vm3, %v1849_v16, %v1850_v31  ;;  %v1189_v12 = vmul.f32 %v5939_v26, %v6297_v54 }
  0x8f   : > { %5389 = vmatmul.mubr.msk.f32.gmra.mrb[8].mxu0 %vm452_vm2, %v2189_v3  ;;  %v2095_v40 = vsel %vm955_vm4, %v2093_v25, %v2094_v58  ;;  %v834_v30 = vadd.f32 %v740_v53, %v557_v51  ;;  %v1634_v37 = vadd.f32 %v1539_v2, %v1390_v61  ;;  %v1433_v47 = vmul.f32 %v5942_v27, %v6297_v54 }
  0x90   : > { %v1671_v11 = vmul.f32 %v5945_v28, %v6353_v0  ;;  %v1745_v24 = vmul.f32 %v5957_v35, %v6374_v15  ;;  %v1296_v33 = vrot.slane %v1189_v12, 1  ;;  %v1989_v49 = vmul.f32 %v5960_v36, %v6374_v15 }
  0x91   : > { %v1079_v6 = vadd.f32 %v985_v19, %v834_v30  ;;  %v433_v29 = vmax.f32 %v401_v18, 0.0  ;;  %v1702_v42 = vadd.f32 %v1670_v45, %v1634_v37  ;;  %v1540_v48 = vrot.slane %v1433_v47, 2 }
  0x92   : > { %v1852_v51 = vrot.slane %v1745_v24, 1  ;;  %v434_v43 = vmax.f32 %v402_v32, 0.0  ;;  %v1297_v55 = vsel %vm710_vm3, %v1294_v4, %v1296_v33  ;;  %v2096_v57 = vrot.slane %v1989_v49, 2 }
  0x93   : > { %v1147_v52 = vadd.f32 %v1115_v34, %v1079_v6  ;;  %467 = vst.msk [vmem:[#allocation2 + $0xc1] sm:$0xff] %vm452_vm2, %v433_v29  ;;  %v558_v60 = vmul.f32 %v5923_v17, %v6268_v50  ;;  %v1946_v63 = vadd.f32 %v1851_v38, %v1702_v42  ;;  %v1541_v59 = vsel %vm955_vm4, %v1538_v56, %v1540_v48 }
  0x94   : > { %v1853_v39 = vsel %vm710_vm3, %v1850_v31, %v1852_v51  ;;  %468 = vst.msk [vmem:[#allocation2 + $0xc9] sm:$0xff] %vm452_vm2, %v434_v43  ;;  %v632_v2 = vmul.f32 %v5926_v21, %v6268_v50  ;;  %v2097_v44 = vsel %vm955_vm4, %v2094_v58, %v2096_v57  ;;  %v633_v4 = vmul.f32 %v5926_v21, %v6271_v10 }
  0x95   : > { %v1391_v45 = vadd.f32 %v1297_v55, %v1147_v52  ;;  %v877_v62 = vmul.f32 %v5929_v22, %v6268_v50  ;;  %v2190_v13 = vadd.f32 %v2095_v40, %v1946_v63  ;;  %v878_v56 = vmul.f32 %v5929_v22, %v6271_v10 }
  0x96   : > { %v741_v14 = vrot.slane %v632_v2, 1  ;;  %v1116_v41 = vmul.f32 %v5932_v23, %v6346_v46  ;;  %v742_v16 = vrot.slane %v633_v4, 1  ;;  %v1190_v5 = vmul.f32 %v5939_v26, %v6346_v46 }
  0x97   : > { %v1635_v1 = vadd.f32 %v1541_v59, %v1391_v45  ;;  %v986_v20 = vrot.slane %v877_v62, 2  ;;  %5391 = vmatprep.mubr.msk.f32.mxu0 %vm452_vm2, %v2190_v13  ;;  %v987_v3 = vrot.slane %v878_v56, 2  ;;  %v1191_v50 = vmul.f32 %v5939_v26, %v6353_v0  ;;  %v403_v56 = vld [vmem:[%s5907_s16 + $0x80] sm:$0xff] }
  0x98   : > { %v1434_v31 = vmul.f32 %v5942_v27, %v6346_v46  ;;  %v1435_v25 = vmul.f32 %v5942_v27, %v6353_v0  ;;  %v743_v61 = vsel %vm710_vm3, %v741_v14, %v742_v16  ;;  %v1298_v53 = vrot.slane %v1190_v5, 1 }
  0x99   : > { %v1703_v58 = vadd.f32 %v1671_v11, %v1635_v1  ;;  %v559_v19 = vmul.f32 %v5923_v17, %v6271_v10  ;;  %v835_v18 = vadd.f32 %v743_v61, %v558_v60  ;;  %v988_v38 = vsel %vm955_vm4, %v986_v20, %v987_v3 }
  0x9a   : > { %v6417_v34 = vld [vmem:[#allocation2 + $0xc0] sm:$0xff]  ;;  %v1299_v40 = vrot.slane %v1191_v50, 1  ;;  %v1542_v30 = vrot.slane %v1434_v31, 2  ;;  %v1543_v37 = vrot.slane %v1435_v25, 2  ;;  %v634_v55 = vmul.f32 %v5926_v21, %v6297_v54  ;;  %v404_v50 = vld [vmem:[%s5907_s16 + $0x88] sm:$0xff] }
  0x9b   : > { %v1947_v12 = vadd.f32 %v1853_v39, %v1703_v58  ;;  %v6420_v32 = vld [vmem:[#allocation2 + $0xc8] sm:$0xff]  ;;  %v1672_v47 = vmul.f32 %v5945_v28, %v6417_v34  ;;  %v1746_v11 = vmul.f32 %v5957_v35, %v6417_v34  ;;  %v1080_v24 = vadd.f32 %v988_v38, %v835_v18  ;;  %v6447_v62 = vld [vmem:[#allocation2 + $0xd0] sm:$0x3] }
  0x9c   : > { %v1300_v10 = vsel %vm710_vm3, %v1298_v53, %v1299_v40  ;;  %v1747_v6 = vmul.f32 %v5957_v35, %v6420_v32  ;;  %v1990_v33 = vmul.f32 %v5960_v36, %v6417_v34  ;;  %v1544_v29 = vsel %vm955_vm4, %v1542_v30, %v1543_v37 }
  0x9d   : > { %v2191_v49 = vadd.f32 %v2097_v44, %v1947_v12  ;;  %v1854_v42 = vrot.slane %v1746_v11, 1  ;;  %v1991_v48 = vmul.f32 %v5960_v36, %v6420_v32  ;;  %v1148_v51 = vadd.f32 %v1116_v41, %v1080_v24 }
  0x9e   : > { %v1855_v43 = vrot.slane %v1747_v6, 1  ;;  %v2098_v52 = vrot.slane %v1990_v33, 2  ;;  %v879_v60 = vmul.f32 %v5929_v22, %v6297_v54  ;;  %v1117_v63 = vmul.f32 %v5932_v23, %v6353_v0 }
  0x9f   : > { %5392 = vmatmul.mubr.msk.f32.gmra.mrb[10].mxu0 %vm452_vm2, %v2191_v49  ;;  %v2099_v57 = vrot.slane %v1991_v48, 2  ;;  %v1192_v59 = vmul.f32 %v5939_v26, %v6374_v15  ;;  %v1392_v39 = vadd.f32 %v1300_v10, %v1148_v51  ;;  %v744_v45 = vrot.slane %v634_v55, 1 }
  0xa0   : > { %v1856_v2 = vsel %vm710_vm3, %v1854_v42, %v1855_v43  ;;  %v1436_v44 = vmul.f32 %v5942_v27, %v6374_v15  ;;  %v989_v13 = vrot.slane %v879_v60, 2  ;;  %v1673_v14 = vmul.f32 %v5945_v28, %v6420_v32 }
  0xa1   : > { %v2100_v4 = vsel %vm955_vm4, %v2098_v52, %v2099_v57  ;;  %v1301_v54 = vrot.slane %v1192_v59, 1  ;;  %v1636_v41 = vadd.f32 %v1544_v29, %v1392_v39  ;;  %v745_v1 = vsel %vm710_vm3, %v742_v16, %v744_v45 }
  0xa2   : > { %v1545_v20 = vrot.slane %v1436_v44, 2  ;;  %v1748_v5 = vmul.f32 %v5957_v35, %v6447_v62  ;;  %v836_v31 = vadd.f32 %v745_v1, %v559_v19  ;;  %v990_v25 = vsel %vm955_vm4, %v987_v3, %v989_v13 }
  0xa3   : > { %v1302_v58 = vsel %vm710_vm3, %v1299_v40, %v1301_v54  ;;  %v1992_v61 = vmul.f32 %v5960_v36, %v6447_v62  ;;  %v1704_v53 = vadd.f32 %v1672_v47, %v1636_v41  ;;  %v435_v30 = vmax.f32 %v403_v56, 0.0 }
  0xa4   : > { %v1546_v18 = vsel %vm955_vm4, %v1543_v37, %v1545_v20  ;;  %v1857_v38 = vrot.slane %v1748_v5, 1  ;;  %v1081_v12 = vadd.f32 %v990_v25, %v836_v31  ;;  %v436_v11 = vmax.f32 %v404_v50, 0.0 }
  0xa5   : > { %v2101_v16 = vrot.slane %v1992_v61, 2  ;;  %v560_v24 = vmul.f32 %v5923_v17, %v6346_v46  ;;  %v1948_v10 = vadd.f32 %v1856_v2, %v1704_v53  ;;  %469 = vst.msk [vmem:[#allocation2 + $0xd9] sm:$0xff] %vm452_vm2, %v435_v30  ;;  %v635_v3 = vmul.f32 %v5926_v21, %v6346_v46 }
  0xa6   : > { %v1858_v19 = vsel %vm710_vm3, %v1855_v43, %v1857_v38  ;;  %v636_v40 = vmul.f32 %v5926_v21, %v6353_v0  ;;  %v1149_v37 = vadd.f32 %v1117_v63, %v1081_v12  ;;  %470 = vst.msk [vmem:[#allocation2 + $0xe1] sm:$0xff] %vm452_vm2, %v436_v11  ;;  %v880_v6 = vmul.f32 %v5929_v22, %v6346_v46 }
  0xa7   : > { %v2102_v47 = vsel %vm955_vm4, %v2099_v57, %v2101_v16  ;;  %v881_v33 = vmul.f32 %v5929_v22, %v6353_v0  ;;  %v2192_v49 = vadd.f32 %v2100_v4, %v1948_v10  ;;  %v746_v29 = vrot.slane %v635_v3, 1 }
  0xa8   : > { %v747_v42 = vrot.slane %v636_v40, 1  ;;  %v1118_v48 = vmul.f32 %v5932_v23, %v6417_v34  ;;  %v1393_v51 = vadd.f32 %v1302_v58, %v1149_v37  ;;  %v991_v43 = vrot.slane %v880_v6, 2 }
  0xa9   : > { %v992_v52 = vrot.slane %v881_v33, 2  ;;  %v1193_v55 = vmul.f32 %v5939_v26, %v6417_v34  ;;  %5394 = vmatprep.mubr.msk.f32.mxu0 %vm452_vm2, %v2192_v49  ;;  %v1194_v46 = vmul.f32 %v5939_v26, %v6420_v32  ;;  %v1437_v60 = vmul.f32 %v5942_v27, %v6417_v34 }
  0xaa   : > { %v748_v57 = vsel %vm710_vm3, %v746_v29, %v747_v42  ;;  %v1438_v63 = vmul.f32 %v5942_v27, %v6420_v32  ;;  %v1637_v59 = vadd.f32 %v1546_v18, %v1393_v51  ;;  %v561_v54 = vmul.f32 %v5923_v17, %v6353_v0  ;;  %v406_v51 = vld [vmem:[%s5907_s16 + $0x98] sm:$0xff] }
  0xab   : > { %v837_v39 = vadd.f32 %v748_v57, %v560_v24  ;;  %v993_v2 = vsel %vm955_vm4, %v991_v43, %v992_v52  ;;  %v1303_v45 = vrot.slane %v1193_v55, 1  ;;  %v1304_v44 = vrot.slane %v1194_v46, 1 }
  0xac   : > { %v1547_v4 = vrot.slane %v1437_v60, 2  ;;  %v1548_v13 = vrot.slane %v1438_v63, 2  ;;  %v1705_v56 = vadd.f32 %v1673_v14, %v1637_v59  ;;  %v6490_v41 = vld [vmem:[#allocation2 + $0xd8] sm:$0xff]  ;;  %v637_v20 = vmul.f32 %v5926_v21, %v6374_v15 }
  0xad   : > { %v1082_v1 = vadd.f32 %v993_v2, %v837_v39  ;;  %v882_v5 = vmul.f32 %v5929_v22, %v6374_v15  ;;  %v6496_v50 = vld [vmem:[#allocation2 + $0xe0] sm:$0xff]  ;;  %v1305_v31 = vsel %vm710_vm3, %v1303_v45, %v1304_v44  ;;  %v1674_v58 = vmul.f32 %v5945_v28, %v6490_v41  ;;  %v6516_v49 = vld [vmem:[#allocation2 + $0xe8] sm:$0x3] }
  0xae   : > { %v1549_v25 = vsel %vm955_vm4, %v1547_v4, %v1548_v13  ;;  %v1749_v0 = vmul.f32 %v5957_v35, %v6490_v41  ;;  %v1949_v14 = vadd.f32 %v1858_v19, %v1705_v56  ;;  %v1750_v53 = vmul.f32 %v5957_v35, %v6496_v50 }
  0xaf   : > { %v1150_v61 = vadd.f32 %v1118_v48, %v1082_v1  ;;  %v1993_v15 = vmul.f32 %v5960_v36, %v6490_v41  ;;  %v1994_v38 = vmul.f32 %v5960_v36, %v6496_v50  ;;  %v749_v30 = vrot.slane %v637_v20, 1  ;;  %v405_v48 = vld [vmem:[%s5907_s16 + $0x90] sm:$0xff] }
  0xb0   : > { %v1859_v18 = vrot.slane %v1749_v0, 1  ;;  %v994_v12 = vrot.slane %v882_v5, 2  ;;  %v2193_v16 = vadd.f32 %v2102_v47, %v1949_v14  ;;  %v1860_v24 = vrot.slane %v1750_v53, 1 }
  0xb1   : > { %v1394_v11 = vadd.f32 %v1305_v31, %v1150_v61  ;;  %v2103_v10 = vrot.slane %v1993_v15, 2  ;;  %v2104_v19 = vrot.slane %v1994_v38, 2  ;;  %v750_v3 = vsel %vm710_vm3, %v747_v42, %v749_v30 }
  0xb2   : > { %v995_v40 = vsel %vm955_vm4, %v992_v52, %v994_v12  ;;  %v1119_v37 = vmul.f32 %v5932_v23, %v6420_v32  ;;  %5395 = vmatmul.mubr.msk.f32.gmra.mrb[12].mxu0 %vm452_vm2, %v2193_v16  ;;  %v1861_v33 = vsel %vm710_vm3, %v1859_v18, %v1860_v24  ;;  %v838_v29 = vadd.f32 %v750_v3, %v561_v54 }
  0xb3   : > { %v1638_v6 = vadd.f32 %v1549_v25, %v1394_v11  ;;  %v1195_v47 = vmul.f32 %v5939_v26, %v6447_v62  ;;  %v2105_v42 = vsel %vm955_vm4, %v2103_v10, %v2104_v19  ;;  %v1439_v43 = vmul.f32 %v5942_v27, %v6447_v62 }
  0xb4   : > { %v1675_v52 = vmul.f32 %v5945_v28, %v6496_v50  ;;  %v1751_v55 = vmul.f32 %v5957_v35, %v6516_v49  ;;  %v1083_v46 = vadd.f32 %v995_v40, %v838_v29  ;;  %v1995_v63 = vmul.f32 %v5960_v36, %v6516_v49 }
  0xb5   : > { %v1706_v57 = vadd.f32 %v1674_v58, %v1638_v6  ;;  %v1306_v60 = vrot.slane %v1195_v47, 1  ;;  %v1550_v59 = vrot.slane %v1439_v43, 2  ;;  %v437_v2 = vmax.f32 %v405_v48, 0.0 }
  0xb6   : > { %v1862_v39 = vrot.slane %v1751_v55, 1  ;;  %v438_v45 = vmax.f32 %v406_v51, 0.0  ;;  %v1151_v54 = vadd.f32 %v1119_v37, %v1083_v46  ;;  %v2106_v1 = vrot.slane %v1995_v63, 2 }
  0xb7   : > { %v1950_v4 = vadd.f32 %v1861_v33, %v1706_v57  ;;  %v1307_v56 = vsel %vm710_vm3, %v1304_v44, %v1306_v60  ;;  %v1551_v20 = vsel %vm955_vm4, %v1548_v13, %v1550_v59  ;;  %471 = vst.msk [vmem:[#allocation2 + $0xf1] sm:$0xff] %vm452_vm2, %v437_v2  ;;  %v562_v31 = vmul.f32 %v5923_v17, %v6417_v34 }
  0xb8   : > { %v1863_v5 = vsel %vm710_vm3, %v1860_v24, %v1862_v39  ;;  %472 = vst.msk [vmem:[#allocation2 + $0xf9] sm:$0xff] %vm452_vm2, %v438_v45  ;;  %v638_v25 = vmul.f32 %v5926_v21, %v6417_v34  ;;  %v1395_v0 = vadd.f32 %v1307_v56, %v1151_v54  ;;  %v2107_v14 = vsel %vm955_vm4, %v2104_v19, %v2106_v1 }
  0xb9   : > { %v2194_v58 = vadd.f32 %v2105_v42, %v1950_v4  ;;  %v639_v44 = vmul.f32 %v5926_v21, %v6420_v32  ;;  %v883_v61 = vmul.f32 %v5929_v22, %v6417_v34  ;;  %v884_v53 = vmul.f32 %v5929_v22, %v6420_v32 }
  0xba   : > { %v751_v13 = vrot.slane %v638_v25, 1  ;;  %v1120_v15 = vmul.f32 %v5932_v23, %v6490_v41  ;;  %v1639_v18 = vadd.f32 %v1551_v20, %v1395_v0  ;;  %v1196_v30 = vmul.f32 %v5939_v26, %v6490_v41 }
  0xbb   : > { %5397 = vmatprep.mubr.msk.f32.mxu0 %vm452_vm2, %v2194_v58  ;;  %v752_v38 = vrot.slane %v639_v44, 1  ;;  %v1197_v12 = vmul.f32 %v5939_v26, %v6496_v50  ;;  %v996_v16 = vrot.slane %v883_v61, 2  ;;  %v997_v11 = vrot.slane %v884_v53, 2  ;;  %v407_v61 = vld [vmem:[%s5907_s16 + $0xa0] sm:$0xff]  ;;  %v408_v53 = vld [vmem:[%s5907_s16 + $0xa8] sm:$0xff] }
  0xbc   : > { %v1440_v34 = vmul.f32 %v5942_v27, %v6490_v41  ;;  %v1441_v24 = vmul.f32 %v5942_v27, %v6496_v50  ;;  %v1707_v10 = vadd.f32 %v1675_v52, %v1639_v18  ;;  %v1308_v3 = vrot.slane %v1196_v30, 1 }
  0xbd   : > { %v753_v19 = vsel %vm710_vm3, %v751_v13, %v752_v38  ;;  %v1309_v40 = vrot.slane %v1197_v12, 1  ;;  %v998_v6 = vsel %vm955_vm4, %v996_v16, %v997_v11  ;;  %v563_v42 = vmul.f32 %v5923_v17, %v6420_v32 }
  0xbe   : > { %v839_v37 = vadd.f32 %v753_v19, %v562_v31  ;;  %v1552_v33 = vrot.slane %v1440_v34, 2  ;;  %v1553_v29 = vrot.slane %v1441_v24, 2  ;;  %v1951_v47 = vadd.f32 %v1863_v5, %v1707_v10  ;;  %v6560_v48 = vld [vmem:[#allocation2 + $0xf0] sm:$0xff] }
  0xbf   : > { %v1310_v51 = vsel %vm710_vm3, %v1308_v3, %v1309_v40  ;;  %v640_v43 = vmul.f32 %v5926_v21, %v6447_v62  ;;  %v6567_v52 = vld [vmem:[#allocation2 + $0xf8] sm:$0xff]  ;;  %v1676_v46 = vmul.f32 %v5945_v28, %v6560_v48  ;;  %v1752_v60 = vmul.f32 %v5957_v35, %v6560_v48  ;;  %v6594_v18 = vld [vmem:[#allocation2 + $0x100] sm:$0x3] }
  0xc0   : > { %v1084_v55 = vadd.f32 %v998_v6, %v839_v37  ;;  %v1554_v57 = vsel %vm955_vm4, %v1552_v33, %v1553_v29  ;;  %v2195_v63 = vadd.f32 %v2107_v14, %v1951_v47  ;;  %v1753_v59 = vmul.f32 %v5957_v35, %v6567_v52 }
  0xc1   : > { %v1996_v32 = vmul.f32 %v5960_v36, %v6560_v48  ;;  %v1997_v39 = vmul.f32 %v5960_v36, %v6567_v52  ;;  %v1864_v45 = vrot.slane %v1752_v60, 1  ;;  %v754_v4 = vrot.slane %v640_v43, 1 }
  0xc2   : > { %v1152_v2 = vadd.f32 %v1120_v15, %v1084_v55  ;;  %v885_v54 = vmul.f32 %v5929_v22, %v6447_v62  ;;  %5398 = vmatmul.mubr.msk.f32.gmra.mrb[14].mxu0 %vm452_vm2, %v2195_v63  ;;  %v1865_v56 = vrot.slane %v1753_v59, 1  ;;  %v1121_v5 = vmul.f32 %v5932_v23, %v6496_v50 }
  0xc3   : > { %v2108_v1 = vrot.slane %v1996_v32, 2  ;;  %v2109_v20 = vrot.slane %v1997_v39, 2  ;;  %v755_v25 = vsel %vm710_vm3, %v752_v38, %v754_v4  ;;  %v1198_v0 = vmul.f32 %v5939_v26, %v6516_v49 }
  0xc4   : > { %v1396_v31 = vadd.f32 %v1310_v51, %v1152_v2  ;;  %v999_v58 = vrot.slane %v885_v54, 2  ;;  %v1866_v14 = vsel %vm710_vm3, %v1864_v45, %v1865_v56  ;;  %v840_v62 = vadd.f32 %v755_v25, %v563_v42 }
  0xc5   : > { %v2110_v44 = vsel %vm955_vm4, %v2108_v1, %v2109_v20  ;;  %v1442_v13 = vmul.f32 %v5942_v27, %v6516_v49  ;;  %v1311_v38 = vrot.slane %v1198_v0, 1  ;;  %v1677_v12 = vmul.f32 %v5945_v28, %v6567_v52 }
  0xc6   : > { %v1640_v15 = vadd.f32 %v1554_v57, %v1396_v31  ;;  %v1000_v30 = vsel %vm955_vm4, %v997_v11, %v999_v58  ;;  %v1754_v24 = vmul.f32 %v5957_v35, %v6594_v18  ;;  %v1998_v10 = vmul.f32 %v5960_v36, %v6594_v18 }
  0xc7   : > { %v1085_v16 = vadd.f32 %v1000_v30, %v840_v62  ;;  %v1555_v34 = vrot.slane %v1442_v13, 2  ;;  %v1312_v3 = vsel %vm710_vm3, %v1309_v40, %v1311_v38  ;;  %v439_v37 = vmax.f32 %v407_v61, 0.0 }
  0xc8   : > { %v1708_v19 = vadd.f32 %v1676_v46, %v1640_v15  ;;  %v440_v6 = vmax.f32 %v408_v53, 0.0  ;;  %v1867_v47 = vrot.slane %v1754_v24, 1  ;;  %v2111_v51 = vrot.slane %v1998_v10, 2 }
  0xc9   : > { %v1153_v33 = vadd.f32 %v1121_v5, %v1085_v16  ;;  %v1556_v11 = vsel %vm955_vm4, %v1553_v29, %v1555_v34  ;;  %473 = vst.msk [vmem:[#allocation2 + $0x109] sm:$0xff] %vm452_vm2, %v439_v37  ;;  %v564_v43 = vmul.f32 %v5923_v17, %v6490_v41  ;;  %v641_v55 = vmul.f32 %v5926_v21, %v6490_v41 }
  0xca   : > { %v1952_v42 = vadd.f32 %v1866_v14, %v1708_v19  ;;  %474 = vst.msk [vmem:[#allocation2 + $0x111] sm:$0xff] %vm452_vm2, %v440_v6  ;;  %v642_v40 = vmul.f32 %v5926_v21, %v6496_v50  ;;  %v1868_v46 = vsel %vm710_vm3, %v1865_v56, %v1867_v47  ;;  %v2112_v29 = vsel %vm955_vm4, %v2109_v20, %v2111_v51 }
  0xcb   : > { %v1397_v57 = vadd.f32 %v1312_v3, %v1153_v33  ;;  %v886_v60 = vmul.f32 %v5929_v22, %v6490_v41  ;;  %v756_v59 = vrot.slane %v641_v55, 1  ;;  %v887_v39 = vmul.f32 %v5929_v22, %v6496_v50 }
  0xcc   : > { %v2196_v63 = vadd.f32 %v2110_v44, %v1952_v42  ;;  %v757_v32 = vrot.slane %v642_v40, 1  ;;  %v1122_v4 = vmul.f32 %v5932_v23, %v6560_v48  ;;  %v1199_v54 = vmul.f32 %v5939_v26, %v6560_v48 }
  0xcd   : > { %v1641_v2 = vadd.f32 %v1556_v11, %v1397_v57  ;;  %v1001_v45 = vrot.slane %v886_v60, 2  ;;  %v1002_v1 = vrot.slane %v887_v39, 2  ;;  %v1200_v41 = vmul.f32 %v5939_v26, %v6567_v52  ;;  %v409_v39 = vld [vmem:[%s5907_s16 + $0xb0] sm:$0xff] }
  0xce   : > { %5400 = vmatprep.mubr.msk.f32.mxu0 %vm452_vm2, %v2196_v63  ;;  %v758_v56 = vsel %vm710_vm3, %v756_v59, %v757_v32  ;;  %v1443_v20 = vmul.f32 %v5942_v27, %v6560_v48  ;;  %v1313_v25 = vrot.slane %v1199_v54, 1  ;;  %v1444_v58 = vmul.f32 %v5942_v27, %v6567_v52  ;;  %v410_v54 = vld [vmem:[%s5907_s16 + $0xb8] sm:$0xff] }
  0xcf   : > { %v1709_v5 = vadd.f32 %v1677_v12, %v1641_v2  ;;  %v841_v31 = vadd.f32 %v758_v56, %v564_v43  ;;  %v1003_v0 = vsel %vm955_vm4, %v1001_v45, %v1002_v1  ;;  %v1314_v14 = vrot.slane %v1200_v41, 1 }
  0xd0   : > { %v1557_v44 = vrot.slane %v1443_v20, 2  ;;  %v565_v62 = vmul.f32 %v5923_v17, %v6496_v50  ;;  %v6634_v61 = vld [vmem:[#allocation2 + $0x108] sm:$0xff]  ;;  %v1558_v30 = vrot.slane %v1444_v58, 2  ;;  %v643_v38 = vmul.f32 %v5926_v21, %v6516_v49 }
  0xd1   : > { %v1953_v13 = vadd.f32 %v1868_v46, %v1709_v5  ;;  %v6636_v53 = vld [vmem:[#allocation2 + $0x110] sm:$0xff]  ;;  %v1086_v15 = vadd.f32 %v1003_v0, %v841_v31  ;;  %v1315_v12 = vsel %vm710_vm3, %v1313_v25, %v1314_v14  ;;  %v1678_v16 = vmul.f32 %v5945_v28, %v6634_v61  ;;  %v6661_v60 = vld [vmem:[#allocation2 + $0x118] sm:$0x3] }
  0xd2   : > { %v1755_v34 = vmul.f32 %v5957_v35, %v6634_v61  ;;  %v1756_v50 = vmul.f32 %v5957_v35, %v6636_v53  ;;  %v1559_v19 = vsel %vm955_vm4, %v1557_v44, %v1558_v30  ;;  %v1999_v3 = vmul.f32 %v5960_v36, %v6634_v61 }
  0xd3   : > { %v2197_v24 = vadd.f32 %v2112_v29, %v1953_v13  ;;  %v1154_v10 = vadd.f32 %v1122_v4, %v1086_v15  ;;  %v2000_v33 = vmul.f32 %v5960_v36, %v6636_v53  ;;  %v759_v11 = vrot.slane %v643_v38, 1 }
  0xd4   : > { %v1869_v37 = vrot.slane %v1755_v34, 1  ;;  %v1870_v6 = vrot.slane %v1756_v50, 1  ;;  %v2113_v51 = vrot.slane %v1999_v3, 2  ;;  %v888_v42 = vmul.f32 %v5929_v22, %v6516_v49 }
  0xd5   : > { %5401 = vmatmul.mubr.msk.f32.gmra.mrb[16].mxu0 %vm452_vm2, %v2197_v24  ;;  %v1398_v47 = vadd.f32 %v1315_v12, %v1154_v10  ;;  %v1123_v43 = vmul.f32 %v5932_v23, %v6567_v52  ;;  %v2114_v40 = vrot.slane %v2000_v33, 2  ;;  %v760_v57 = vsel %vm710_vm3, %v757_v32, %v759_v11 }
  0xd6   : > { %v1871_v55 = vsel %vm710_vm3, %v1869_v37, %v1870_v6  ;;  %v1201_v46 = vmul.f32 %v5939_v26, %v6594_v18  ;;  %v842_v63 = vadd.f32 %v760_v57, %v565_v62  ;;  %v1004_v59 = vrot.slane %v888_v42, 2 }
  0xd7   : > { %v1642_v29 = vadd.f32 %v1559_v19, %v1398_v47  ;;  %v1445_v49 = vmul.f32 %v5942_v27, %v6594_v18  ;;  %v2115_v2 = vsel %vm955_vm4, %v2113_v51, %v2114_v40  ;;  %v1679_v4 = vmul.f32 %v5945_v28, %v6636_v53 }
  0xd8   : > { %v1316_v45 = vrot.slane %v1201_v46, 1  ;;  %v1757_v32 = vmul.f32 %v5957_v35, %v6661_v60  ;;  %v1005_v41 = vsel %vm955_vm4, %v1002_v1, %v1004_v59  ;;  %v2001_v5 = vmul.f32 %v5960_v36, %v6661_v60 }
  0xd9   : > { %v1710_v56 = vadd.f32 %v1678_v16, %v1642_v29  ;;  %v1560_v20 = vrot.slane %v1445_v49, 2  ;;  %v1087_v31 = vadd.f32 %v1005_v41, %v842_v63  ;;  %v441_v0 = vmax.f32 %v409_v39, 0.0 }
  0xda   : > { %v1317_v25 = vsel %vm710_vm3, %v1314_v14, %v1316_v45  ;;  %v1872_v58 = vrot.slane %v1757_v32, 1  ;;  %v2116_v13 = vrot.slane %v2001_v5, 2  ;;  %v442_v15 = vmax.f32 %v410_v54, 0.0 }
  0xdb   : > { %v1954_v44 = vadd.f32 %v1871_v55, %v1710_v56  ;;  %v1561_v62 = vsel %vm955_vm4, %v1558_v30, %v1560_v20  ;;  %v1155_v38 = vadd.f32 %v1123_v43, %v1087_v31  ;;  %475 = vst.msk [vmem:[#allocation2 + $0x121] sm:$0xff] %vm452_vm2, %v441_v0  ;;  %v566_v1 = vmul.f32 %v5923_v17, %v6560_v48 }
  0xdc   : > { %v1873_v12 = vsel %vm710_vm3, %v1870_v6, %v1872_v58  ;;  %v644_v16 = vmul.f32 %v5926_v21, %v6560_v48  ;;  %v2117_v14 = vsel %vm955_vm4, %v2114_v40, %v2116_v13  ;;  %476 = vst.msk [vmem:[#allocation2 + $0x129] sm:$0xff] %vm452_vm2, %v442_v15  ;;  %v645_v30 = vmul.f32 %v5926_v21, %v6567_v52 }
  0xdd   : > { %v2198_v34 = vadd.f32 %v2115_v2, %v1954_v44  ;;  %v889_v50 = vmul.f32 %v5929_v22, %v6560_v48  ;;  %v1399_v24 = vadd.f32 %v1317_v25, %v1155_v38  ;;  %v890_v19 = vmul.f32 %v5929_v22, %v6567_v52 }
  0xde   : > { %v761_v10 = vrot.slane %v644_v16, 1  ;;  %v1124_v3 = vmul.f32 %v5932_v23, %v6634_v61  ;;  %v762_v37 = vrot.slane %v645_v30, 1  ;;  %v1202_v33 = vmul.f32 %v5939_v26, %v6634_v61 }
  0xdf   : > { %5403 = vmatprep.mubr.msk.f32.mxu0 %vm452_vm2, %v2198_v34  ;;  %v1006_v6 = vrot.slane %v889_v50, 2  ;;  %v1203_v11 = vmul.f32 %v5939_v26, %v6636_v53  ;;  %v1643_v47 = vadd.f32 %v1561_v62, %v1399_v24  ;;  %v1007_v48 = vrot.slane %v890_v19, 2  ;;  %v412_v19 = vld [vmem:[%s5907_s16 + $0xc8] sm:$0xff] }
  0xe0   : > { %v1446_v51 = vmul.f32 %v5942_v27, %v6634_v61  ;;  %v6702_v42 = vmul.f32 %v5942_v27, %v6636_v53  ;;  %v763_v43 = vsel %vm710_vm3, %v761_v10, %v762_v37  ;;  %v1318_v55 = vrot.slane %v1202_v33, 1 }
  0xe1   : > { %v1319_v40 = vrot.slane %v1203_v11, 1  ;;  %v567_v57 = vmul.f32 %v5923_v17, %v6567_v52  ;;  %v1711_v46 = vadd.f32 %v1679_v4, %v1643_v47  ;;  %v843_v29 = vadd.f32 %v763_v43, %v566_v1 }
  0xe2   : > { %v1008_v63 = vsel %vm955_vm4, %v1006_v6, %v1007_v48  ;;  %v1562_v59 = vrot.slane %v1446_v51, 2  ;;  %v6708_v49 = vld [vmem:[#allocation2 + $0x120] sm:$0xff]  ;;  %v1563_v2 = vrot.slane %v6702_v42, 2  ;;  %v646_v45 = vmul.f32 %v5926_v21, %v6594_v18 }
  0xe3   : > { %v1320_v39 = vsel %vm710_vm3, %v1318_v55, %v1319_v40  ;;  %v891_v32 = vmul.f32 %v5929_v22, %v6594_v18  ;;  %v1955_v54 = vadd.f32 %v1873_v12, %v1711_v46  ;;  %v6716_v56 = vld [vmem:[#allocation2 + $0x128] sm:$0xff]  ;;  %v1088_v52 = vadd.f32 %v1008_v63, %v843_v29  ;;  %v6740_v6 = vld [vmem:[#allocation2 + $0x130] sm:$0x3] }
  0xe4   : > { %v1680_v4 = vmul.f32 %v5945_v28, %v6708_v49  ;;  %v1758_v41 = vmul.f32 %v5957_v35, %v6708_v49  ;;  %v1564_v20 = vsel %vm955_vm4, %v1562_v59, %v1563_v2  ;;  %v1759_v5 = vmul.f32 %v5957_v35, %v6716_v56 }
  0xe5   : > { %v2002_v31 = vmul.f32 %v5960_v36, %v6708_v49  ;;  %v2003_v18 = vmul.f32 %v5960_v36, %v6716_v56  ;;  %v2199_v25 = vadd.f32 %v2117_v14, %v1955_v54  ;;  %v1156_v58 = vadd.f32 %v1124_v3, %v1088_v52  ;;  %v411_v14 = vld [vmem:[%s5907_s16 + $0xc0] sm:$0xff] }
  0xe6   : > { %v1874_v0 = vrot.slane %v1758_v41, 1  ;;  %v764_v44 = vrot.slane %v646_v45, 1  ;;  %v1875_v62 = vrot.slane %v1759_v5, 1  ;;  %v1009_v38 = vrot.slane %v891_v32, 2 }
  0xe7   : > { %v2118_v13 = vrot.slane %v2002_v31, 2  ;;  %v2119_v15 = vrot.slane %v2003_v18, 2  ;;  %5404 = vmatmul.mubr.msk.f32.gmra.mrb[18].mxu0 %vm452_vm2, %v2199_v25  ;;  %v1400_v12 = vadd.f32 %v1320_v39, %v1156_v58  ;;  %v1125_v16 = vmul.f32 %v5932_v23, %v6636_v53 }
  0xe8   : > { %v765_v1 = vsel %vm710_vm3, %v762_v37, %v764_v44  ;;  %v1204_v34 = vmul.f32 %v5939_v26, %v6661_v60  ;;  %v1876_v30 = vsel %vm710_vm3, %v1874_v0, %v1875_v62  ;;  %v1010_v10 = vsel %vm955_vm4, %v1007_v48, %v1009_v38 }
  0xe9   : > { %v2120_v50 = vsel %vm955_vm4, %v2118_v13, %v2119_v15  ;;  %v844_v24 = vadd.f32 %v765_v1, %v567_v57  ;;  %v1644_v3 = vadd.f32 %v1564_v20, %v1400_v12  ;;  %v1448_v37 = vmul.f32 %v5942_v27, %v6661_v60 }
  0xea   : > { %v1321_v33 = vrot.slane %v1204_v34, 1  ;;  %v1681_v11 = vmul.f32 %v5945_v28, %v6716_v56  ;;  %v1760_v51 = vmul.f32 %v5957_v35, %v6740_v6  ;;  %v2004_v42 = vmul.f32 %v5960_v36, %v6740_v6 }
  0xeb   : > { %v1089_v47 = vadd.f32 %v1010_v10, %v844_v24  ;;  %v443_v43 = vmax.f32 %v411_v14, 0.0  ;;  %v1712_v48 = vadd.f32 %v1680_v4, %v1644_v3  ;;  %v1565_v57 = vrot.slane %v1448_v37, 2 }
  0xec   : > { %v1322_v55 = vsel %vm710_vm3, %v1319_v40, %v1321_v33  ;;  %v444_v46 = vmax.f32 %v412_v19, 0.0  ;;  %v1877_v63 = vrot.slane %v1760_v51, 1  ;;  %v2121_v59 = vrot.slane %v2004_v42, 2 }
  0xed   : > { %v1157_v29 = vadd.f32 %v1125_v16, %v1089_v47  ;;  %477 = vst.msk [vmem:[#allocation2 + $0x139] sm:$0xff] %vm452_vm2, %v443_v43  ;;  %v568_v39 = vmul.f32 %v5923_v17, %v6634_v61  ;;  %v1956_v45 = vadd.f32 %v1876_v30, %v1712_v48  ;;  %v1566_v32 = vsel %vm955_vm4, %v1563_v2, %v1565_v57 }
  0xee   : > { %478 = vst.msk [vmem:[#allocation2 + $0x141] sm:$0xff] %vm452_vm2, %v444_v46  ;;  %v647_v54 = vmul.f32 %v5926_v21, %v6634_v61  ;;  %v648_v40 = vmul.f32 %v5926_v21, %v6636_v53  ;;  %v1878_v4 = vsel %vm710_vm3, %v1875_v62, %v1877_v63  ;;  %v2122_v41 = vsel %vm955_vm4, %v2119_v15, %v2121_v59 }
  0xef   : > { %v1401_v52 = vadd.f32 %v1322_v55, %v1157_v29  ;;  %v892_v20 = vmul.f32 %v5929_v22, %v6634_v61  ;;  %v2200_v5 = vadd.f32 %v2120_v50, %v1956_v45  ;;  %v893_v2 = vmul.f32 %v5929_v22, %v6636_v53 }
  0xf0   : > { %v766_v31 = vrot.slane %v647_v54, 1  ;;  %v767_v18 = vrot.slane %v648_v40, 1  ;;  %v1126_v0 = vmul.f32 %v5932_v23, %v6708_v49  ;;  %v1205_v44 = vmul.f32 %v5939_v26, %v6708_v49 }
  0xf1   : > { %v1645_v25 = vadd.f32 %v1566_v32, %v1401_v52  ;;  %v1011_v58 = vrot.slane %v892_v20, 2  ;;  %5406 = vmatprep.mubr.msk.f32.mxu0 %vm452_vm2, %v2200_v5  ;;  %v1012_v13 = vrot.slane %v893_v2, 2  ;;  %v1206_v61 = vmul.f32 %v5939_v26, %v6716_v56  ;;  %v413_v2 = vld [vmem:[%s5907_s16 + $0xd0] sm:$0xff] }
  0xf2   : > { %v768_v62 = vsel %vm710_vm3, %v766_v31, %v767_v18  ;;  %v1449_v15 = vmul.f32 %v5942_v27, %v6708_v49  ;;  %v1323_v1 = vrot.slane %v1205_v44, 1  ;;  %v1450_v16 = vmul.f32 %v5942_v27, %v6716_v56 }
  0xf3   : > { %v1713_v38 = vadd.f32 %v1681_v11, %v1645_v25  ;;  %v845_v12 = vadd.f32 %v768_v62, %v568_v39  ;;  %v1013_v14 = vsel %vm955_vm4, %v1011_v58, %v1012_v13  ;;  %v1324_v30 = vrot.slane %v1206_v61, 1  ;;  %v414_v62 = vld [vmem:[%s5907_s16 + $0xd8] sm:$0xff] }
  0xf4   : > { %v6778_v34 = vld [vmem:[#allocation2 + $0x138] sm:$0xff]  ;;  %v1567_v50 = vrot.slane %v1449_v15, 2  ;;  %v569_v24 = vmul.f32 %v5923_v17, %v6636_v53  ;;  %v1568_v33 = vrot.slane %v1450_v16, 2  ;;  %v649_v63 = vmul.f32 %v5926_v21, %v6661_v60 }
  0xf5   : > { %v1957_v10 = vadd.f32 %v1878_v4, %v1713_v38  ;;  %v6783_v19 = vld [vmem:[#allocation2 + $0x140] sm:$0xff]  ;;  %v1090_v3 = vadd.f32 %v1013_v14, %v845_v12  ;;  %v1682_v37 = vmul.f32 %v5945_v28, %v6778_v34  ;;  %v1325_v11 = vsel %vm710_vm3, %v1323_v1, %v1324_v30  ;;  %v6810_v5 = vld [vmem:[#allocation2 + $0x148] sm:$0x3] }
  0xf6   : > { %v1761_v47 = vmul.f32 %v5957_v35, %v6778_v34  ;;  %v1762_v51 = vmul.f32 %v5957_v35, %v6783_v19  ;;  %v2005_v42 = vmul.f32 %v5960_v36, %v6778_v34  ;;  %v1569_v48 = vsel %vm955_vm4, %v1567_v50, %v1568_v33 }
  0xf7   : > { %v2201_v53 = vadd.f32 %v2122_v41, %v1957_v10  ;;  %v1158_v43 = vadd.f32 %v1126_v0, %v1090_v3  ;;  %v2006_v55 = vmul.f32 %v5960_v36, %v6783_v19  ;;  %v894_v45 = vmul.f32 %v5929_v22, %v6661_v60 }
  0xf8   : > { %v1879_v57 = vrot.slane %v1761_v47, 1  ;;  %v1880_v46 = vrot.slane %v1762_v51, 1  ;;  %v2123_v29 = vrot.slane %v2005_v42, 2  ;;  %v1127_v32 = vmul.f32 %v5932_v23, %v6716_v56 }
  0xf9   : > { %5407 = vmatmul.mubr.msk.f32.gmra.mrb[20].mxu0 %vm452_vm2, %v2201_v53  ;;  %v1402_v59 = vadd.f32 %v1325_v11, %v1158_v43  ;;  %v2124_v39 = vrot.slane %v2006_v55, 2  ;;  %v769_v40 = vrot.slane %v649_v63, 1  ;;  %v1207_v52 = vmul.f32 %v5939_v26, %v6740_v6 }
  0xfa   : > { %v1881_v54 = vsel %vm710_vm3, %v1879_v57, %v1880_v46  ;;  %v1451_v4 = vmul.f32 %v5942_v27, %v6740_v6  ;;  %v1014_v31 = vrot.slane %v894_v45, 2  ;;  %v1683_v60 = vmul.f32 %v5945_v28, %v6783_v19 }
  0xfb   : > { %v1646_v41 = vadd.f32 %v1569_v48, %v1402_v59  ;;  %v2125_v20 = vsel %vm955_vm4, %v2123_v29, %v2124_v39  ;;  %v770_v25 = vsel %vm710_vm3, %v767_v18, %v769_v40  ;;  %v1326_v58 = vrot.slane %v1207_v52, 1 }
  0xfc   : > { %v1570_v0 = vrot.slane %v1451_v4, 2  ;;  %v1763_v44 = vmul.f32 %v5957_v35, %v6810_v5  ;;  %v846_v15 = vadd.f32 %v770_v25, %v569_v24  ;;  %v1015_v38 = vsel %vm955_vm4, %v1012_v13, %v1014_v31 }
  0xfd   : > { %v1714_v61 = vadd.f32 %v1682_v37, %v1646_v41  ;;  %v2007_v12 = vmul.f32 %v5960_v36, %v6810_v5  ;;  %v1327_v1 = vsel %vm710_vm3, %v1324_v30, %v1326_v58  ;;  %v445_v50 = vmax.f32 %v413_v2, 0.0 }
  0xfe   : > { %v1571_v16 = vsel %vm955_vm4, %v1568_v33, %v1570_v0  ;;  %v1882_v14 = vrot.slane %v1763_v44, 1  ;;  %v1091_v10 = vadd.f32 %v1015_v38, %v846_v15  ;;  %v446_v11 = vmax.f32 %v414_v62, 0.0 }
  0xff   : > { %v1958_v18 = vadd.f32 %v1881_v54, %v1714_v61  ;;  %v2126_v3 = vrot.slane %v2007_v12, 2  ;;  %479 = vst.msk [vmem:[#allocation2 + $0x151] sm:$0xff] %vm452_vm2, %v445_v50  ;;  %v570_v13 = vmul.f32 %v5923_v17, %v6708_v49  ;;  %v650_v24 = vmul.f32 %v5926_v21, %v6708_v49 }
 0x100   : > { %v1883_v47 = vsel %vm710_vm3, %v1880_v46, %v1882_v14  ;;  %v651_v30 = vmul.f32 %v5926_v21, %v6716_v56  ;;  %v1159_v37 = vadd.f32 %v1127_v32, %v1091_v10  ;;  %480 = vst.msk [vmem:[#allocation2 + $0x159] sm:$0xff] %vm452_vm2, %v446_v11  ;;  %v895_v42 = vmul.f32 %v5929_v22, %v6708_v49 }
 0x101   : > { %v2202_v33 = vadd.f32 %v2125_v20, %v1958_v18  ;;  %v2127_v51 = vsel %vm955_vm4, %v2124_v39, %v2126_v3  ;;  %v771_v53 = vrot.slane %v650_v24, 1  ;;  %v896_v48 = vmul.f32 %v5929_v22, %v6716_v56 }
 0x102   : > { %v772_v43 = vrot.slane %v651_v30, 1  ;;  %v1128_v55 = vmul.f32 %v5932_v23, %v6778_v34  ;;  %v1403_v57 = vadd.f32 %v1327_v1, %v1159_v37  ;;  %v1016_v46 = vrot.slane %v895_v42, 2 }
 0x103   : > { %5409 = vmatprep.mubr.msk.f32.mxu0 %vm452_vm2, %v2202_v33  ;;  %v1208_v29 = vmul.f32 %v5939_v26, %v6778_v34  ;;  %v1209_v63 = vmul.f32 %v5939_v26, %v6783_v19  ;;  %v1017_v59 = vrot.slane %v896_v48, 2  ;;  %v1452_v39 = vmul.f32 %v5942_v27, %v6778_v34  ;;  %v415_v48 = vld [vmem:[%s5907_s16 + $0xe0] sm:$0xff] }
 0x104   : > { %v773_v49 = vsel %vm710_vm3, %v771_v53, %v772_v43  ;;  %v1453_v45 = vmul.f32 %v5942_v27, %v6783_v19  ;;  %v1647_v32 = vadd.f32 %v1571_v16, %v1403_v57  ;;  %v571_v31 = vmul.f32 %v5923_v17, %v6716_v56 }
 0x105   : > { %v847_v54 = vadd.f32 %v773_v49, %v570_v13  ;;  %v1328_v40 = vrot.slane %v1208_v29, 1  ;;  %v1329_v52 = vrot.slane %v1209_v63, 1  ;;  %v1018_v4 = vsel %vm955_vm4, %v1016_v46, %v1017_v59 }
 0x106   : > { %v1572_v41 = vrot.slane %v1452_v39, 2  ;;  %v1573_v20 = vrot.slane %v1453_v45, 2  ;;  %v1715_v2 = vadd.f32 %v1683_v60, %v1647_v32  ;;  %v6853_v25 = vld [vmem:[#allocation2 + $0x150] sm:$0xff]  ;;  %v652_v44 = vmul.f32 %v5926_v21, %v6740_v6 }
 0x107   : > { %v1092_v58 = vadd.f32 %v1018_v4, %v847_v54  ;;  %v1330_v0 = vsel %vm710_vm3, %v1328_v40, %v1329_v52  ;;  %v6858_v62 = vld [vmem:[#allocation2 + $0x158] sm:$0xff]  ;;  %v1684_v15 = vmul.f32 %v5945_v28, %v6853_v25  ;;  %v1764_v38 = vmul.f32 %v5957_v35, %v6853_v25  ;;  %v6883_v57 = vld [vmem:[#allocation2 + $0x160] sm:$0x3] }
 0x108   : > { %v1574_v61 = vsel %vm955_vm4, %v1572_v41, %v1573_v20  ;;  %v2008_v56 = vmul.f32 %v5960_v36, %v6853_v25  ;;  %v1959_v60 = vadd.f32 %v1883_v47, %v1715_v2  ;;  %v1765_v1 = vmul.f32 %v5957_v35, %v6858_v62 }
 0x109   : > { %v1160_v12 = vadd.f32 %v1128_v55, %v1092_v58  ;;  %v2009_v16 = vmul.f32 %v5960_v36, %v6858_v62  ;;  %v1884_v14 = vrot.slane %v1764_v38, 1  ;;  %v774_v18 = vrot.slane %v652_v44, 1  ;;  %v416_v55 = vld [vmem:[%s5907_s16 + $0xe8] sm:$0xff] }
 0x10a   : > { %v2128_v50 = vrot.slane %v2008_v56, 2  ;;  %v897_v10 = vmul.f32 %v5929_v22, %v6740_v6  ;;  %v2203_v3 = vadd.f32 %v2127_v51, %v1959_v60  ;;  %v1885_v13 = vrot.slane %v1765_v1, 1 }
 0x10b   : > { %v1404_v11 = vadd.f32 %v1330_v0, %v1160_v12  ;;  %v2129_v24 = vrot.slane %v2009_v16, 2  ;;  %v775_v47 = vsel %vm710_vm3, %v772_v43, %v774_v18  ;;  %v1129_v33 = vmul.f32 %v5932_v23, %v6783_v19 }
 0x10c   : > { %v1019_v30 = vrot.slane %v897_v10, 2  ;;  %v1210_v37 = vmul.f32 %v5939_v26, %v6810_v5  ;;  %5410 = vmatmul.mubr.msk.f32.gmra.mrb[22].mxu0 %vm452_vm2, %v2203_v3  ;;  %v1886_v53 = vsel %vm710_vm3, %v1884_v14, %v1885_v13  ;;  %v848_v51 = vadd.f32 %v775_v47, %v571_v31 }
 0x10d   : > { %v1648_v42 = vadd.f32 %v1574_v61, %v1404_v11  ;;  %v2130_v6 = vsel %vm955_vm4, %v2128_v50, %v2129_v24  ;;  %v1454_v29 = vmul.f32 %v5942_v27, %v6810_v5  ;;  %v1685_v63 = vmul.f32 %v5945_v28, %v6858_v62 }
 0x10e   : > { %v1020_v43 = vsel %vm955_vm4, %v1017_v59, %v1019_v30  ;;  %v1331_v46 = vrot.slane %v1210_v37, 1  ;;  %v1766_v45 = vmul.f32 %v5957_v35, %v6883_v57  ;;  %v2010_v32 = vmul.f32 %v5960_v36, %v6883_v57 }
 0x10f   : > { %v1716_v49 = vadd.f32 %v1684_v15, %v1648_v42  ;;  %v1093_v39 = vadd.f32 %v1020_v43, %v848_v51  ;;  %v1575_v40 = vrot.slane %v1454_v29, 2  ;;  %v447_v4 = vmax.f32 %v415_v48, 0.0 }
 0x110   : > { %v1332_v54 = vsel %vm710_vm3, %v1329_v52, %v1331_v46  ;;  %v448_v59 = vmax.f32 %v416_v55, 0.0  ;;  %v1887_v2 = vrot.slane %v1766_v45, 1  ;;  %v2131_v58 = vrot.slane %v2010_v32, 2 }
 0x111   : > { %v1960_v41 = vadd.f32 %v1886_v53, %v1716_v49  ;;  %v1161_v31 = vadd.f32 %v1129_v33, %v1093_v39  ;;  %v1576_v0 = vsel %vm955_vm4, %v1573_v20, %v1575_v40  ;;  %481 = vst.msk [vmem:[#allocation2 + $0x169] sm:$0xff] %vm452_vm2, %v447_v4  ;;  %v572_v44 = vmul.f32 %v5923_v17, %v6778_v34 }
 0x112   : > { %482 = vst.msk [vmem:[#allocation2 + $0x171] sm:$0xff] %vm452_vm2, %v448_v59  ;;  %v653_v61 = vmul.f32 %v5926_v21, %v6778_v34  ;;  %v654_v52 = vmul.f32 %v5926_v21, %v6783_v19  ;;  %v1888_v56 = vsel %vm710_vm3, %v1885_v13, %v1887_v2  ;;  %v2132_v60 = vsel %vm955_vm4, %v2129_v24, %v2131_v58 }
 0x113   : > { %v2204_v15 = vadd.f32 %v2130_v6, %v1960_v41  ;;  %v1405_v38 = vadd.f32 %v1332_v54, %v1161_v31  ;;  %v898_v1 = vmul.f32 %v5929_v22, %v6778_v34  ;;  %v899_v16 = vmul.f32 %v5929_v22, %v6783_v19 }
 0x114   : > { %v776_v20 = vrot.slane %v653_v61, 1  ;;  %v777_v12 = vrot.slane %v654_v52, 1  ;;  %v1130_v50 = vmul.f32 %v5932_v23, %v6853_v25  ;;  %v1211_v18 = vmul.f32 %v5939_v26, %v6853_v25 }
 0x115   : > { %5412 = vmatprep.mubr.msk.f32.mxu0 %vm452_vm2, %v2204_v15  ;;  %v1649_v14 = vadd.f32 %v1576_v0, %v1405_v38  ;;  %v6917_v10 = vmul.f32 %v5939_v26, %v6858_v62  ;;  %v1021_v11 = vrot.slane %v898_v1, 2  ;;  %v1022_v34 = vrot.slane %v899_v16, 2 }
 0x116   : > { %v778_v3 = vsel %vm710_vm3, %v776_v20, %v777_v12  ;;  %v1455_v13 = vmul.f32 %v5942_v27, %v6853_v25  ;;  %v1333_v30 = vrot.slane %v1211_v18, 1  ;;  %v1456_v42 = vmul.f32 %v5942_v27, %v6858_v62 }
 0x117   : > { %v1717_v24 = vadd.f32 %v1685_v63, %v1649_v14  ;;  %v849_v47 = vadd.f32 %v778_v3, %v572_v44  ;;  %v1334_v33 = vrot.slane %v6917_v10, 1  ;;  %v1023_v37 = vsel %vm955_vm4, %v1021_v11, %v1022_v34  ;;  %v418_v3 = vld [vmem:[%s5907_s16 + $0xf8] sm:$0xff] }
 0x118   : > { %v1577_v53 = vrot.slane %v1455_v13, 2  ;;  %v573_v6 = vmul.f32 %v5923_v17, %v6783_v19  ;;  %v6928_v48 = vld [vmem:[#allocation2 + $0x168] sm:$0xff]  ;;  %v655_v29 = vmul.f32 %v5926_v21, %v6810_v5  ;;  %v6935_v63 = vpop.f32.mrb[0].mxu0  ;;  %v1578_v49 = vrot.slane %v1456_v42, 2 }
 0x119   : > { %v1961_v51 = vadd.f32 %v1888_v56, %v1717_v24  ;;  %v6930_v55 = vld [vmem:[#allocation2 + $0x170] sm:$0xff]  ;;  %v1094_v43 = vadd.f32 %v1023_v37, %v849_v47  ;;  %v1335_v46 = vsel %vm710_vm3, %v1333_v30, %v1334_v33  ;;  %v1686_v39 = vmul.f32 %v5945_v28, %v6928_v48  ;;  %v6943_v32 = vpop.f32.mrb[1].mxu0  ;;  %v6958_v1 = vld [vmem:[#allocation2 + $0x178] sm:$0x3] }
 0x11a   : > { %v1767_v19 = vmul.f32 %v5957_v35, %v6928_v48  ;;  %v1768_v45 = vmul.f32 %v5957_v35, %v6930_v55  ;;  %v2011_v4 = vmul.f32 %v5960_v36, %v6928_v48  ;;  %v2012_v59 = vmul.f32 %v5960_v36, %v6930_v55 }
 0x11b   : > { %v2205_v54 = vadd.f32 %v2132_v60, %v1961_v51  ;;  %v1162_v40 = vadd.f32 %v1130_v50, %v1094_v43  ;;  %v1579_v41 = vsel %vm955_vm4, %v1577_v53, %v1578_v49  ;;  %v779_v58 = vrot.slane %v655_v29, 1  ;;  %v417_v60 = vld [vmem:[%s5907_s16 + $0xf0] sm:$0xff] }
 0x11c   : > { %v1889_v31 = vrot.slane %v1767_v19, 1  ;;  %v1890_v2 = vrot.slane %v1768_v45, 1  ;;  %v2133_v44 = vrot.slane %v2011_v4, 2  ;;  %v2134_v61 = vrot.slane %v2012_v59, 2 }
 0x11d   : > { %5413 = vmatmul.mubr.msk.f32.gmra.mrb[24].mxu0 %vm452_vm2, %v2205_v54  ;;  %v1406_v0 = vadd.f32 %v1335_v46, %v1162_v40  ;;  %v900_v52 = vmul.f32 %v5929_v22, %v6810_v5  ;;  %v780_v38 = vsel %vm710_vm3, %v777_v12, %v779_v58  ;;  %v1213_v56 = vmul.f32 %v5939_v26, %v6883_v57 }
 0x11e   : > { %v1891_v15 = vsel %vm710_vm3, %v1889_v31, %v1890_v2  ;;  %v850_v16 = vadd.f32 %v780_v38, %v573_v6  ;;  %v1131_v50 = vmul.f32 %v5932_v23, %v6858_v62  ;;  %v2135_v18 = vsel %vm955_vm4, %v2133_v44, %v2134_v61 }
 0x11f   : > { %v1650_v20 = vadd.f32 %v1579_v41, %v1406_v0  ;;  %v1024_v14 = vrot.slane %v900_v52, 2  ;;  %v1336_v10 = vrot.slane %v1213_v56, 1  ;;  %v1457_v5 = vmul.f32 %v5942_v27, %v6883_v57 }
 0x120   : > { %v1769_v12 = vmul.f32 %v5957_v35, %v6958_v1  ;;  %v2013_v24 = vmul.f32 %v5960_v36, %v6958_v1  ;;  %v449_v47 = vmax.f32 %v417_v60, 0.0  ;;  %v1687_v42 = vmul.f32 %v5945_v28, %v6930_v55 }
 0x121   : > { %v1718_v11 = vadd.f32 %v1686_v39, %v1650_v20  ;;  %v1025_v13 = vsel %vm955_vm4, %v1022_v34, %v1024_v14  ;;  %v1580_v37 = vrot.slane %v1457_v5, 2  ;;  %v1337_v51 = vsel %vm710_vm3, %v1334_v33, %v1336_v10 }
 0x122   : > { %v1095_v30 = vadd.f32 %v1025_v13, %v850_v16  ;;  %v1892_v53 = vrot.slane %v1769_v12, 1  ;;  %v2136_v43 = vrot.slane %v2013_v24, 2  ;;  %v450_v46 = vmax.f32 %v418_v3, 0.0  ;;  %483 = vst.msk [vmem:[#allocation2 + $0x181] sm:$0xff] %vm452_vm2, %v449_v47 }
 0x123   : > { %v1962_v6 = vadd.f32 %v1891_v15, %v1718_v11  ;;  %v1581_v34 = vsel %vm955_vm4, %v1578_v49, %v1580_v37  ;;  %v574_v39 = vmul.f32 %v5923_v17, %v6853_v25  ;;  %v656_v19 = vmul.f32 %v5926_v21, %v6853_v25 }
 0x124   : > { %v1163_v29 = vadd.f32 %v1131_v50, %v1095_v30  ;;  %v1893_v54 = vsel %vm710_vm3, %v1890_v2, %v1892_v53  ;;  %484 = vst.msk [vmem:[#allocation2 + $0x189] sm:$0xff] %vm452_vm2, %v450_v46  ;;  %v657_v33 = vmul.f32 %v5926_v21, %v6858_v62  ;;  %v901_v40 = vmul.f32 %v5929_v22, %v6853_v25 }
 0x125   : > { %v2206_v45 = vadd.f32 %v2135_v18, %v1962_v6  ;;  %v2137_v49 = vsel %vm955_vm4, %v2134_v61, %v2136_v43  ;;  %v781_v59 = vrot.slane %v656_v19, 1  ;;  %v902_v41 = vmul.f32 %v5929_v22, %v6858_v62 }
 0x126   : > { %v1407_v4 = vadd.f32 %v1337_v51, %v1163_v29  ;;  %v782_v31 = vrot.slane %v657_v33, 1  ;;  %v1026_v58 = vrot.slane %v901_v40, 2  ;;  %v1214_v2 = vmul.f32 %v5939_v26, %v6928_v48 }
 0x127   : > { %5415 = vmatprep.mubr.msk.f32.mxu0 %vm452_vm2, %v2206_v45  ;;  %v1215_v0 = vmul.f32 %v5939_v26, %v6930_v55  ;;  %v1027_v52 = vrot.slane %v902_v41, 2  ;;  %v1458_v25 = vmul.f32 %v5942_v27, %v6928_v48  ;;  %v1459_v61 = vmul.f32 %v5942_v27, %v6930_v55 }
 0x128   : > { %v1651_v44 = vadd.f32 %v1581_v34, %v1407_v4  ;;  %v783_v15 = vsel %vm710_vm3, %v781_v59, %v782_v31  ;;  %v1132_v38 = vmul.f32 %v5932_v23, %v6928_v48  ;;  %v1338_v56 = vrot.slane %v1214_v2, 1 }
 0x129   : > { %v1339_v60 = vrot.slane %v1215_v0, 1  ;;  %v7001_v16 = vld [vmem:[#allocation2 + $0x180] sm:$0xff]  ;;  %v851_v14 = vadd.f32 %v783_v15, %v574_v39  ;;  %v1028_v50 = vsel %vm955_vm4, %v1026_v58, %v1027_v52  ;;  %v575_v18 = vmul.f32 %v5923_v17, %v6858_v62 }
 0x12a   : > { %v1719_v20 = vadd.f32 %v1687_v42, %v1651_v44  ;;  %v1582_v5 = vrot.slane %v1458_v25, 2  ;;  %v1583_v12 = vrot.slane %v1459_v61, 2  ;;  %v1770_v3 = vmul.f32 %v5957_v35, %v7001_v16 }
 0x12b   : > { %v1340_v10 = vsel %vm710_vm3, %v1338_v56, %v1339_v60  ;;  %v7009_v13 = vld [vmem:[#allocation2 + $0x188] sm:$0xff]  ;;  %v1096_v24 = vadd.f32 %v1028_v50, %v851_v14  ;;  %v2014_v47 = vmul.f32 %v5960_v36, %v7001_v16  ;;  %v658_v30 = vmul.f32 %v5926_v21, %v6883_v57  ;;  %v7029_v40 = vld [vmem:[#allocation2 + $0x190] sm:$0x3] }
 0x12c   : > { %v1963_v11 = vadd.f32 %v1893_v54, %v1719_v20  ;;  %v1688_v62 = vmul.f32 %v5945_v28, %v7001_v16  ;;  %v1771_v37 = vmul.f32 %v5957_v35, %v7009_v13  ;;  %v1894_v42 = vrot.slane %v1770_v3, 1 }
 0x12d   : > { %v2015_v53 = vmul.f32 %v5960_v36, %v7009_v13  ;;  %v1164_v51 = vadd.f32 %v1132_v38, %v1096_v24  ;;  %v2138_v43 = vrot.slane %v2014_v47, 2  ;;  %v784_v46 = vrot.slane %v658_v30, 1  ;;  %v7021_v29 = vpop.f32.mrb[2].mxu0 }
 0x12e   : > { %v2207_v6 = vadd.f32 %v2137_v49, %v1963_v11  ;;  %v1584_v34 = vsel %vm955_vm4, %v1582_v5, %v1583_v12  ;;  %v1895_v39 = vrot.slane %v1771_v37, 1  ;;  %v903_v45 = vmul.f32 %v5929_v22, %v6883_v57  ;;  %v7026_v54 = vpop.f32.mrb[3].mxu0 }
 0x12f   : > { %v2139_v19 = vrot.slane %v2015_v53, 2  ;;  %v1408_v33 = vadd.f32 %v1340_v10, %v1164_v51  ;;  %v785_v4 = vsel %vm710_vm3, %v782_v31, %v784_v46  ;;  %v1216_v49 = vmul.f32 %v5939_v26, %v6958_v1 }
 0x130   : > { %5416 = vmatmul.mubr.msk.f32.gmra.mrb[26].mxu0 %vm452_vm2, %v2207_v6  ;;  %v1460_v59 = vmul.f32 %v5942_v27, %v6958_v1  ;;  %v1896_v41 = vsel %vm710_vm3, %v1894_v42, %v1895_v39  ;;  %v852_v58 = vadd.f32 %v785_v4, %v575_v18  ;;  %v1029_v2 = vrot.slane %v903_v45, 2 }
 0x131   : > { %v1133_v57 = vmul.f32 %v5932_v23, %v6930_v55  ;;  %v1652_v0 = vadd.f32 %v1584_v34, %v1408_v33  ;;  %v2140_v44 = vsel %vm955_vm4, %v2138_v43, %v2139_v19  ;;  %v1341_v25 = vrot.slane %v1216_v49, 1  ;;  %v536_v43 = vld [vmem:[#allocation2 + $0x198] sm:$0xff]  ;;  %v537_v33 = vld [vmem:[#allocation2 + $0x1a0] sm:$0xff] }
 0x132   : > { %v1585_v61 = vrot.slane %v1460_v59, 2  ;;  %v1030_v31 = vsel %vm955_vm4, %v1027_v52, %v1029_v2  ;;  %v1689_v15 = vmul.f32 %v5945_v28, %v7009_v13  ;;  %v1772_v38 = vmul.f32 %v5957_v35, %v7029_v40 }
 0x133   : > { %v2016_v56 = vmul.f32 %v5960_v36, %v7029_v40  ;;  %v1720_v20 = vadd.f32 %v1688_v62, %v1652_v0  ;;  %v1097_v14 = vadd.f32 %v1030_v31, %v852_v58  ;;  %v1342_v50 = vsel %vm710_vm3, %v1339_v60, %v1341_v25 }
 0x134   : > { %v576_v18 = vmul.f32 %v5923_v17, %v6928_v48  ;;  %v1586_v10 = vsel %vm955_vm4, %v1583_v12, %v1585_v61  ;;  %v1897_v5 = vrot.slane %v1772_v38, 1  ;;  %v659_v52 = vmul.f32 %v5926_v21, %v6928_v48 }
 0x135   : > { %v7055_v3 = vmul.f32 %v5926_v21, %v6930_v55  ;;  %v1964_v11 = vadd.f32 %v1896_v41, %v1720_v20  ;;  %v1165_v24 = vadd.f32 %v1133_v57, %v1097_v14  ;;  %v904_v47 = vmul.f32 %v5929_v22, %v6928_v48 }
 0x136   : > { %v7061_v60 = vmul.f32 %v5929_v22, %v6930_v55  ;;  %v1898_v30 = vsel %vm710_vm3, %v1895_v39, %v1897_v5  ;;  %v2141_v12 = vrot.slane %v2016_v56, 2  ;;  %v786_v62 = vrot.slane %v659_v52, 1 }
 0x137   : > { %v787_v37 = vrot.slane %v7055_v3, 1  ;;  %v2208_v42 = vadd.f32 %v2140_v44, %v1964_v11  ;;  %v1409_v53 = vadd.f32 %v1342_v50, %v1165_v24  ;;  %v1031_v6 = vrot.slane %v904_v47, 2  ;;  %v538_v47 = vld [vmem:[#allocation2 + $0x1a8] sm:$0x3] }
 0x138   : > { %v1032_v51 = vrot.slane %v7061_v60, 2  ;;  %v1134_v48 = vmul.f32 %v5932_v23, %v7001_v16  ;;  %v1217_v34 = vmul.f32 %v5939_v26, %v7001_v16  ;;  %v1218_v39 = vmul.f32 %v5939_v26, %v7009_v13 }
 0x139   : > { %v788_v46 = vsel %vm710_vm3, %v786_v62, %v787_v37  ;;  %5418 = vmatprep.mubr.msk.f32.mxu0 %vm452_vm2, %v2208_v42  ;;  %v1653_v45 = vadd.f32 %v1586_v10, %v1409_v53  ;;  %v1461_v59 = vmul.f32 %v5942_v27, %v7001_v16  ;;  %v2142_v41 = vsel %vm955_vm4, %v2139_v19, %v2141_v12 }
 0x13a   : > { %v853_v4 = vadd.f32 %v788_v46, %v576_v18  ;;  %v1033_v49 = vsel %vm955_vm4, %v1031_v6, %v1032_v51  ;;  %v1343_v58 = vrot.slane %v1217_v34, 1  ;;  %v1344_v2 = vrot.slane %v1218_v39, 1 }
 0x13b   : > { %v1462_v57 = vmul.f32 %v5942_v27, %v7009_v13  ;;  %v1721_v0 = vadd.f32 %v1689_v15, %v1653_v45  ;;  %v1587_v25 = vrot.slane %v1461_v59, 2  ;;  %v1773_v61 = vmul.f32 %v5957_v35, %v536_v43 }
 0x13c   : > { %v1098_v44 = vadd.f32 %v1033_v49, %v853_v4  ;;  %v1345_v31 = vsel %vm710_vm3, %v1343_v58, %v1344_v2  ;;  %v1774_v56 = vmul.f32 %v5957_v35, %v537_v33  ;;  %v2017_v20 = vmul.f32 %v5960_v36, %v536_v43 }
 0x13d   : > { %v1588_v38 = vrot.slane %v1462_v57, 2  ;;  %v1965_v16 = vadd.f32 %v1898_v30, %v1721_v0  ;;  %v1899_v19 = vrot.slane %v1773_v61, 1  ;;  %v7085_v50 = vmul.f32 %v5960_v36, %v537_v33  ;;  %v2660_v61 = vld [vmem:[%s8889_s4 + $0x4] sm:$0x7] }
 0x13e   : > { %v1166_v14 = vadd.f32 %v1134_v48, %v1098_v44  ;;  %v1690_v15 = vmul.f32 %v5945_v28, %v536_v43  ;;  %v1900_v10 = vrot.slane %v1774_v56, 1  ;;  %v2143_v5 = vrot.slane %v2017_v20, 2  ;;  %v2605_v56 = vld [vmem:[#allocation2] sm:$0xff]  ;;  %v2606_v20 = vld [vmem:[#allocation2 + $0x8] sm:$0xff] }
 0x13f   : > { %v1589_v18 = vsel %vm955_vm4, %v1587_v25, %v1588_v38  ;;  %v5384_v52 = vpop.f32.mrb[4].mxu0  ;;  %v2209_v3 = vadd.f32 %v2142_v41, %v1965_v16  ;;  %v2144_v24 = vrot.slane %v7085_v50, 2  ;;  %v661_v60 = vmul.f32 %v5926_v21, %v6958_v1  ;;  %v2607_v16 = vld [vmem:[#allocation2 + $0x10] sm:$0x3] }
 0x140   : > { %v1410_v11 = vadd.f32 %v1345_v31, %v1166_v14  ;;  %v2402_v30 = vpop.f32.mrb[5].mxu0  ;;  %v1901_v12 = vsel %vm710_vm3, %v1899_v19, %v1900_v10  ;;  %v577_v62 = vmul.f32 %v5923_v17, %v6930_v55  ;;  %v906_v42 = vmul.f32 %v5929_v22, %v6958_v1  ;;  %v7109_v22 = vld [vmem:[%s8888_s3] ss:$0 sm:$0xff] }
 0x141   : > { %v1219_v53 = vmul.f32 %v5939_v26, %v7029_v40  ;;  %5419 = vmatmul.mubr.msk.f32.gmra.mrb[28].mxu0 %vm452_vm2, %v2209_v3  ;;  %v789_v43 = vrot.slane %v661_v60, 1  ;;  %v1135_v46 = vmul.f32 %v5932_v23, %v7009_v13  ;;  %v1463_v21 = vmul.f32 %v5942_v27, %v7029_v40 }
 0x142   : > { %v1654_v6 = vadd.f32 %v1589_v18, %v1410_v11  ;;  %v2145_v48 = vsel %vm955_vm4, %v2143_v5, %v2144_v24  ;;  %v1034_v34 = vrot.slane %v906_v42, 2  ;;  %v1775_v55 = vmul.f32 %v5957_v35, %v538_v47 }
 0x143   : > { %v1346_v17 = vrot.slane %v1219_v53, 1  ;;  %v790_v1 = vsel %vm710_vm3, %v787_v37, %v789_v43  ;;  %v1590_v39 = vrot.slane %v1463_v21, 2  ;;  %v2019_v23 = vmul.f32 %v5960_v36, %v538_v47 }
 0x144   : > { %v1722_v26 = vadd.f32 %v1690_v15, %v1654_v6  ;;  %v854_v13 = vadd.f32 %v790_v1, %v577_v62  ;;  %v1035_v27 = vsel %vm955_vm4, %v1032_v51, %v1034_v34  ;;  %v1691_v40 = vmul.f32 %v5945_v28, %v537_v33  ;;  %v4330_v28 = vld [vmem:[%s8890_s5] sm:$0xff]  ;;  %v4331_v51 = vld [vmem:[%s8890_s5 + $0x8] sm:$0xff] }
 0x145   : > { %v1902_v45 = vrot.slane %v1775_v55, 1  ;;  %v1347_v35 = vsel %vm710_vm3, %v1344_v2, %v1346_v17  ;;  %v1591_v49 = vsel %vm955_vm4, %v1588_v38, %v1590_v39  ;;  %v2388_v59 = vadd.f32 %v6935_v63, %v7109_v22  ;;  %v2661_v6 = vld [vmem:[%s8889_s4 + $0x8] sm:$0x7] }
 0x146   : > { %v1966_v4 = vadd.f32 %v1901_v12, %v1722_v26  ;;  %v1099_v41 = vadd.f32 %v1035_v27, %v854_v13  ;;  %v2146_v58 = vrot.slane %v2019_v23, 2  ;;  %v2383_v37 = vadd.f32 %v7109_v22, %v6943_v32  ;;  %v2659_v32 = vld [vmem:[%s8889_s4] sm:$0x7] }
 0x147   : > { %v2398_v36 = vadd.f32 %v7021_v29, %v7109_v22  ;;  %v1903_v2 = vsel %vm710_vm3, %v1900_v10, %v1902_v45  ;;  %v2542_v63 = vmax.f32 %v2388_v59, 0.0  ;;  %v2393_v57 = vadd.f32 %v7109_v22, %v7026_v54 }
 0x148   : > { %v2210_v33 = vadd.f32 %v2145_v48, %v1966_v4  ;;  %v1167_v29 = vadd.f32 %v1135_v46, %v1099_v41  ;;  %v2541_v0 = vmax.f32 %v2383_v37, 0.0  ;;  %v2408_v25 = vadd.f32 %v5384_v52, %v7109_v22 }
 0x149   : > { %v2544_v44 = vmax.f32 %v2398_v36, 0.0  ;;  %2574 = vst.msk [vmem:[#allocation2 + $0x21] sm:$0xff] %vm331_vm0, %v2542_v63  ;;  %v2543_v31 = vmax.f32 %v2393_v57, 0.0  ;;  %v2403_v54 = vadd.f32 %v7109_v22, %v2402_v30  ;;  %v5526_v38 = vpack.c.bf16 %v4331_v51, %v4330_v28 }
 0x14a   : > { %5421 = vmatprep.mubr.msk.f32.mxu0 %vm452_vm2, %v2210_v33  ;;  %v7143_v14 = vrot.slane %v2659_v32, %v5912_v7  ;;  %v1411_v19 = vadd.f32 %v1347_v35, %v1167_v29  ;;  %2573 = vst.msk [vmem:[#allocation2 + $0x19] sm:$0xff] %vm331_vm0, %v2541_v0  ;;  %v2546_v50 = vmax.f32 %v2408_v25, 0.0  ;;  %v7148_v18 = vrot.slane %v2659_v32, %v5914_v8 }
 0x14b   : > { %2576 = vst.msk [vmem:[#allocation2 + $0x39] sm:$0xff] %vm331_vm0, %v2544_v44  ;;  %v7151_v15 = vrot.slane %v2659_v32, %v5916_v9  ;;  %v2147_v10 = vsel %vm955_vm4, %v2144_v24, %v2146_v58  ;;  %2575 = vst.msk [vmem:[#allocation2 + $0x31] sm:$0xff] %vm331_vm0, %v2543_v31  ;;  %v2545_v5 = vmax.f32 %v2403_v54, 0.0  ;;  %5527 = vmatprep.subr.bf16.mxu0 %v5526_v38  ;;  %5530 = vmatprep.subr.bf16.mxu1 %v5526_v38 }
 0x14c   : > { %v2666_v52 = vmul.f32 %v7143_v14, %v2605_v56  ;;  %v7157_v3 = vrot.slane %v2660_v61, %v5912_v7  ;;  %v1655_v11 = vadd.f32 %v1591_v49, %v1411_v19  ;;  %2578 = vst.msk [vmem:[#allocation2 + $0x51] sm:$0xff] %vm331_vm0, %v2546_v50  ;;  %5529 = vmatpush3.bf16.msra.mxu0 %v5526_v38 }
 0x14d   : > { %v2734_v47 = vmul.f32 %v7148_v18, %v2605_v56  ;;  %v2735_v60 = vmul.f32 %v7148_v18, %v2606_v20  ;;  %v2736_v24 = vmul.f32 %v7148_v18, %v2607_v16  ;;  %2577 = vst.msk [vmem:[#allocation2 + $0x49] sm:$0xff] %vm331_vm0, %v2545_v5  ;;  %v2978_v30 = vmul.f32 %v7151_v15, %v2605_v56 }
 0x14e   : > { %v2979_v12 = vmul.f32 %v7151_v15, %v2606_v20  ;;  %v2980_v62 = vmul.f32 %v7151_v15, %v2607_v16  ;;  %v7168_v42 = vrot.slane %v2660_v61, %v5914_v8  ;;  %5531 = vmatpush3.bf16.msra.mxu1 %v5526_v38  ;;  %v1723_v53 = vadd.f32 %v1691_v40, %v1655_v11 }
 0x14f   : > { %v2830_v43 = vrot.slane %v2734_v47, 1  ;;  %v2831_v46 = vrot.slane %v2735_v60, 1  ;;  %v2833_v21 = vrot.slane %v2736_v24, 1  ;;  %v2667_v48 = vmul.f32 %v7143_v14, %v2606_v20 }
 0x150   : > { %v3074_v34 = vrot.slane %v2978_v30, 2  ;;  %v3075_v17 = vrot.slane %v2979_v12, 2  ;;  %v3077_v55 = vrot.slane %v2980_v62, 2  ;;  %v1967_v26 = vadd.f32 %v1903_v2, %v1723_v53  ;;  %v5387_v1 = vpop.f32.mrb[6].mxu0  ;;  %v7174_v39 = vld [vmem:[#allocation2 + $0x28] sm:$0x3] }
 0x151   : > { %v2832_v23 = vsel %vm710_vm3, %v2830_v43, %v2831_v46  ;;  %v2834_v13 = vsel %vm710_vm3, %v2831_v46, %v2833_v21  ;;  %v7179_v27 = vrot.slane %v2660_v61, %v5916_v9  ;;  %v2418_v40 = vadd.f32 %v5387_v1, %v7109_v22  ;;  %v2412_v45 = vpop.f32.mrb[7].mxu0  ;;  %v7182_v4 = vld [vmem:[#allocation2 + $0x18] sm:$0xff]  ;;  %v7184_v35 = vld [vmem:[#allocation2 + $0x20] sm:$0xff] }
 0x152   : > { %v2942_v49 = vadd.f32 %v2832_v23, %v2666_v52  ;;  %v3076_v59 = vsel %vm955_vm4, %v3074_v34, %v3075_v17  ;;  %v7188_v41 = vrot.slane %v2661_v6, %v5912_v7  ;;  %v2211_v58 = vadd.f32 %v2147_v10, %v1967_v26  ;;  %v7200_v57 = vld [vmem:[#allocation2 + $0x30] sm:$0xff]  ;;  %v7207_v44 = vld [vmem:[#allocation2 + $0x38] sm:$0xff]  ;;  %v7212_v38 = vld [vmem:[#allocation2 + $0x40] sm:$0x3] }
 0x153   : > { %v2413_v37 = vadd.f32 %v7109_v22, %v2412_v45  ;;  %v3222_v36 = vmul.f32 %v7157_v3, %v7182_v4  ;;  %v3290_v28 = vmul.f32 %v7168_v42, %v7182_v4  ;;  %v2548_v51 = vmax.f32 %v2418_v40, 0.0 }
 0x154   : > { %v3186_v33 = vadd.f32 %v3076_v59, %v2942_v49  ;;  %v3291_v2 = vmul.f32 %v7168_v42, %v7184_v35  ;;  %v3292_v63 = vmul.f32 %v7168_v42, %v7174_v39  ;;  %5422 = vmatmul.mubr.msk.f32.gmra.mrb[30].mxu0 %vm452_vm2, %v2211_v58  ;;  %v3534_v29 = vmul.f32 %v7179_v27, %v7182_v4 }
 0x155   : > { %v2547_v7 = vmax.f32 %v2413_v37, 0.0  ;;  %v3386_v32 = vrot.slane %v3290_v28, 1  ;;  %v3535_v0 = vmul.f32 %v7179_v27, %v7184_v35  ;;  %2580 = vst.msk [vmem:[#allocation2 + $0x69] sm:$0xff] %vm331_vm0, %v2548_v51  ;;  %v3536_v54 = vmul.f32 %v7179_v27, %v7174_v39 }
 0x156   : > { %v3254_v25 = vadd.f32 %v3222_v36, %v3186_v33  ;;  %v3387_v61 = vrot.slane %v3291_v2, 1  ;;  %v3389_v31 = vrot.slane %v3292_v63, 1  ;;  %v3078_v56 = vsel %vm955_vm4, %v3075_v17, %v3077_v55 }
 0x157   : > { %2579 = vst.msk [vmem:[#allocation2 + $0x61] sm:$0xff] %vm331_vm0, %v2547_v7  ;;  %v3630_v20 = vrot.slane %v3534_v29, 2  ;;  %v3631_v16 = vrot.slane %v3535_v0, 2  ;;  %v7216_v19 = vrot.slane %v2661_v6, %v5914_v8  ;;  %v3633_v10 = vrot.slane %v3536_v54, 2 }
 0x158   : > { %v3388_v50 = vsel %vm710_vm3, %v3386_v32, %v3387_v61  ;;  %v3778_v5 = vmul.f32 %v7188_v41, %v7200_v57  ;;  %v7222_v52 = vrot.slane %v2661_v6, %v5916_v9  ;;  %v3390_v8 = vsel %vm710_vm3, %v3387_v61, %v3389_v31 }
 0x159   : > { %v3498_v11 = vadd.f32 %v3388_v50, %v3254_v25  ;;  %v3632_v47 = vsel %vm955_vm4, %v3630_v20, %v3631_v16  ;;  %v3846_v60 = vmul.f32 %v7216_v19, %v7200_v57  ;;  %v3847_v24 = vmul.f32 %v7216_v19, %v7207_v44 }
 0x15a   : > { %v3848_v30 = vmul.f32 %v7216_v19, %v7212_v38  ;;  %v4090_v12 = vmul.f32 %v7222_v52, %v7200_v57  ;;  %v7236_v9 = vmul.f32 %v7222_v52, %v7207_v44  ;;  %v4092_v43 = vmul.f32 %v7222_v52, %v7212_v38 }
 0x15b   : > { %v3742_v62 = vadd.f32 %v3632_v47, %v3498_v11  ;;  %v3942_v53 = vrot.slane %v3846_v60, 1  ;;  %v3943_v6 = vrot.slane %v3847_v24, 1  ;;  %v2943_v17 = vadd.f32 %v2834_v13, %v2667_v48  ;;  %v7280_v24 = vld [vmem:[#allocation2 + $0x50] sm:$0xff] }
 0x15c   : > { %v3945_v46 = vrot.slane %v3848_v30, 1  ;;  %v4186_v21 = vrot.slane %v4090_v12, 2  ;;  %v4187_v34 = vrot.slane %v7236_v9, 2  ;;  %v3634_v55 = vsel %vm955_vm4, %v3631_v16, %v3633_v10 }
 0x15d   : > { %v3810_v26 = vadd.f32 %v3778_v5, %v3742_v62  ;;  %v3944_v1 = vsel %vm710_vm3, %v3942_v53, %v3943_v6  ;;  %v3223_v23 = vmul.f32 %v7157_v3, %v7184_v35  ;;  %v4189_v49 = vrot.slane %v4092_v43, 2  ;;  %v7276_v5 = vld [vmem:[#allocation2 + $0x48] sm:$0xff] }
 0x15e   : > { %v3946_v40 = vsel %vm710_vm3, %v3943_v6, %v3945_v46  ;;  %v4188_v45 = vsel %vm955_vm4, %v4186_v21, %v4187_v34  ;;  %v3187_v59 = vadd.f32 %v3078_v56, %v2943_v17  ;;  %v3779_v37 = vmul.f32 %v7188_v41, %v7207_v44 }
 0x15f   : > { %v4054_v58 = vadd.f32 %v3944_v1, %v3810_v26  ;;  %v2668_v48 = vmul.f32 %v7143_v14, %v7182_v4  ;;  %v2737_v13 = vmul.f32 %v7148_v18, %v7182_v4  ;;  %v7255_v28 = vmul.f32 %v7148_v18, %v7184_v35 }
 0x160   : > { %v3255_v36 = vadd.f32 %v3223_v23, %v3187_v59  ;;  %v2981_v51 = vmul.f32 %v7151_v15, %v7182_v4  ;;  %v7261_v33 = vmul.f32 %v7151_v15, %v7184_v35  ;;  %v3224_v7 = vmul.f32 %v7157_v3, %v7200_v57 }
 0x161   : > { %v4298_v2 = vadd.f32 %v4188_v45, %v4054_v58  ;;  %v2835_v63 = vrot.slane %v2737_v13, 1  ;;  %v3293_v32 = vmul.f32 %v7168_v42, %v7200_v57  ;;  %v2836_v25 = vrot.slane %v7255_v28, 1 }
 0x162   : > { %v5390_v29 = vpop.f32.mrb[8].mxu0  ;;  %v3499_v0 = vadd.f32 %v3390_v8, %v3255_v36  ;;  %v3079_v61 = vrot.slane %v2981_v51, 2  ;;  %v3080_v31 = vrot.slane %v7261_v33, 2  ;;  %v3294_v56 = vmul.f32 %v7168_v42, %v7207_v44 }
 0x163   : > { %v2428_v4 = vadd.f32 %v5390_v29, %v7109_v22  ;;  %v2422_v54 = vpop.f32.mrb[9].mxu0  ;;  %5428 = vmatprep.mubr.msk.f32.mxu0 %vm331_vm0, %v4298_v2  ;;  %v3391_v20 = vrot.slane %v3293_v32, 1  ;;  %v3537_v16 = vmul.f32 %v7179_v27, %v7200_v57  ;;  %v2837_v11 = vsel %vm710_vm3, %v2835_v63, %v2836_v25 }
 0x164   : > { %v2423_v50 = vadd.f32 %v7109_v22, %v2422_v54  ;;  %v3743_v10 = vadd.f32 %v3634_v55, %v3499_v0  ;;  %v3081_v47 = vsel %vm955_vm4, %v3079_v61, %v3080_v31  ;;  %v2944_v8 = vadd.f32 %v2837_v11, %v2668_v48 }
 0x165   : > { %v2550_v60 = vmax.f32 %v2428_v4, 0.0  ;;  %v3392_v30 = vrot.slane %v3294_v56, 1  ;;  %v3538_v12 = vmul.f32 %v7179_v27, %v7207_v44  ;;  %v3635_v53 = vrot.slane %v3537_v16, 2 }
 0x166   : > { %v2549_v9 = vmax.f32 %v2423_v50, 0.0  ;;  %v3811_v62 = vadd.f32 %v3779_v37, %v3743_v10  ;;  %v3188_v6 = vadd.f32 %v3081_v47, %v2944_v8  ;;  %v3849_v21 = vmul.f32 %v7216_v19, %v7276_v5 }
 0x167   : > { %2582 = vst.msk [vmem:[#allocation2 + $0x81] sm:$0xff] %vm331_vm0, %v2550_v60  ;;  %v3393_v43 = vsel %vm710_vm3, %v3391_v20, %v3392_v30  ;;  %v3636_v46 = vrot.slane %v3538_v12, 2  ;;  %v7291_v55 = vmul.f32 %v7216_v19, %v7280_v24  ;;  %v4093_v26 = vmul.f32 %v7222_v52, %v7276_v5 }
 0x168   : > { %2581 = vst.msk [vmem:[#allocation2 + $0x79] sm:$0xff] %vm331_vm0, %v2549_v9  ;;  %v4055_v17 = vadd.f32 %v3946_v40, %v3811_v62  ;;  %v7297_v1 = vmul.f32 %v7222_v52, %v7280_v24  ;;  %v4190_v23 = vsel %vm955_vm4, %v4187_v34, %v4189_v49  ;;  %v3256_v45 = vadd.f32 %v3224_v7, %v3188_v6  ;;  %v7310_v49 = vld [vmem:[#allocation2 + $0x58] sm:$0x3] }
 0x169   : > { %v3947_v59 = vrot.slane %v3849_v21, 1  ;;  %v3948_v37 = vrot.slane %v7291_v55, 1  ;;  %v4191_v48 = vrot.slane %v4093_v26, 2  ;;  %v3780_v36 = vmul.f32 %v7188_v41, %v7276_v5 }
 0x16a   : > { %v4299_v58 = vadd.f32 %v4190_v23, %v4055_v17  ;;  %v4192_v40 = vrot.slane %v7297_v1, 2  ;;  %v3500_v13 = vadd.f32 %v3393_v43, %v3256_v45  ;;  %v2739_v28 = vmul.f32 %v7148_v18, %v7174_v39 }
 0x16b   : > { %v2983_v51 = vmul.f32 %v7151_v15, %v7174_v39  ;;  %v3637_v34 = vsel %vm955_vm4, %v3635_v53, %v3636_v46  ;;  %v2669_v33 = vmul.f32 %v7143_v14, %v7184_v35  ;;  %v3295_v2 = vmul.f32 %v7168_v42, %v7212_v38 }
 0x16c   : > { %5429 = vmatmul.mubr.msk.f32.vlgmr.msra.gmra.mrb[32].mxu0 %vm331_vm0, %v4299_v58  ;;  %v3539_v63 = vmul.f32 %v7179_v27, %v7212_v38  ;;  %v3744_v7 = vadd.f32 %v3637_v34, %v3500_v13  ;;  %v2838_v32 = vrot.slane %v2739_v28, 1  ;;  %v3225_v39 = vmul.f32 %v7157_v3, %v7207_v44  ;;  %v7359_v34 = vld [vmem:[#allocation2 + $0x68] sm:$0xff] }
 0x16d   : > { %v3082_v29 = vrot.slane %v2983_v51, 2  ;;  %v3949_v0 = vsel %vm710_vm3, %v3947_v59, %v3948_v37  ;;  %v4193_v35 = vsel %vm955_vm4, %v4191_v48, %v4192_v40  ;;  %v3394_v61 = vrot.slane %v3295_v2, 1  ;;  %v7357_v51 = vld [vmem:[#allocation2 + $0x60] sm:$0xff] }
 0x16e   : > { %v3638_v4 = vrot.slane %v3539_v63, 2  ;;  %v3812_v54 = vadd.f32 %v3780_v36, %v3744_v7  ;;  %v2839_v56 = vsel %vm710_vm3, %v2836_v25, %v2838_v32  ;;  %v3851_v16 = vmul.f32 %v7216_v19, %v7310_v49 }
 0x16f   : > { %v3083_v20 = vsel %vm955_vm4, %v3080_v31, %v3082_v29  ;;  %v2945_v50 = vadd.f32 %v2839_v56, %v2669_v33  ;;  %v3781_v10 = vmul.f32 %v7188_v41, %v7280_v24  ;;  %v4095_v11 = vmul.f32 %v7222_v52, %v7310_v49 }
 0x170   : > { %v2670_v47 = vmul.f32 %v7143_v14, %v7200_v57  ;;  %v4056_v60 = vadd.f32 %v3949_v0, %v3812_v54  ;;  %v3395_v8 = vsel %vm710_vm3, %v3392_v30, %v3394_v61  ;;  %v2740_v25 = vmul.f32 %v7148_v18, %v7200_v57 }
 0x171   : > { %v7341_v31 = vmul.f32 %v7148_v18, %v7207_v44  ;;  %v3189_v9 = vadd.f32 %v3083_v20, %v2945_v50  ;;  %v3639_v62 = vsel %vm955_vm4, %v3636_v46, %v3638_v4  ;;  %v2984_v53 = vmul.f32 %v7151_v15, %v7200_v57 }
 0x172   : > { %v5393_v12 = vpop.f32.mrb[10].mxu0  ;;  %v7348_v6 = vmul.f32 %v7151_v15, %v7207_v44  ;;  %v4300_v21 = vadd.f32 %v4193_v35, %v4056_v60  ;;  %v3950_v17 = vrot.slane %v3851_v16, 1  ;;  %v2840_v26 = vrot.slane %v2740_v25, 1 }
 0x173   : > { %v2438_v30 = vadd.f32 %v5393_v12, %v7109_v22  ;;  %v2432_v43 = vpop.f32.mrb[11].mxu0  ;;  %v3257_v45 = vadd.f32 %v3225_v39, %v3189_v9  ;;  %v2841_v59 = vrot.slane %v7341_v31, 1  ;;  %v3084_v58 = vrot.slane %v2984_v53, 2  ;;  %v7396_v53 = vld [vmem:[#allocation2 + $0x70] sm:$0x3] }
 0x174   : > { %v2433_v23 = vadd.f32 %v7109_v22, %v2432_v43  ;;  %5431 = vmatprep.mubr.msk.f32.mxu0 %vm331_vm0, %v4300_v21  ;;  %v4194_v57 = vrot.slane %v4095_v11, 2  ;;  %v3085_v48 = vrot.slane %v7348_v6, 2  ;;  %v3296_v13 = vmul.f32 %v7168_v42, %v7276_v5 }
 0x175   : > { %v2552_v46 = vmax.f32 %v2438_v30, 0.0  ;;  %v3501_v28 = vadd.f32 %v3395_v8, %v3257_v45  ;;  %v2842_v33 = vsel %vm710_vm3, %v2840_v26, %v2841_v59  ;;  %v3297_v2 = vmul.f32 %v7168_v42, %v7280_v24 }
 0x176   : > { %v2551_v36 = vmax.f32 %v2433_v23, 0.0  ;;  %v2946_v63 = vadd.f32 %v2842_v33, %v2670_v47  ;;  %v3086_v7 = vsel %vm955_vm4, %v3084_v58, %v3085_v48  ;;  %v3226_v32 = vmul.f32 %v7157_v3, %v7276_v5 }
 0x177   : > { %2584 = vst.msk [vmem:[#allocation2 + $0x99] sm:$0xff] %vm331_vm0, %v2552_v46  ;;  %v3540_v29 = vmul.f32 %v7179_v27, %v7276_v5  ;;  %v3745_v39 = vadd.f32 %v3639_v62, %v3501_v28  ;;  %v3396_v0 = vrot.slane %v3296_v13, 1  ;;  %v3397_v35 = vrot.slane %v3297_v2, 1 }
 0x178   : > { %2583 = vst.msk [vmem:[#allocation2 + $0x91] sm:$0xff] %vm331_vm0, %v2551_v36  ;;  %v3541_v61 = vmul.f32 %v7179_v27, %v7280_v24  ;;  %v3190_v4 = vadd.f32 %v3086_v7, %v2946_v63  ;;  %v3852_v56 = vmul.f32 %v7216_v19, %v7357_v51  ;;  %v7377_v20 = vmul.f32 %v7216_v19, %v7359_v34 }
 0x179   : > { %v3640_v54 = vrot.slane %v3540_v29, 2  ;;  %v3813_v16 = vadd.f32 %v3781_v10, %v3745_v39  ;;  %v3951_v50 = vsel %vm710_vm3, %v3948_v37, %v3950_v17  ;;  %v4096_v47 = vmul.f32 %v7222_v52, %v7357_v51 }
 0x17a   : > { %v3641_v11 = vrot.slane %v3541_v61, 2  ;;  %v4195_v60 = vsel %vm955_vm4, %v4192_v40, %v4194_v57  ;;  %v3258_v8 = vadd.f32 %v3226_v32, %v3190_v4  ;;  %v3782_v25 = vmul.f32 %v7188_v41, %v7357_v51 }
 0x17b   : > { %v7391_v31 = vmul.f32 %v7222_v52, %v7359_v34  ;;  %v4057_v10 = vadd.f32 %v3951_v50, %v3813_v16  ;;  %v3398_v55 = vsel %vm710_vm3, %v3396_v0, %v3397_v35  ;;  %v3952_v37 = vrot.slane %v3852_v56, 1 }
 0x17c   : > { %v3953_v12 = vrot.slane %v7377_v20, 1  ;;  %v3502_v9 = vadd.f32 %v3398_v55, %v3258_v8  ;;  %v3642_v62 = vsel %vm955_vm4, %v3640_v54, %v3641_v11  ;;  %v4196_v1 = vrot.slane %v4096_v47, 2 }
 0x17d   : > { %v2742_v40 = vmul.f32 %v7148_v18, %v7212_v38  ;;  %v4301_v6 = vadd.f32 %v4195_v60, %v4057_v10  ;;  %v4197_v30 = vrot.slane %v7391_v31, 2  ;;  %v2986_v43 = vmul.f32 %v7151_v15, %v7212_v38 }
 0x17e   : > { %v3298_v21 = vmul.f32 %v7168_v42, %v7310_v49  ;;  %v3746_v17 = vadd.f32 %v3642_v62, %v3502_v9  ;;  %v2671_v26 = vmul.f32 %v7143_v14, %v7207_v44  ;;  %v3542_v45 = vmul.f32 %v7179_v27, %v7310_v49 }
 0x17f   : > { %v2843_v23 = vrot.slane %v2742_v40, 1  ;;  %5432 = vmatmul.mubr.msk.f32.gmra.mrb[34].mxu0 %vm331_vm0, %v4301_v6  ;;  %v3954_v58 = vsel %vm710_vm3, %v3952_v37, %v3953_v12  ;;  %v3087_v46 = vrot.slane %v2986_v43, 2  ;;  %v3854_v38 = vmul.f32 %v7216_v19, %v7396_v53  ;;  %v7449_v40 = vld [vmem:[#allocation2 + $0x78] sm:$0xff] }
 0x180   : > { %v3399_v57 = vrot.slane %v3298_v21, 1  ;;  %v3814_v13 = vadd.f32 %v3782_v25, %v3746_v17  ;;  %v3643_v28 = vrot.slane %v3542_v45, 2  ;;  %v4098_v44 = vmul.f32 %v7222_v52, %v7396_v53  ;;  %v7454_v21 = vld [vmem:[#allocation2 + $0x80] sm:$0xff] }
 0x181   : > { %v2844_v36 = vsel %vm710_vm3, %v2841_v59, %v2843_v23  ;;  %v4198_v33 = vsel %vm955_vm4, %v4196_v1, %v4197_v30  ;;  %v3227_v63 = vmul.f32 %v7157_v3, %v7280_v24  ;;  %v3783_v7 = vmul.f32 %v7188_v41, %v7359_v34 }
 0x182   : > { %v2947_v2 = vadd.f32 %v2844_v36, %v2671_v26  ;;  %v4058_v32 = vadd.f32 %v3954_v58, %v3814_v13  ;;  %v3088_v29 = vsel %vm955_vm4, %v3085_v48, %v3087_v46  ;;  %v3400_v59 = vsel %vm710_vm3, %v3397_v35, %v3399_v57 }
 0x183   : > { %v3955_v39 = vrot.slane %v3854_v38, 1  ;;  %v3644_v61 = vsel %vm955_vm4, %v3641_v11, %v3643_v28  ;;  %v2743_v4 = vmul.f32 %v7148_v18, %v7276_v5  ;;  %v7432_v54 = vmul.f32 %v7148_v18, %v7280_v24 }
 0x184   : > { %v3191_v0 = vadd.f32 %v3088_v29, %v2947_v2  ;;  %v4302_v56 = vadd.f32 %v4198_v33, %v4058_v32  ;;  %v4199_v16 = vrot.slane %v4098_v44, 2  ;;  %v2987_v50 = vmul.f32 %v7151_v15, %v7276_v5 }
 0x185   : > { %v7438_v48 = vmul.f32 %v7151_v15, %v7280_v24  ;;  %v5396_v35 = vpop.f32.mrb[12].mxu0  ;;  %v2672_v11 = vmul.f32 %v7143_v14, %v7276_v5  ;;  %v2845_v60 = vrot.slane %v2743_v4, 1  ;;  %v2846_v8 = vrot.slane %v7432_v54, 1 }
 0x186   : > { %v3259_v47 = vadd.f32 %v3227_v63, %v3191_v0  ;;  %v2448_v25 = vadd.f32 %v5396_v35, %v7109_v22  ;;  %v2442_v10 = vpop.f32.mrb[13].mxu0  ;;  %5434 = vmatprep.mubr.msk.f32.mxu0 %vm331_vm0, %v4302_v56  ;;  %v3089_v55 = vrot.slane %v2987_v50, 2  ;;  %v3299_v9 = vmul.f32 %v7168_v42, %v7357_v51 }
 0x187   : > { %v3090_v37 = vrot.slane %v7438_v48, 2  ;;  %v2443_v62 = vadd.f32 %v7109_v22, %v2442_v10  ;;  %v2847_v5 = vsel %vm710_vm3, %v2845_v60, %v2846_v8  ;;  %v3300_v6 = vmul.f32 %v7168_v42, %v7359_v34 }
 0x188   : > { %v3503_v1 = vadd.f32 %v3400_v59, %v3259_v47  ;;  %v2554_v43 = vmax.f32 %v2448_v25, 0.0  ;;  %v2948_v17 = vadd.f32 %v2847_v5, %v2672_v11  ;;  %v3401_v23 = vrot.slane %v3299_v9, 1  ;;  %v7489_v47 = vld [vmem:[#allocation2 + $0x88] sm:$0x3] }
 0x189   : > { %v3091_v26 = vsel %vm955_vm4, %v3089_v55, %v3090_v37  ;;  %v2553_v45 = vmax.f32 %v2443_v62, 0.0  ;;  %v3402_v46 = vrot.slane %v3300_v6, 1  ;;  %v3543_v57 = vmul.f32 %v7179_v27, %v7357_v51 }
 0x18a   : > { %v3747_v58 = vadd.f32 %v3644_v61, %v3503_v1  ;;  %2586 = vst.msk [vmem:[#allocation2 + $0xb1] sm:$0xff] %vm331_vm0, %v2554_v43  ;;  %v3192_v38 = vadd.f32 %v3091_v26, %v2948_v17  ;;  %v3228_v13 = vmul.f32 %v7157_v3, %v7357_v51  ;;  %v3544_v36 = vmul.f32 %v7179_v27, %v7359_v34 }
 0x18b   : > { %v3855_v28 = vmul.f32 %v7216_v19, %v7449_v40  ;;  %2585 = vst.msk [vmem:[#allocation2 + $0xa9] sm:$0xff] %vm331_vm0, %v2553_v45  ;;  %v3956_v33 = vsel %vm710_vm3, %v3953_v12, %v3955_v39  ;;  %v3645_v2 = vrot.slane %v3543_v57, 2  ;;  %v7472_v63 = vmul.f32 %v7216_v19, %v7454_v21 }
 0x18c   : > { %v3815_v44 = vadd.f32 %v3783_v7, %v3747_v58  ;;  %v3260_v32 = vadd.f32 %v3228_v13, %v3192_v38  ;;  %v3403_v29 = vsel %vm710_vm3, %v3401_v23, %v3402_v46  ;;  %v3646_v59 = vrot.slane %v3544_v36, 2 }
 0x18d   : > { %v4099_v0 = vmul.f32 %v7222_v52, %v7449_v40  ;;  %v3957_v4 = vrot.slane %v3855_v28, 1  ;;  %v3958_v7 = vrot.slane %v7472_v63, 1  ;;  %v7480_v20 = vmul.f32 %v7222_v52, %v7454_v21 }
 0x18e   : > { %v4059_v61 = vadd.f32 %v3956_v33, %v3815_v44  ;;  %v4200_v12 = vsel %vm955_vm4, %v4197_v30, %v4199_v16  ;;  %v3504_v39 = vadd.f32 %v3403_v29, %v3260_v32  ;;  %v3647_v54 = vsel %vm955_vm4, %v3645_v2, %v3646_v59 }
 0x18f   : > { %v2745_v56 = vmul.f32 %v7148_v18, %v7310_v49  ;;  %v4201_v48 = vrot.slane %v4099_v0, 2  ;;  %v4202_v35 = vrot.slane %v7480_v20, 2  ;;  %v2989_v11 = vmul.f32 %v7151_v15, %v7310_v49  ;;  %v7580_v20 = vld [vmem:[#allocation2 + $0xa0] sm:$0x3] }
 0x190   : > { %v4303_v50 = vadd.f32 %v4200_v12, %v4059_v61  ;;  %v3748_v60 = vadd.f32 %v3647_v54, %v3504_v39  ;;  %v3784_v31 = vmul.f32 %v7188_v41, %v7449_v40  ;;  %v3301_v16 = vmul.f32 %v7168_v42, %v7396_v53 }
 0x191   : > { %v2848_v30 = vrot.slane %v2745_v56, 1  ;;  %v3959_v25 = vsel %vm710_vm3, %v3957_v4, %v3958_v7  ;;  %v2673_v10 = vmul.f32 %v7143_v14, %v7280_v24  ;;  %v3092_v55 = vrot.slane %v2989_v11, 2 }
 0x192   : > { %5435 = vmatmul.mubr.msk.f32.gmra.mrb[36].mxu0 %vm331_vm0, %v4303_v50  ;;  %v3545_v49 = vmul.f32 %v7179_v27, %v7396_v53  ;;  %v3816_v9 = vadd.f32 %v3784_v31, %v3748_v60  ;;  %v3404_v1 = vrot.slane %v3301_v16, 1  ;;  %v3857_v5 = vmul.f32 %v7216_v19, %v7489_v47  ;;  %v7548_v16 = vld [vmem:[#allocation2 + $0x98] sm:$0xff] }
 0x193   : > { %v2849_v62 = vsel %vm710_vm3, %v2846_v8, %v2848_v30  ;;  %v4203_v6 = vsel %vm955_vm4, %v4201_v48, %v4202_v35  ;;  %v3229_v17 = vmul.f32 %v7157_v3, %v7359_v34  ;;  %v3093_v23 = vsel %vm955_vm4, %v3090_v37, %v3092_v55 }
 0x194   : > { %v2949_v43 = vadd.f32 %v2849_v62, %v2673_v10  ;;  %v3648_v24 = vrot.slane %v3545_v49, 2  ;;  %v4060_v26 = vadd.f32 %v3959_v25, %v3816_v9  ;;  %v3785_v45 = vmul.f32 %v7188_v41, %v7454_v21 }
 0x195   : > { %v4101_v8 = vmul.f32 %v7222_v52, %v7489_v47  ;;  %v5399_v58 = vpop.f32.mrb[14].mxu0  ;;  %v3405_v38 = vsel %vm710_vm3, %v3402_v46, %v3404_v1  ;;  %v3960_v13 = vrot.slane %v3857_v5, 1  ;;  %v2746_v36 = vmul.f32 %v7148_v18, %v7357_v51 }
 0x196   : > { %v3193_v57 = vadd.f32 %v3093_v23, %v2949_v43  ;;  %v2458_v28 = vadd.f32 %v5399_v58, %v7109_v22  ;;  %v2452_v44 = vpop.f32.mrb[15].mxu0  ;;  %v4304_v33 = vadd.f32 %v4203_v6, %v4060_v26  ;;  %v2674_v37 = vmul.f32 %v7143_v14, %v7357_v51 }
 0x197   : > { %v7526_v2 = vmul.f32 %v7148_v18, %v7359_v34  ;;  %v2453_v32 = vadd.f32 %v7109_v22, %v2452_v44  ;;  %v3649_v46 = vsel %vm955_vm4, %v3646_v59, %v3648_v24  ;;  %v2850_v0 = vrot.slane %v2746_v36, 1  ;;  %v7541_v59 = vld [vmem:[#allocation2 + $0x90] sm:$0xff] }
 0x198   : > { %v3261_v29 = vadd.f32 %v3229_v17, %v3193_v57  ;;  %v2556_v61 = vmax.f32 %v2458_v28, 0.0  ;;  %5437 = vmatprep.mubr.msk.f32.mxu0 %vm331_vm0, %v4304_v33  ;;  %v2990_v12 = vmul.f32 %v7151_v15, %v7357_v51  ;;  %v7536_v39 = vmul.f32 %v7151_v15, %v7359_v34 }
 0x199   : > { %v2851_v4 = vrot.slane %v7526_v2, 1  ;;  %v2555_v54 = vmax.f32 %v2453_v32, 0.0  ;;  %v4204_v50 = vrot.slane %v4101_v8, 2  ;;  %v3302_v48 = vmul.f32 %v7168_v42, %v7449_v40 }
 0x19a   : > { %v3505_v56 = vadd.f32 %v3405_v38, %v3261_v29  ;;  %2588 = vst.msk [vmem:[#allocation2 + $0xc9] sm:$0xff] %vm331_vm0, %v2556_v61  ;;  %v3094_v60 = vrot.slane %v2990_v12, 2  ;;  %v3095_v31 = vrot.slane %v7536_v39, 2  ;;  %v3303_v51 = vmul.f32 %v7168_v42, %v7454_v21 }
 0x19b   : > { %v2852_v11 = vsel %vm710_vm3, %v2850_v0, %v2851_v4  ;;  %2587 = vst.msk [vmem:[#allocation2 + $0xc1] sm:$0xff] %vm331_vm0, %v2555_v54  ;;  %v3230_v10 = vmul.f32 %v7157_v3, %v7449_v40  ;;  %v3546_v55 = vmul.f32 %v7179_v27, %v7449_v40  ;;  %v3406_v9 = vrot.slane %v3302_v48, 1 }
 0x19c   : > { %v3749_v30 = vadd.f32 %v3649_v46, %v3505_v56  ;;  %v2950_v25 = vadd.f32 %v2852_v11, %v2674_v37  ;;  %v3096_v49 = vsel %vm955_vm4, %v3094_v60, %v3095_v31  ;;  %v3407_v62 = vrot.slane %v3303_v51, 1 }
 0x19d   : > { %v3547_v1 = vmul.f32 %v7179_v27, %v7454_v21  ;;  %v3650_v43 = vrot.slane %v3546_v55, 2  ;;  %v3858_v17 = vmul.f32 %v7216_v19, %v7541_v59  ;;  %v3961_v24 = vsel %vm710_vm3, %v3958_v7, %v3960_v13 }
 0x19e   : > { %v3817_v5 = vadd.f32 %v3785_v45, %v3749_v30  ;;  %v3194_v6 = vadd.f32 %v3096_v49, %v2950_v25  ;;  %v7564_v23 = vmul.f32 %v7216_v19, %v7548_v16  ;;  %v4102_v8 = vmul.f32 %v7222_v52, %v7541_v59 }
 0x19f   : > { %v3651_v26 = vrot.slane %v3547_v1, 2  ;;  %v4205_v45 = vsel %vm955_vm4, %v4202_v35, %v4204_v50  ;;  %v7573_v38 = vmul.f32 %v7222_v52, %v7548_v16  ;;  %v3408_v63 = vsel %vm710_vm3, %v3406_v9, %v3407_v62 }
 0x1a0   : > { %v4061_v58 = vadd.f32 %v3961_v24, %v3817_v5  ;;  %v3262_v57 = vadd.f32 %v3230_v10, %v3194_v6  ;;  %v3786_v7 = vmul.f32 %v7188_v41, %v7541_v59  ;;  %v3962_v13 = vrot.slane %v3858_v17, 1 }
 0x1a1   : > { %v3963_v36 = vrot.slane %v7564_v23, 1  ;;  %v3652_v33 = vsel %vm955_vm4, %v3650_v43, %v3651_v26  ;;  %v2748_v35 = vmul.f32 %v7148_v18, %v7396_v53  ;;  %v4206_v37 = vrot.slane %v4102_v8, 2 }
 0x1a2   : > { %v4305_v28 = vadd.f32 %v4205_v45, %v4061_v58  ;;  %v3506_v44 = vadd.f32 %v3408_v63, %v3262_v57  ;;  %v4207_v2 = vrot.slane %v7573_v38, 2  ;;  %v2992_v32 = vmul.f32 %v7151_v15, %v7396_v53 }
 0x1a3   : > { %v3304_v29 = vmul.f32 %v7168_v42, %v7489_v47  ;;  %v2675_v0 = vmul.f32 %v7143_v14, %v7359_v34  ;;  %v2853_v61 = vrot.slane %v2748_v35, 1  ;;  %v3548_v12 = vmul.f32 %v7179_v27, %v7489_v47 }
 0x1a4   : > { %5438 = vmatmul.mubr.msk.f32.gmra.mrb[38].mxu0 %vm331_vm0, %v4305_v28  ;;  %v3750_v46 = vadd.f32 %v3652_v33, %v3506_v44  ;;  %v3964_v39 = vsel %vm710_vm3, %v3962_v13, %v3963_v36  ;;  %v3097_v54 = vrot.slane %v2992_v32, 2  ;;  %v3860_v53 = vmul.f32 %v7216_v19, %v7580_v20 }
 0x1a5   : > { %v3409_v56 = vrot.slane %v3304_v29, 1  ;;  %v2854_v48 = vsel %vm710_vm3, %v2851_v4, %v2853_v61  ;;  %v3653_v11 = vrot.slane %v3548_v12, 2  ;;  %v4104_v34 = vmul.f32 %v7222_v52, %v7580_v20  ;;  %v7651_v12 = vld [vmem:[#allocation2 + $0xb0] sm:$0xff] }
 0x1a6   : > { %v3818_v50 = vadd.f32 %v3786_v7, %v3750_v46  ;;  %v4208_v60 = vsel %vm955_vm4, %v4206_v37, %v4207_v2  ;;  %v2951_v51 = vadd.f32 %v2854_v48, %v2675_v0  ;;  %v3231_v30 = vmul.f32 %v7157_v3, %v7454_v21  ;;  %v7636_v37 = vld [vmem:[#allocation2 + $0xa8] sm:$0xff]  ;;  %v7649_v0 = vld [vmem:[%s8892_s7] sm:$0xff] }
 0x1a7   : > { %v3787_v25 = vmul.f32 %v7188_v41, %v7548_v16  ;;  %v3098_v49 = vsel %vm955_vm4, %v3095_v31, %v3097_v54  ;;  %v3410_v4 = vsel %vm710_vm3, %v3407_v62, %v3409_v56  ;;  %v3965_v9 = vrot.slane %v3860_v53, 1  ;;  %5476 = vmatprep.subr.mxu1 %v7649_v0 }
 0x1a8   : > { %v5402_v10 = vpop.f32.mrb[16].mxu0  ;;  %v4062_v55 = vadd.f32 %v3964_v39, %v3818_v50  ;;  %v3195_v6 = vadd.f32 %v3098_v49, %v2951_v51  ;;  %v3654_v43 = vsel %vm955_vm4, %v3651_v26, %v3653_v11  ;;  %v2749_v17 = vmul.f32 %v7148_v18, %v7449_v40 }
 0x1a9   : > { %v2468_v1 = vadd.f32 %v5402_v10, %v7109_v22  ;;  %v2462_v5 = vpop.f32.mrb[17].mxu0  ;;  %v4209_v58 = vrot.slane %v4104_v34, 2  ;;  %v7618_v45 = vmul.f32 %v7148_v18, %v7454_v21  ;;  %v2993_v63 = vmul.f32 %v7151_v15, %v7449_v40 }
 0x1aa   : > { %v2463_v24 = vadd.f32 %v7109_v22, %v2462_v5  ;;  %v4306_v8 = vadd.f32 %v4208_v60, %v4062_v55  ;;  %v3263_v62 = vadd.f32 %v3231_v30, %v3195_v6  ;;  %v2855_v57 = vrot.slane %v2749_v17, 1 }
 0x1ab   : > { %v2558_v31 = vmax.f32 %v2468_v1, 0.0  ;;  %v2676_v26 = vmul.f32 %v7143_v14, %v7449_v40  ;;  %v2856_v22 = vrot.slane %v7618_v45, 1  ;;  %v7628_v13 = vmul.f32 %v7151_v15, %v7454_v21 }
 0x1ac   : > { %v2557_v7 = vmax.f32 %v2463_v24, 0.0  ;;  %5440 = vmatprep.mubr.msk.f32.mxu0 %vm331_vm0, %v4306_v8  ;;  %v3507_v28 = vadd.f32 %v3410_v4, %v3263_v62  ;;  %v3099_v44 = vrot.slane %v2993_v63, 2  ;;  %v3305_v33 = vmul.f32 %v7168_v42, %v7541_v59  ;;  %v7683_v24 = vld [vmem:[#allocation2 + $0xb8] sm:$0x3] }
 0x1ad   : > { %2590 = vst.msk [vmem:[#allocation2 + $0xe1] sm:$0xff] %vm331_vm0, %v2558_v31  ;;  %v3306_v35 = vmul.f32 %v7168_v42, %v7548_v16  ;;  %v2857_v40 = vsel %vm710_vm3, %v2855_v57, %v2856_v22  ;;  %v3100_v32 = vrot.slane %v7628_v13, 2  ;;  %v3549_v29 = vmul.f32 %v7179_v27, %v7541_v59 }
 0x1ae   : > { %2589 = vst.msk [vmem:[#allocation2 + $0xd9] sm:$0xff] %vm331_vm0, %v2557_v7  ;;  %v7644_v46 = vmul.f32 %v7179_v27, %v7548_v16  ;;  %v3751_v61 = vadd.f32 %v3654_v43, %v3507_v28  ;;  %v2952_v39 = vadd.f32 %v2857_v40, %v2676_v26  ;;  %v3411_v54 = vrot.slane %v3305_v33, 1 }
 0x1af   : > { %v3412_v56 = vrot.slane %v3306_v35, 1  ;;  %v3966_v53 = vsel %vm710_vm3, %v3963_v36, %v3965_v9  ;;  %v4210_v50 = vsel %vm955_vm4, %v4207_v2, %v4209_v58  ;;  %v3101_v48 = vsel %vm955_vm4, %v3099_v44, %v3100_v32 }
 0x1b0   : > { %v3232_v11 = vmul.f32 %v7157_v3, %v7541_v59  ;;  %v3819_v34 = vadd.f32 %v3787_v25, %v3751_v61  ;;  %v3196_v60 = vadd.f32 %v3101_v48, %v2952_v39  ;;  %v3655_v51 = vrot.slane %v3549_v29, 2 }
 0x1b1   : > { %v3861_v30 = vmul.f32 %v7216_v19, %v7636_v37  ;;  %v3656_v10 = vrot.slane %v7644_v46, 2  ;;  %v7668_v23 = vmul.f32 %v7216_v19, %v7651_v12  ;;  %v4105_v38 = vmul.f32 %v7222_v52, %v7636_v37 }
 0x1b2   : > { %v7674_v36 = vmul.f32 %v7222_v52, %v7651_v12  ;;  %v4063_v2 = vadd.f32 %v3966_v53, %v3819_v34  ;;  %v3264_v25 = vadd.f32 %v3232_v11, %v3196_v60  ;;  %v3413_v55 = vsel %vm710_vm3, %v3411_v54, %v3412_v56  ;;  %v7717_v11 = vld [vmem:[%s8888_s3] ss:$0 sm:$0xff] }
 0x1b3   : > { %v3788_v49 = vmul.f32 %v7188_v41, %v7636_v37  ;;  %v3967_v4 = vrot.slane %v3861_v30, 1  ;;  %v3968_v9 = vrot.slane %v7668_v23, 1  ;;  %v4211_v1 = vrot.slane %v4105_v38, 2 }
 0x1b4   : > { %v2751_v5 = vmul.f32 %v7148_v18, %v7489_v47  ;;  %v4307_v6 = vadd.f32 %v4210_v50, %v4063_v2  ;;  %v3508_v43 = vadd.f32 %v3413_v55, %v3264_v25  ;;  %v4212_v17 = vrot.slane %v7674_v36, 2 }
 0x1b5   : > { %v2995_v8 = vmul.f32 %v7151_v15, %v7489_v47  ;;  %v3657_v58 = vsel %vm955_vm4, %v3655_v51, %v3656_v10  ;;  %v2677_v45 = vmul.f32 %v7143_v14, %v7454_v21  ;;  %v3307_v62 = vmul.f32 %v7168_v42, %v7580_v20 }
 0x1b6   : > { %v2858_v31 = vrot.slane %v2751_v5, 1  ;;  %5441 = vmatmul.mubr.msk.f32.gmra.mrb[40].mxu0 %vm331_vm0, %v4307_v6  ;;  %v3752_v57 = vadd.f32 %v3657_v58, %v3508_v43  ;;  %v3233_v7 = vmul.f32 %v7157_v3, %v7548_v16  ;;  %v3551_v26 = vmul.f32 %v7179_v27, %v7580_v20  ;;  %v7739_v58 = vld [vmem:[#allocation2 + $0xc0] sm:$0xff] }
 0x1b7   : > { %v3102_v63 = vrot.slane %v2995_v8, 2  ;;  %v3414_v13 = vrot.slane %v3307_v62, 1  ;;  %v3863_v21 = vmul.f32 %v7216_v19, %v7683_v24  ;;  %v4107_v28 = vmul.f32 %v7222_v52, %v7683_v24 }
 0x1b8   : > { %v2859_v47 = vsel %vm710_vm3, %v2856_v22, %v2858_v31  ;;  %v3820_v44 = vadd.f32 %v3788_v49, %v3752_v57  ;;  %v3969_v33 = vsel %vm710_vm3, %v3967_v4, %v3968_v9  ;;  %v4213_v35 = vsel %vm955_vm4, %v4211_v1, %v4212_v17 }
 0x1b9   : > { %v2953_v40 = vadd.f32 %v2859_v47, %v2677_v45  ;;  %v3103_v29 = vsel %vm955_vm4, %v3100_v32, %v3102_v63  ;;  %v3415_v22 = vsel %vm710_vm3, %v3412_v56, %v3414_v13  ;;  %v3658_v46 = vrot.slane %v3551_v26, 2 }
 0x1ba   : > { %v3789_v61 = vmul.f32 %v7188_v41, %v7651_v12  ;;  %v5405_v39 = vpop.f32.mrb[18].mxu0  ;;  %v4064_v54 = vadd.f32 %v3969_v33, %v3820_v44  ;;  %v3970_v50 = vrot.slane %v3863_v21, 1  ;;  %v2752_v48 = vmul.f32 %v7148_v18, %v7541_v59 }
 0x1bb   : > { %v3197_v53 = vadd.f32 %v3103_v29, %v2953_v40  ;;  %v2478_v32 = vadd.f32 %v7717_v11, %v5405_v39  ;;  %v2472_v34 = vpop.f32.mrb[19].mxu0  ;;  %v4214_v56 = vrot.slane %v4107_v28, 2  ;;  %v2678_v60 = vmul.f32 %v7143_v14, %v7541_v59 }
 0x1bc   : > { %v7724_v51 = vmul.f32 %v7148_v18, %v7548_v16  ;;  %v2473_v30 = vadd.f32 %v7717_v11, %v2472_v34  ;;  %v4308_v38 = vadd.f32 %v4213_v35, %v4064_v54  ;;  %v2860_v25 = vrot.slane %v2752_v48, 1 }
 0x1bd   : > { %v3265_v2 = vadd.f32 %v3233_v7, %v3197_v53  ;;  %v2560_v55 = vmax.f32 %v2478_v32, 0.0  ;;  %v2996_v4 = vmul.f32 %v7151_v15, %v7541_v59  ;;  %v7732_v1 = vmul.f32 %v7151_v15, %v7548_v16 }
 0x1be   : > { %v2861_v49 = vrot.slane %v7724_v51, 1  ;;  %v2559_v5 = vmax.f32 %v2473_v30, 0.0  ;;  %5443 = vmatprep.mubr.msk.f32.mxu0 %vm331_vm0, %v4308_v38  ;;  %v3659_v43 = vsel %vm955_vm4, %v3656_v10, %v3658_v46  ;;  %v3308_v8 = vmul.f32 %v7168_v42, %v7636_v37  ;;  %v7748_v10 = vld [vmem:[#allocation2 + $0xc8] sm:$0xff]  ;;  %v7778_v30 = vld [vmem:[#allocation2 + $0xd0] sm:$0x3] }
 0x1bf   : > { %v3509_v6 = vadd.f32 %v3415_v22, %v3265_v2  ;;  %2592 = vst.msk [vmem:[#allocation2 + $0xf9] sm:$0xff] %vm331_vm0, %v2560_v55  ;;  %v3104_v59 = vrot.slane %v2996_v4, 2  ;;  %v3105_v31 = vrot.slane %v7732_v1, 2  ;;  %v7745_v62 = vmul.f32 %v7168_v42, %v7651_v12 }
 0x1c0   : > { %v2862_v45 = vsel %vm710_vm3, %v2860_v25, %v2861_v49  ;;  %2591 = vst.msk [vmem:[#allocation2 + $0xf1] sm:$0xff] %vm331_vm0, %v2559_v5  ;;  %v3234_v7 = vmul.f32 %v7157_v3, %v7636_v37  ;;  %v3552_v26 = vmul.f32 %v7179_v27, %v7636_v37  ;;  %v3416_v13 = vrot.slane %v3308_v8, 1 }
 0x1c1   : > { %v3753_v57 = vadd.f32 %v3659_v43, %v3509_v6  ;;  %v2954_v63 = vadd.f32 %v2862_v45, %v2678_v60  ;;  %v3106_v47 = vsel %vm955_vm4, %v3104_v59, %v3105_v31  ;;  %v3417_v21 = vrot.slane %v7745_v62, 1 }
 0x1c2   : > { %v3553_v28 = vmul.f32 %v7179_v27, %v7651_v12  ;;  %v3660_v35 = vrot.slane %v3552_v26, 2  ;;  %v3864_v40 = vmul.f32 %v7216_v19, %v7739_v58  ;;  %v3971_v29 = vsel %vm710_vm3, %v3968_v9, %v3970_v50 }
 0x1c3   : > { %v3821_v44 = vadd.f32 %v3789_v61, %v3753_v57  ;;  %v3198_v33 = vadd.f32 %v3106_v47, %v2954_v63  ;;  %v3865_v46 = vmul.f32 %v7216_v19, %v7748_v10  ;;  %v4108_v39 = vmul.f32 %v7222_v52, %v7739_v58 }
 0x1c4   : > { %v3661_v22 = vrot.slane %v3553_v28, 2  ;;  %v4215_v61 = vsel %vm955_vm4, %v4212_v17, %v4214_v56  ;;  %v7772_v48 = vmul.f32 %v7222_v52, %v7748_v10  ;;  %v3418_v23 = vsel %vm710_vm3, %v3416_v13, %v3417_v21 }
 0x1c5   : > { %v4065_v54 = vadd.f32 %v3971_v29, %v3821_v44  ;;  %v3266_v53 = vadd.f32 %v3234_v7, %v3198_v33  ;;  %v3790_v9 = vmul.f32 %v7188_v41, %v7739_v58  ;;  %v3972_v50 = vrot.slane %v3864_v40, 1 }
 0x1c6   : > { %v3973_v32 = vrot.slane %v3865_v46, 1  ;;  %v3662_v51 = vsel %vm955_vm4, %v3660_v35, %v3661_v22  ;;  %v2754_v36 = vmul.f32 %v7148_v18, %v7580_v20  ;;  %v4216_v17 = vrot.slane %v4108_v39, 2 }
 0x1c7   : > { %v4309_v34 = vadd.f32 %v4215_v61, %v4065_v54  ;;  %v3510_v60 = vadd.f32 %v3418_v23, %v3266_v53  ;;  %v4217_v56 = vrot.slane %v7772_v48, 2  ;;  %v2998_v38 = vmul.f32 %v7151_v15, %v7580_v20 }
 0x1c8   : > { %v3310_v2 = vmul.f32 %v7168_v42, %v7683_v24  ;;  %v2679_v55 = vmul.f32 %v7143_v14, %v7548_v16  ;;  %v2863_v4 = vrot.slane %v2754_v36, 1  ;;  %v3554_v1 = vmul.f32 %v7179_v27, %v7683_v24 }
 0x1c9   : > { %5444 = vmatmul.mubr.msk.f32.gmra.mrb[42].mxu0 %vm331_vm0, %v4309_v34  ;;  %v3754_v25 = vadd.f32 %v3662_v51, %v3510_v60  ;;  %v3974_v5 = vsel %vm710_vm3, %v3972_v50, %v3973_v32  ;;  %v3107_v6 = vrot.slane %v2998_v38, 2  ;;  %v3866_v20 = vmul.f32 %v7216_v19, %v7778_v30  ;;  %v7826_v38 = vld [vmem:[#allocation2 + $0xe0] sm:$0xff] }
 0x1ca   : > { %v3419_v43 = vrot.slane %v3310_v2, 1  ;;  %v2864_v45 = vsel %vm710_vm3, %v2861_v49, %v2863_v4  ;;  %v3663_v59 = vrot.slane %v3554_v1, 2  ;;  %v4110_v62 = vmul.f32 %v7222_v52, %v7778_v30 }
 0x1cb   : > { %v3822_v8 = vadd.f32 %v3790_v9, %v3754_v25  ;;  %v4218_v16 = vsel %vm955_vm4, %v4216_v17, %v4217_v56  ;;  %v2955_v63 = vadd.f32 %v2864_v45, %v2679_v55  ;;  %v3235_v7 = vmul.f32 %v7157_v3, %v7651_v12  ;;  %v7824_v17 = vld [vmem:[#allocation2 + $0xd8] sm:$0xff] }
 0x1cc   : > { %v5408_v57 = vpop.f32.mrb[20].mxu0  ;;  %v3791_v26 = vmul.f32 %v7188_v41, %v7748_v10  ;;  %v3108_v49 = vsel %vm955_vm4, %v3105_v31, %v3107_v6  ;;  %v3975_v44 = vrot.slane %v3866_v20, 1  ;;  %v3420_v40 = vsel %vm710_vm3, %v3417_v21, %v3419_v43 }
 0x1cd   : > { %v2488_v47 = vadd.f32 %v7717_v11, %v5408_v57  ;;  %v2482_v13 = vpop.f32.mrb[21].mxu0  ;;  %v4066_v28 = vadd.f32 %v3974_v5, %v3822_v8  ;;  %v3199_v35 = vadd.f32 %v3108_v49, %v2955_v63  ;;  %v3664_v29 = vsel %vm955_vm4, %v3661_v22, %v3663_v59 }
 0x1ce   : > { %v2483_v33 = vadd.f32 %v7717_v11, %v2482_v13  ;;  %v4219_v54 = vrot.slane %v4110_v62, 2  ;;  %v2755_v61 = vmul.f32 %v7148_v18, %v7636_v37  ;;  %v2756_v23 = vmul.f32 %v7148_v18, %v7651_v12 }
 0x1cf   : > { %v2562_v46 = vmax.f32 %v2488_v47, 0.0  ;;  %v4310_v39 = vadd.f32 %v4218_v16, %v4066_v28  ;;  %v3267_v48 = vadd.f32 %v3235_v7, %v3199_v35  ;;  %v2999_v31 = vmul.f32 %v7151_v15, %v7636_v37  ;;  %v7861_v35 = vld [vmem:[#allocation2 + $0xe8] sm:$0x3] }
 0x1d0   : > { %v2561_v53 = vmax.f32 %v2483_v33, 0.0  ;;  %v3976_v21 = vsel %vm710_vm3, %v3973_v32, %v3975_v44  ;;  %v2865_v22 = vrot.slane %v2755_v61, 1  ;;  %v3000_v9 = vmul.f32 %v7151_v15, %v7651_v12 }
 0x1d1   : > { %2594 = vst.msk [vmem:[#allocation2 + $0x111] sm:$0xff] %vm331_vm0, %v2562_v46  ;;  %5446 = vmatprep.mubr.msk.f32.mxu0 %vm331_vm0, %v4310_v39  ;;  %v3311_v50 = vmul.f32 %v7168_v42, %v7739_v58  ;;  %v3511_v34 = vadd.f32 %v3420_v40, %v3267_v48  ;;  %v2866_v60 = vrot.slane %v2756_v23, 1  ;;  %v3109_v51 = vrot.slane %v2999_v31, 2 }
 0x1d2   : > { %2593 = vst.msk [vmem:[#allocation2 + $0x109] sm:$0xff] %vm331_vm0, %v2561_v53  ;;  %v3312_v36 = vmul.f32 %v7168_v42, %v7748_v10  ;;  %v2680_v32 = vmul.f32 %v7143_v14, %v7636_v37  ;;  %v3110_v2 = vrot.slane %v3000_v9, 2  ;;  %v3555_v25 = vmul.f32 %v7179_v27, %v7739_v58 }
 0x1d3   : > { %v7834_v55 = vmul.f32 %v7179_v27, %v7748_v10  ;;  %v3755_v4 = vadd.f32 %v3664_v29, %v3511_v34  ;;  %v4220_v1 = vsel %vm955_vm4, %v4217_v56, %v4219_v54  ;;  %v2867_v5 = vsel %vm710_vm3, %v2865_v22, %v2866_v60 }
 0x1d4   : > { %v3421_v6 = vrot.slane %v3311_v50, 1  ;;  %v2956_v43 = vadd.f32 %v2867_v5, %v2680_v32  ;;  %v3422_v20 = vrot.slane %v3312_v36, 1  ;;  %v3665_v8 = vrot.slane %v3555_v25, 2 }
 0x1d5   : > { %v3666_v45 = vrot.slane %v7834_v55, 2  ;;  %v3823_v37 = vadd.f32 %v3791_v26, %v3755_v4  ;;  %v3111_v59 = vsel %vm955_vm4, %v3109_v51, %v3110_v2  ;;  %v3867_v62 = vmul.f32 %v7216_v19, %v7824_v17 }
 0x1d6   : > { %v7844_v57 = vmul.f32 %v7216_v19, %v7826_v38  ;;  %v3200_v16 = vadd.f32 %v3111_v59, %v2956_v43  ;;  %v3236_v56 = vmul.f32 %v7157_v3, %v7739_v58  ;;  %v4111_v63 = vmul.f32 %v7222_v52, %v7824_v17 }
 0x1d7   : > { %v7852_v7 = vmul.f32 %v7222_v52, %v7826_v38  ;;  %v4067_v26 = vadd.f32 %v3976_v21, %v3823_v37  ;;  %v3792_v47 = vmul.f32 %v7188_v41, %v7824_v17  ;;  %v3977_v13 = vrot.slane %v3867_v62, 1 }
 0x1d8   : > { %v3978_v28 = vrot.slane %v7844_v57, 1  ;;  %v3268_v49 = vadd.f32 %v3236_v56, %v3200_v16  ;;  %v3423_v44 = vsel %vm710_vm3, %v3421_v6, %v3422_v20  ;;  %v3667_v33 = vsel %vm955_vm4, %v3665_v8, %v3666_v45 }
 0x1d9   : > { %v2757_v40 = vmul.f32 %v7148_v18, %v7683_v24  ;;  %v4311_v29 = vadd.f32 %v4220_v1, %v4067_v26  ;;  %v4221_v46 = vrot.slane %v4111_v63, 2  ;;  %v4222_v39 = vrot.slane %v7852_v7, 2 }
 0x1da   : > { %v3001_v54 = vmul.f32 %v7151_v15, %v7683_v24  ;;  %v3512_v61 = vadd.f32 %v3423_v44, %v3268_v49  ;;  %v2681_v53 = vmul.f32 %v7143_v14, %v7651_v12  ;;  %v3313_v23 = vmul.f32 %v7168_v42, %v7778_v30 }
 0x1db   : > { %v2868_v48 = vrot.slane %v2757_v40, 1  ;;  %5447 = vmatmul.mubr.msk.f32.gmra.mrb[44].mxu0 %vm331_vm0, %v4311_v29  ;;  %v3979_v31 = vsel %vm710_vm3, %v3977_v13, %v3978_v28  ;;  %v3557_v22 = vmul.f32 %v7179_v27, %v7778_v30  ;;  %v3869_v24 = vmul.f32 %v7216_v19, %v7861_v35 }
 0x1dc   : > { %v3112_v21 = vrot.slane %v3001_v54, 2  ;;  %v3756_v9 = vadd.f32 %v3667_v33, %v3512_v61  ;;  %v3424_v50 = vrot.slane %v3313_v23, 1  ;;  %v4113_v34 = vmul.f32 %v7222_v52, %v7861_v35 }
 0x1dd   : > { %v2869_v12 = vsel %vm710_vm3, %v2866_v60, %v2868_v48  ;;  %v4223_v51 = vsel %vm955_vm4, %v4221_v46, %v4222_v39  ;;  %v3237_v32 = vmul.f32 %v7157_v3, %v7748_v10  ;;  %v3793_v25 = vmul.f32 %v7188_v41, %v7826_v38 }
 0x1de   : > { %v2957_v36 = vadd.f32 %v2869_v12, %v2681_v53  ;;  %v3824_v4 = vadd.f32 %v3792_v47, %v3756_v9  ;;  %v3113_v1 = vsel %vm955_vm4, %v3110_v2, %v3112_v21  ;;  %v3668_v5 = vrot.slane %v3557_v22, 2 }
 0x1df   : > { %v3980_v60 = vrot.slane %v3869_v24, 1  ;;  %v5411_v6 = vpop.f32.mrb[22].mxu0  ;;  %v3425_v8 = vsel %vm710_vm3, %v3422_v20, %v3424_v50  ;;  %v4224_v37 = vrot.slane %v4113_v34, 2  ;;  %v2758_v59 = vmul.f32 %v7148_v18, %v7739_v58 }
 0x1e0   : > { %v3201_v43 = vadd.f32 %v3113_v1, %v2957_v36  ;;  %v2498_v62 = vadd.f32 %v7717_v11, %v5411_v6  ;;  %v2492_v16 = vpop.f32.mrb[23].mxu0  ;;  %v4068_v56 = vadd.f32 %v3979_v31, %v3824_v4  ;;  %v2682_v63 = vmul.f32 %v7143_v14, %v7739_v58  ;;  %v7925_v31 = vld [vmem:[#allocation2 + $0xf8] sm:$0xff] }
 0x1e1   : > { %v7899_v2 = vmul.f32 %v7148_v18, %v7748_v10  ;;  %v2493_v26 = vadd.f32 %v7717_v11, %v2492_v16  ;;  %v2870_v13 = vrot.slane %v2758_v59, 1  ;;  %v3002_v20 = vmul.f32 %v7151_v15, %v7739_v58 }
 0x1e2   : > { %v3269_v47 = vadd.f32 %v3237_v32, %v3201_v43  ;;  %v2564_v49 = vmax.f32 %v2498_v62, 0.0  ;;  %v4312_v44 = vadd.f32 %v4223_v51, %v4068_v56  ;;  %v7907_v40 = vmul.f32 %v7151_v15, %v7748_v10 }
 0x1e3   : > { %v2871_v33 = vrot.slane %v7899_v2, 1  ;;  %v2563_v29 = vmax.f32 %v2493_v26, 0.0  ;;  %v3669_v54 = vsel %vm955_vm4, %v3666_v45, %v3668_v5  ;;  %v3114_v61 = vrot.slane %v3002_v20, 2  ;;  %v7923_v45 = vld [vmem:[#allocation2 + $0xf0] sm:$0xff]  ;;  %v7966_v20 = vld [vmem:[#allocation2 + $0x100] sm:$0x3] }
 0x1e4   : > { %v3513_v46 = vadd.f32 %v3425_v8, %v3269_v47  ;;  %2596 = vst.msk [vmem:[#allocation2 + $0x129] sm:$0xff] %vm331_vm0, %v2564_v49  ;;  %5449 = vmatprep.mubr.msk.f32.mxu0 %vm331_vm0, %v4312_v44  ;;  %v3115_v53 = vrot.slane %v7907_v40, 2  ;;  %v3314_v48 = vmul.f32 %v7168_v42, %v7824_v17  ;;  %v7920_v23 = vmul.f32 %v7168_v42, %v7826_v38 }
 0x1e5   : > { %v2872_v58 = vsel %vm710_vm3, %v2870_v13, %v2871_v33  ;;  %2595 = vst.msk [vmem:[#allocation2 + $0x121] sm:$0xff] %vm331_vm0, %v2563_v29  ;;  %v3558_v22 = vmul.f32 %v7179_v27, %v7824_v17  ;;  %v3559_v24 = vmul.f32 %v7179_v27, %v7826_v38  ;;  %v3238_v12 = vmul.f32 %v7157_v3, %v7824_v17 }
 0x1e6   : > { %v3757_v55 = vadd.f32 %v3669_v54, %v3513_v46  ;;  %v2958_v21 = vadd.f32 %v2872_v58, %v2682_v63  ;;  %v3116_v9 = vsel %vm955_vm4, %v3114_v61, %v3115_v53  ;;  %v3426_v50 = vrot.slane %v3314_v48, 1 }
 0x1e7   : > { %v3427_v34 = vrot.slane %v7920_v23, 1  ;;  %v3670_v32 = vrot.slane %v3558_v22, 2  ;;  %v3671_v4 = vrot.slane %v3559_v24, 2  ;;  %v3981_v1 = vsel %vm710_vm3, %v3978_v28, %v3980_v60 }
 0x1e8   : > { %v3825_v51 = vadd.f32 %v3793_v25, %v3757_v55  ;;  %v3202_v36 = vadd.f32 %v3116_v9, %v2958_v21  ;;  %v3870_v5 = vmul.f32 %v7216_v19, %v7923_v45  ;;  %v7942_v6 = vmul.f32 %v7216_v19, %v7925_v31 }
 0x1e9   : > { %v4114_v43 = vmul.f32 %v7222_v52, %v7923_v45  ;;  %v7948_v25 = vmul.f32 %v7222_v52, %v7925_v31  ;;  %v4225_v57 = vsel %vm955_vm4, %v4222_v39, %v4224_v37  ;;  %v3428_v28 = vsel %vm710_vm3, %v3426_v50, %v3427_v34 }
 0x1ea   : > { %v4069_v8 = vadd.f32 %v3981_v1, %v3825_v51  ;;  %v3270_v59 = vadd.f32 %v3238_v12, %v3202_v36  ;;  %v3982_v60 = vrot.slane %v3870_v5, 1  ;;  %v3983_v62 = vrot.slane %v7942_v6, 1 }
 0x1eb   : > { %v3672_v63 = vsel %vm955_vm4, %v3670_v32, %v3671_v4  ;;  %v2760_v2 = vmul.f32 %v7148_v18, %v7778_v30  ;;  %v4226_v26 = vrot.slane %v4114_v43, 2  ;;  %v4227_v47 = vrot.slane %v7948_v25, 2 }
 0x1ec   : > { %v4313_v16 = vadd.f32 %v4225_v57, %v4069_v8  ;;  %v3514_v56 = vadd.f32 %v3428_v28, %v3270_v59  ;;  %v3004_v7 = vmul.f32 %v7151_v15, %v7778_v30  ;;  %v3316_v39 = vmul.f32 %v7168_v42, %v7861_v35 }
 0x1ed   : > { %v3794_v13 = vmul.f32 %v7188_v41, %v7923_v45  ;;  %v2873_v49 = vrot.slane %v2760_v2, 1  ;;  %v3560_v44 = vmul.f32 %v7179_v27, %v7861_v35  ;;  %v3984_v40 = vsel %vm710_vm3, %v3982_v60, %v3983_v62 }
 0x1ee   : > { %5450 = vmatmul.mubr.msk.f32.gmra.mrb[46].mxu0 %vm331_vm0, %v4313_v16  ;;  %v3758_v37 = vadd.f32 %v3672_v63, %v3514_v56  ;;  %v2683_v30 = vmul.f32 %v7143_v14, %v7748_v10  ;;  %v3117_v29 = vrot.slane %v3004_v7, 2  ;;  %v3429_v46 = vrot.slane %v3316_v39, 1  ;;  %v8011_v39 = vld [vmem:[#allocation2 + $0x108] sm:$0xff] }
 0x1ef   : > { %v2874_v58 = vsel %vm710_vm3, %v2871_v33, %v2873_v49  ;;  %v3239_v48 = vmul.f32 %v7157_v3, %v7826_v38  ;;  %v3673_v23 = vrot.slane %v3560_v44, 2  ;;  %v4228_v22 = vsel %vm955_vm4, %v4226_v26, %v4227_v47 }
 0x1f0   : > { %v5414_v54 = vpop.f32.mrb[24].mxu0  ;;  %v3826_v61 = vadd.f32 %v3794_v13, %v3758_v37  ;;  %v2959_v24 = vadd.f32 %v2874_v58, %v2683_v30  ;;  %v3872_v10 = vmul.f32 %v7216_v19, %v7966_v20  ;;  %v3118_v33 = vsel %vm955_vm4, %v3115_v53, %v3117_v29  ;;  %v8013_v37 = vld [vmem:[#allocation2 + $0x110] sm:$0xff] }
 0x1f1   : > { %v2508_v55 = vadd.f32 %v7717_v11, %v5414_v54  ;;  %v2502_v21 = vpop.f32.mrb[25].mxu0  ;;  %v4116_v50 = vmul.f32 %v7222_v52, %v7966_v20  ;;  %v3430_v32 = vsel %vm710_vm3, %v3427_v34, %v3429_v46  ;;  %v3795_v1 = vmul.f32 %v7188_v41, %v7925_v31 }
 0x1f2   : > { %v2503_v9 = vadd.f32 %v7717_v11, %v2502_v21  ;;  %v4070_v12 = vadd.f32 %v3984_v40, %v3826_v61  ;;  %v3203_v36 = vadd.f32 %v3118_v33, %v2959_v24  ;;  %v3674_v8 = vsel %vm955_vm4, %v3671_v4, %v3673_v23 }
 0x1f3   : > { %v2566_v51 = vmax.f32 %v2508_v55, 0.0  ;;  %v2761_v59 = vmul.f32 %v7148_v18, %v7824_v17  ;;  %v3985_v57 = vrot.slane %v3872_v10, 1  ;;  %v2762_v28 = vmul.f32 %v7148_v18, %v7826_v38 }
 0x1f4   : > { %v2565_v5 = vmax.f32 %v2503_v9, 0.0  ;;  %v4314_v43 = vadd.f32 %v4228_v22, %v4070_v12  ;;  %v3271_v53 = vadd.f32 %v3239_v48, %v3203_v36  ;;  %v3005_v34 = vmul.f32 %v7151_v15, %v7824_v17 }
 0x1f5   : > { %2598 = vst.msk [vmem:[#allocation2 + $0x141] sm:$0xff] %vm331_vm0, %v2566_v51  ;;  %v4229_v60 = vrot.slane %v4116_v50, 2  ;;  %v2875_v16 = vrot.slane %v2761_v59, 1  ;;  %v8003_v4 = vmul.f32 %v7151_v15, %v7826_v38  ;;  %v3317_v56 = vmul.f32 %v7168_v42, %v7923_v45 }
 0x1f6   : > { %2597 = vst.msk [vmem:[#allocation2 + $0x139] sm:$0xff] %vm331_vm0, %v2565_v5  ;;  %5452 = vmatprep.mubr.msk.f32.mxu1 %vm331_vm0, %v4314_v43  ;;  %v3515_v63 = vadd.f32 %v3430_v32, %v3271_v53  ;;  %v2876_v2 = vrot.slane %v2762_v28, 1  ;;  %v3119_v26 = vrot.slane %v3005_v34, 2  ;;  %v8009_v7 = vmul.f32 %v7168_v42, %v7925_v31 }
 0x1f7   : > { %v2684_v13 = vmul.f32 %v7143_v14, %v7824_v17  ;;  %v3120_v49 = vrot.slane %v8003_v4, 2  ;;  %v3561_v44 = vmul.f32 %v7179_v27, %v7923_v45  ;;  %v8022_v40 = vmul.f32 %v7179_v27, %v7925_v31 }
 0x1f8   : > { %v3759_v30 = vadd.f32 %v3674_v8, %v3515_v63  ;;  %v2877_v29 = vsel %vm710_vm3, %v2875_v16, %v2876_v2  ;;  %v3431_v46 = vrot.slane %v3317_v56, 1  ;;  %v3432_v54 = vrot.slane %v8009_v7, 1 }
 0x1f9   : > { %v3986_v61 = vsel %vm710_vm3, %v3983_v62, %v3985_v57  ;;  %v2960_v17 = vadd.f32 %v2877_v29, %v2684_v13  ;;  %v3121_v58 = vsel %vm955_vm4, %v3119_v26, %v3120_v49  ;;  %v3240_v48 = vmul.f32 %v7157_v3, %v7923_v45 }
 0x1fa   : > { %v3827_v23 = vadd.f32 %v3795_v1, %v3759_v30  ;;  %v3675_v55 = vrot.slane %v3561_v44, 2  ;;  %v3873_v21 = vmul.f32 %v7216_v19, %v8011_v39  ;;  %v8036_v22 = vmul.f32 %v7216_v19, %v8013_v37  ;;  %v8052_v1 = vld [vmem:[#allocation2 + $0x118] sm:$0x3] }
 0x1fb   : > { %v3204_v24 = vadd.f32 %v3121_v58, %v2960_v17  ;;  %v3676_v6 = vrot.slane %v8022_v40, 2  ;;  %v4117_v62 = vmul.f32 %v7222_v52, %v8011_v39  ;;  %v8043_v10 = vmul.f32 %v7222_v52, %v8013_v37 }
 0x1fc   : > { %v4071_v9 = vadd.f32 %v3986_v61, %v3827_v23  ;;  %v4230_v12 = vsel %vm955_vm4, %v4227_v47, %v4229_v60  ;;  %v3433_v33 = vsel %vm710_vm3, %v3431_v46, %v3432_v54  ;;  %v3796_v50 = vmul.f32 %v7188_v41, %v8011_v39 }
 0x1fd   : > { %v3272_v51 = vadd.f32 %v3240_v48, %v3204_v24  ;;  %v3987_v36 = vrot.slane %v3873_v21, 1  ;;  %v3988_v32 = vrot.slane %v8036_v22, 1  ;;  %v2763_v5 = vmul.f32 %v7148_v18, %v7861_v35 }
 0x1fe   : > { %v4315_v43 = vadd.f32 %v4230_v12, %v4071_v9  ;;  %v4231_v8 = vrot.slane %v4117_v62, 2  ;;  %v4232_v25 = vrot.slane %v8043_v10, 2  ;;  %v3007_v47 = vmul.f32 %v7151_v15, %v7861_v35 }
 0x1ff   : > { %v3516_v59 = vadd.f32 %v3433_v33, %v3272_v51  ;;  %v3677_v53 = vsel %vm955_vm4, %v3675_v55, %v3676_v6  ;;  %v2878_v57 = vrot.slane %v2763_v5, 1  ;;  %v3319_v28 = vmul.f32 %v7168_v42, %v7966_v20 }
 0x200   : > { %5453 = vmatmul.mubr.msk.f32.vlgmr.msra.gmra.mrb[0].mxu1 %vm331_vm0, %v4315_v43  ;;  %v2685_v34 = vmul.f32 %v7143_v14, %v7826_v38  ;;  %v3122_v60 = vrot.slane %v3007_v47, 2  ;;  %v3563_v16 = vmul.f32 %v7179_v27, %v7966_v20  ;;  %v3875_v4 = vmul.f32 %v7216_v19, %v8052_v1 }
 0x201   : > { %5477 = vmatpush3.msra.mxu1 %v7649_v0  ;;  %v3760_v35 = vadd.f32 %v3677_v53, %v3516_v59  ;;  %v2879_v56 = vsel %vm710_vm3, %v2876_v2, %v2878_v57  ;;  %v3434_v63 = vrot.slane %v3319_v28, 1  ;;  %v4119_v26 = vmul.f32 %v7222_v52, %v8052_v1  ;;  %v8113_v28 = vld [vmem:[#allocation2 + $0x128] sm:$0xff] }
 0x202   : > { %v3989_v38 = vsel %vm710_vm3, %v3987_v36, %v3988_v32  ;;  %v4233_v13 = vsel %vm955_vm4, %v4231_v8, %v4232_v25  ;;  %v2961_v44 = vadd.f32 %v2879_v56, %v2685_v34  ;;  %v3241_v40 = vmul.f32 %v7157_v3, %v7925_v31  ;;  %v8104_v8 = vld [vmem:[#allocation2 + $0x120] sm:$0xff] }
 0x203   : > { %v5417_v7 = vpop.f32.mrb[26].mxu0  ;;  %v3828_v29 = vadd.f32 %v3796_v50, %v3760_v35  ;;  %v3123_v2 = vsel %vm955_vm4, %v3120_v49, %v3122_v60  ;;  %v3678_v46 = vrot.slane %v3563_v16, 2  ;;  %v3797_v58 = vmul.f32 %v7188_v41, %v8013_v37 }
 0x204   : > { %v2518_v0 = vadd.f32 %v7717_v11, %v5417_v7  ;;  %v2512_v30 = vpop.f32.mrb[27].mxu0  ;;  %v3205_v17 = vadd.f32 %v3123_v2, %v2961_v44  ;;  %v3990_v48 = vrot.slane %v3875_v4, 1  ;;  %v3435_v21 = vsel %vm710_vm3, %v3432_v54, %v3434_v63 }
 0x205   : > { %v2513_v61 = vadd.f32 %v7717_v11, %v2512_v30  ;;  %v4072_v55 = vadd.f32 %v3989_v38, %v3828_v29  ;;  %v4234_v24 = vrot.slane %v4119_v26, 2  ;;  %v2764_v9 = vmul.f32 %v7148_v18, %v7923_v45 }
 0x206   : > { %v2568_v23 = vmax.f32 %v2518_v0, 0.0  ;;  %v3273_v10 = vadd.f32 %v3241_v40, %v3205_v17  ;;  %v8089_v49 = vmul.f32 %v7148_v18, %v7925_v31  ;;  %v3679_v33 = vsel %vm955_vm4, %v3676_v6, %v3678_v46 }
 0x207   : > { %v2567_v62 = vmax.f32 %v2513_v61, 0.0  ;;  %v4316_v12 = vadd.f32 %v4233_v13, %v4072_v55  ;;  %v3008_v50 = vmul.f32 %v7151_v15, %v7923_v45  ;;  %v8097_v54 = vmul.f32 %v7151_v15, %v7925_v31 }
 0x208   : > { %2600 = vst.msk [vmem:[#allocation2 + $0x159] sm:$0xff] %vm331_vm0, %v2568_v23  ;;  %v3517_v51 = vadd.f32 %v3435_v21, %v3273_v10  ;;  %v2880_v36 = vrot.slane %v2764_v9, 1  ;;  %v2881_v5 = vrot.slane %v8089_v49, 1  ;;  %v3320_v43 = vmul.f32 %v7168_v42, %v8011_v39 }
 0x209   : > { %2599 = vst.msk [vmem:[#allocation2 + $0x151] sm:$0xff] %vm331_vm0, %v2567_v62  ;;  %5455 = vmatprep.mubr.msk.f32.mxu1 %vm331_vm0, %v4316_v12  ;;  %v2686_v6 = vmul.f32 %v7143_v14, %v7923_v45  ;;  %v3124_v47 = vrot.slane %v3008_v50, 2  ;;  %v3125_v59 = vrot.slane %v8097_v54, 2  ;;  %v8111_v53 = vmul.f32 %v7168_v42, %v8013_v37  ;;  %v8149_v62 = vld [vmem:[#allocation2 + $0x130] sm:$0x3] }
 0x20a   : > { %v3761_v57 = vadd.f32 %v3679_v33, %v3517_v51  ;;  %v2882_v34 = vsel %vm710_vm3, %v2880_v36, %v2881_v5  ;;  %v3564_v60 = vmul.f32 %v7179_v27, %v8011_v39  ;;  %v3565_v16 = vmul.f32 %v7179_v27, %v8013_v37 }
 0x20b   : > { %v3991_v45 = vsel %vm710_vm3, %v3988_v32, %v3990_v48  ;;  %v4235_v4 = vsel %vm955_vm4, %v4232_v25, %v4234_v24  ;;  %v2962_v35 = vadd.f32 %v2882_v34, %v2686_v6  ;;  %v3436_v56 = vrot.slane %v3320_v43, 1 }
 0x20c   : > { %v3829_v63 = vadd.f32 %v3797_v58, %v3761_v57  ;;  %v3126_v26 = vsel %vm955_vm4, %v3124_v47, %v3125_v59  ;;  %v3437_v7 = vrot.slane %v8111_v53, 1  ;;  %v3876_v38 = vmul.f32 %v7216_v19, %v8104_v8 }
 0x20d   : > { %v3206_v13 = vadd.f32 %v3126_v26, %v2962_v35  ;;  %v3242_v44 = vmul.f32 %v7157_v3, %v8011_v39  ;;  %v8132_v22 = vmul.f32 %v7216_v19, %v8113_v28  ;;  %v4120_v32 = vmul.f32 %v7222_v52, %v8104_v8 }
 0x20e   : > { %v4073_v25 = vadd.f32 %v3991_v45, %v3829_v63  ;;  %v3680_v40 = vrot.slane %v3564_v60, 2  ;;  %v3681_v0 = vrot.slane %v3565_v16, 2  ;;  %v8138_v30 = vmul.f32 %v7222_v52, %v8113_v28 }
 0x20f   : > { %v3274_v29 = vadd.f32 %v3242_v44, %v3206_v13  ;;  %v3798_v2 = vmul.f32 %v7188_v41, %v8104_v8  ;;  %v3992_v46 = vrot.slane %v3876_v38, 1  ;;  %v3993_v61 = vrot.slane %v8132_v22, 1 }
 0x210   : > { %v4317_v17 = vadd.f32 %v4235_v4, %v4073_v25  ;;  %v3438_v58 = vsel %vm710_vm3, %v3436_v56, %v3437_v7  ;;  %v2766_v48 = vmul.f32 %v7148_v18, %v7966_v20  ;;  %v3010_v23 = vmul.f32 %v7151_v15, %v7966_v20 }
 0x211   : > { %v3518_v55 = vadd.f32 %v3438_v58, %v3274_v29  ;;  %v4236_v21 = vrot.slane %v4120_v32, 2  ;;  %v4237_v24 = vrot.slane %v8138_v30, 2  ;;  %v3322_v10 = vmul.f32 %v7168_v42, %v8052_v1 }
 0x212   : > { %5456 = vmatmul.mubr.msk.f32.gmra.mrb[2].mxu1 %vm331_vm0, %v4317_v17  ;;  %v3682_v9 = vsel %vm955_vm4, %v3680_v40, %v3681_v0  ;;  %v2883_v49 = vrot.slane %v2766_v48, 1  ;;  %v3127_v12 = vrot.slane %v3010_v23, 2  ;;  %v3566_v33 = vmul.f32 %v7179_v27, %v8052_v1 }
 0x213   : > { %v3762_v50 = vadd.f32 %v3682_v9, %v3518_v55  ;;  %v3994_v20 = vsel %vm710_vm3, %v3992_v46, %v3993_v61  ;;  %v2687_v54 = vmul.f32 %v7143_v14, %v7925_v31  ;;  %v3439_v51 = vrot.slane %v3322_v10, 1  ;;  %v8200_v10 = vld [vmem:[#allocation2 + $0x140] sm:$0xff] }
 0x214   : > { %v5420_v36 = vpop.f32.mrb[28].mxu0  ;;  %v2884_v43 = vsel %vm710_vm3, %v2881_v5, %v2883_v49  ;;  %v3243_v6 = vmul.f32 %v7157_v3, %v8013_v37  ;;  %v3683_v47 = vrot.slane %v3566_v33, 2  ;;  %v3878_v53 = vmul.f32 %v7216_v19, %v8149_v62 }
 0x215   : > { %v2528_v57 = vadd.f32 %v7717_v11, %v5420_v36  ;;  %v2522_v34 = vpop.f32.mrb[29].mxu0  ;;  %v3830_v60 = vadd.f32 %v3798_v2, %v3762_v50  ;;  %v4238_v16 = vsel %vm955_vm4, %v4236_v21, %v4237_v24  ;;  %v2963_v31 = vadd.f32 %v2884_v43, %v2687_v54  ;;  %v8198_v21 = vld [vmem:[#allocation2 + $0x138] sm:$0xff] }
 0x216   : > { %v2523_v45 = vadd.f32 %v7717_v11, %v2522_v34  ;;  %v3128_v5 = vsel %vm955_vm4, %v3125_v59, %v3127_v12  ;;  %v3799_v4 = vmul.f32 %v7188_v41, %v8113_v28  ;;  %v4122_v35 = vmul.f32 %v7222_v52, %v8149_v62 }
 0x217   : > { %v2570_v56 = vmax.f32 %v2528_v57, 0.0  ;;  %v4074_v63 = vadd.f32 %v3994_v20, %v3830_v60  ;;  %v3207_v26 = vadd.f32 %v3128_v5, %v2963_v31  ;;  %v3440_v38 = vsel %vm710_vm3, %v3437_v7, %v3439_v51 }
 0x218   : > { %v2569_v13 = vmax.f32 %v2523_v45, 0.0  ;;  %v3684_v44 = vsel %vm955_vm4, %v3681_v0, %v3683_v47  ;;  %v3995_v32 = vrot.slane %v3878_v53, 1  ;;  %v2767_v25 = vmul.f32 %v7148_v18, %v8011_v39 }
 0x219   : > { %2602 = vst.msk [vmem:[#allocation2 + $0x171] sm:$0xff] %vm331_vm0, %v2570_v56  ;;  %v4318_v59 = vadd.f32 %v4238_v16, %v4074_v63  ;;  %v3275_v40 = vadd.f32 %v3243_v6, %v3207_v26  ;;  %v2768_v29 = vmul.f32 %v7148_v18, %v8013_v37  ;;  %v3011_v2 = vmul.f32 %v7151_v15, %v8011_v39  ;;  %v8239_v26 = vld [vmem:[#allocation2 + $0x148] sm:$0x3] }
 0x21a   : > { %2601 = vst.msk [vmem:[#allocation2 + $0x169] sm:$0xff] %vm331_vm0, %v2569_v13  ;;  %v4239_v7 = vrot.slane %v4122_v35, 2  ;;  %v2885_v46 = vrot.slane %v2767_v25, 1  ;;  %v8189_v0 = vmul.f32 %v7151_v15, %v8013_v37  ;;  %v3323_v17 = vmul.f32 %v7168_v42, %v8104_v8 }
 0x21b   : > { %5458 = vmatprep.mubr.msk.f32.mxu1 %vm331_vm0, %v4318_v59  ;;  %v3519_v58 = vadd.f32 %v3440_v38, %v3275_v40  ;;  %v2886_v48 = vrot.slane %v2768_v29, 1  ;;  %v3129_v23 = vrot.slane %v3011_v2, 2  ;;  %v8196_v55 = vmul.f32 %v7168_v42, %v8113_v28 }
 0x21c   : > { %v2688_v9 = vmul.f32 %v7143_v14, %v8011_v39  ;;  %v3130_v49 = vrot.slane %v8189_v0, 2  ;;  %v3567_v12 = vmul.f32 %v7179_v27, %v8104_v8  ;;  %v8209_v33 = vmul.f32 %v7179_v27, %v8113_v28 }
 0x21d   : > { %v3763_v50 = vadd.f32 %v3684_v44, %v3519_v58  ;;  %v2887_v20 = vsel %vm710_vm3, %v2885_v46, %v2886_v48  ;;  %v3441_v54 = vrot.slane %v3323_v17, 1  ;;  %v3442_v51 = vrot.slane %v8196_v55, 1 }
 0x21e   : > { %v3996_v36 = vsel %vm710_vm3, %v3993_v61, %v3995_v32  ;;  %v2964_v39 = vadd.f32 %v2887_v20, %v2688_v9  ;;  %v3131_v43 = vsel %vm955_vm4, %v3129_v23, %v3130_v49  ;;  %v3244_v6 = vmul.f32 %v7157_v3, %v8104_v8 }
 0x21f   : > { %v3831_v47 = vadd.f32 %v3799_v4, %v3763_v50  ;;  %v3685_v53 = vrot.slane %v3567_v12, 2  ;;  %v3879_v57 = vmul.f32 %v7216_v19, %v8198_v21  ;;  %v8223_v34 = vmul.f32 %v7216_v19, %v8200_v10 }
 0x220   : > { %v3208_v60 = vadd.f32 %v3131_v43, %v2964_v39  ;;  %v3686_v22 = vrot.slane %v8209_v33, 2  ;;  %v4123_v61 = vmul.f32 %v7222_v52, %v8198_v21  ;;  %v8230_v16 = vmul.f32 %v7222_v52, %v8200_v10 }
 0x221   : > { %v4075_v31 = vadd.f32 %v3996_v36, %v3831_v47  ;;  %v4240_v45 = vsel %vm955_vm4, %v4237_v24, %v4239_v7  ;;  %v3443_v5 = vsel %vm710_vm3, %v3441_v54, %v3442_v51  ;;  %v3800_v4 = vmul.f32 %v7188_v41, %v8198_v21 }
 0x222   : > { %v3276_v35 = vadd.f32 %v3244_v6, %v3208_v60  ;;  %v3997_v56 = vrot.slane %v3879_v57, 1  ;;  %v3998_v63 = vrot.slane %v8223_v34, 1  ;;  %v2769_v38 = vmul.f32 %v7148_v18, %v8052_v1 }
 0x223   : > { %v4319_v13 = vadd.f32 %v4240_v45, %v4075_v31  ;;  %v4241_v44 = vrot.slane %v4123_v61, 2  ;;  %v4242_v30 = vrot.slane %v8230_v16, 2  ;;  %v3013_v24 = vmul.f32 %v7151_v15, %v8052_v1 }
 0x224   : > { %v3520_v32 = vadd.f32 %v3443_v5, %v3276_v35  ;;  %v3687_v25 = vsel %vm955_vm4, %v3685_v53, %v3686_v22  ;;  %v2888_v59 = vrot.slane %v2769_v38, 1  ;;  %v3325_v40 = vmul.f32 %v7168_v42, %v8149_v62 }
 0x225   : > { %5459 = vmatmul.mubr.msk.f32.gmra.mrb[4].mxu1 %vm331_vm0, %v4319_v13  ;;  %v2689_v29 = vmul.f32 %v7143_v14, %v8013_v37  ;;  %v3132_v2 = vrot.slane %v3013_v24, 2  ;;  %v3569_v7 = vmul.f32 %v7179_v27, %v8149_v62  ;;  %v3881_v46 = vmul.f32 %v7216_v19, %v8239_v26 }
 0x226   : > { %v3764_v1 = vadd.f32 %v3687_v25, %v3520_v32  ;;  %v2889_v0 = vsel %vm710_vm3, %v2886_v48, %v2888_v59  ;;  %v3444_v17 = vrot.slane %v3325_v40, 1  ;;  %v4125_v58 = vmul.f32 %v7222_v52, %v8239_v26  ;;  %v8299_v40 = vld [vmem:[#allocation2 + $0x158] sm:$0xff] }
 0x227   : > { %v5423_v23 = vpop.f32.mrb[30].mxu0  ;;  %v3999_v55 = vsel %vm710_vm3, %v3997_v56, %v3998_v63  ;;  %v4243_v37 = vsel %vm955_vm4, %v4241_v44, %v4242_v30  ;;  %v2965_v9 = vadd.f32 %v2889_v0, %v2689_v29  ;;  %v3245_v12 = vmul.f32 %v7157_v3, %v8113_v28  ;;  %v8292_v44 = vld [vmem:[#allocation2 + $0x150] sm:$0xff] }
 0x228   : > { %v2538_v33 = vadd.f32 %v7717_v11, %v5423_v23  ;;  %v2532_v48 = vpop.f32.mrb[31].mxu0  ;;  %v3832_v50 = vadd.f32 %v3800_v4, %v3764_v1  ;;  %v3133_v20 = vsel %vm955_vm4, %v3130_v49, %v3132_v2  ;;  %v3688_v54 = vrot.slane %v3569_v7, 2 }
 0x229   : > { %v2533_v36 = vadd.f32 %v7717_v11, %v2532_v48  ;;  %v3209_v39 = vadd.f32 %v3133_v20, %v2965_v9  ;;  %v3801_v43 = vmul.f32 %v7188_v41, %v8200_v10  ;;  %v4000_v6 = vrot.slane %v3881_v46, 1 }
 0x22a   : > { %v2572_v47 = vmax.f32 %v2538_v33, 0.0  ;;  %v4076_v53 = vadd.f32 %v3999_v55, %v3832_v50  ;;  %v3445_v57 = vsel %vm710_vm3, %v3442_v51, %v3444_v17  ;;  %v4244_v60 = vrot.slane %v4125_v58, 2 }
 0x22b   : > { %v2571_v61 = vmax.f32 %v2533_v36, 0.0  ;;  %v3277_v31 = vadd.f32 %v3245_v12, %v3209_v39  ;;  %v2770_v45 = vmul.f32 %v7148_v18, %v8104_v8  ;;  %v8277_v49 = vmul.f32 %v7148_v18, %v8113_v28 }
 0x22c   : > { %2604 = vst.msk [vmem:[#allocation2 + $0x189] sm:$0xff] %vm331_vm0, %v2572_v47  ;;  %v4320_v11 = vadd.f32 %v4243_v37, %v4076_v53  ;;  %v3689_v5 = vsel %vm955_vm4, %v3686_v22, %v3688_v54  ;;  %v3014_v4 = vmul.f32 %v7151_v15, %v8104_v8  ;;  %v8285_v51 = vmul.f32 %v7151_v15, %v8113_v28 }
 0x22d   : > { %2603 = vst.msk [vmem:[#allocation2 + $0x181] sm:$0xff] %vm331_vm0, %v2571_v61  ;;  %v3521_v35 = vadd.f32 %v3445_v57, %v3277_v31  ;;  %v2890_v56 = vrot.slane %v2770_v45, 1  ;;  %v2891_v38 = vrot.slane %v8277_v49, 1  ;;  %v3326_v13 = vmul.f32 %v7168_v42, %v8198_v21 }
 0x22e   : > { %5461 = vmatprep.mubr.msk.f32.mxu1 %vm331_vm0, %v4320_v11  ;;  %v2690_v22 = vmul.f32 %v7143_v14, %v8104_v8  ;;  %v3134_v24 = vrot.slane %v3014_v4, 2  ;;  %v3135_v32 = vrot.slane %v8285_v51, 2  ;;  %v3327_v25 = vmul.f32 %v7168_v42, %v8200_v10 }
 0x22f   : > { %v3765_v59 = vadd.f32 %v3689_v5, %v3521_v35  ;;  %v2892_v29 = vsel %vm710_vm3, %v2890_v56, %v2891_v38  ;;  %v3570_v2 = vmul.f32 %v7179_v27, %v8198_v21  ;;  %v3571_v7 = vmul.f32 %v7179_v27, %v8200_v10 }
 0x230   : > { %v4001_v8 = vsel %vm710_vm3, %v3998_v63, %v4000_v6  ;;  %v2966_v46 = vadd.f32 %v2892_v29, %v2690_v22  ;;  %v3446_v1 = vrot.slane %v3326_v13, 1  ;;  %v3447_v0 = vrot.slane %v3327_v25, 1 }
 0x231   : > { %v3833_v17 = vadd.f32 %v3801_v43, %v3765_v59  ;;  %v4245_v58 = vsel %vm955_vm4, %v4242_v30, %v4244_v60  ;;  %v3136_v23 = vsel %vm955_vm4, %v3134_v24, %v3135_v32  ;;  %v3882_v55 = vmul.f32 %v7216_v19, %v8292_v44  ;;  %v8331_v43 = vld [vmem:[#allocation2 + $0x160] sm:$0x3] }
 0x232   : > { %v3210_v37 = vadd.f32 %v3136_v23, %v2966_v46  ;;  %v3246_v9 = vmul.f32 %v7157_v3, %v8198_v21  ;;  %v8319_v34 = vmul.f32 %v7216_v19, %v8299_v40  ;;  %v4126_v63 = vmul.f32 %v7222_v52, %v8292_v44 }
 0x233   : > { %v4077_v12 = vadd.f32 %v4001_v8, %v3833_v17  ;;  %v3690_v16 = vrot.slane %v3570_v2, 2  ;;  %v3691_v33 = vrot.slane %v3571_v7, 2  ;;  %v8325_v30 = vmul.f32 %v7222_v52, %v8299_v40 }
 0x234   : > { %v3278_v48 = vadd.f32 %v3246_v9, %v3210_v37  ;;  %v3448_v50 = vsel %vm710_vm3, %v3446_v1, %v3447_v0  ;;  %v3802_v20 = vmul.f32 %v7188_v41, %v8292_v44  ;;  %v4002_v54 = vrot.slane %v3882_v55, 1 }
 0x235   : > { %v4321_v36 = vadd.f32 %v4245_v58, %v4077_v12  ;;  %v4003_v39 = vrot.slane %v8319_v34, 1  ;;  %v2772_v6 = vmul.f32 %v7148_v18, %v8149_v62  ;;  %v3016_v47 = vmul.f32 %v7151_v15, %v8149_v62 }
 0x236   : > { %v3522_v53 = vadd.f32 %v3448_v50, %v3278_v48  ;;  %v4246_v57 = vrot.slane %v4126_v63, 2  ;;  %v4247_v60 = vrot.slane %v8325_v30, 2  ;;  %v3328_v61 = vmul.f32 %v7168_v42, %v8239_v26  ;;  %v8429_v30 = vld [vmem:[#allocation2 + $0x178] sm:$0x3] }
 0x237   : > { %5462 = vmatmul.mubr.msk.f32.gmra.mrb[6].mxu1 %vm331_vm0, %v4321_v36  ;;  %v3692_v31 = vsel %vm955_vm4, %v3690_v16, %v3691_v33  ;;  %v2893_v45 = vrot.slane %v2772_v6, 1  ;;  %v3137_v49 = vrot.slane %v3016_v47, 2  ;;  %v3572_v11 = vmul.f32 %v7179_v27, %v8239_v26  ;;  %v8388_v36 = vld [vmem:[#allocation2 + $0x168] sm:$0xff] }
 0x238   : > { %v3766_v5 = vadd.f32 %v3692_v31, %v3522_v53  ;;  %v2691_v62 = vmul.f32 %v7143_v14, %v8113_v28  ;;  %v3449_v4 = vrot.slane %v3328_v61, 1  ;;  %v3884_v51 = vmul.f32 %v7216_v19, %v8331_v43 }
 0x239   : > { %v4004_v35 = vsel %vm710_vm3, %v4002_v54, %v4003_v39  ;;  %v2894_v56 = vsel %vm710_vm3, %v2891_v38, %v2893_v45  ;;  %v3247_v13 = vmul.f32 %v7157_v3, %v8200_v10  ;;  %v3693_v22 = vrot.slane %v3572_v11, 2 }
 0x23a   : > { %v3834_v24 = vadd.f32 %v3802_v20, %v3766_v5  ;;  %v4248_v25 = vsel %vm955_vm4, %v4246_v57, %v4247_v60  ;;  %v2967_v28 = vadd.f32 %v2894_v56, %v2691_v62  ;;  %v3803_v59 = vmul.f32 %v7188_v41, %v8299_v40 }
 0x23b   : > { %v3138_v29 = vsel %vm955_vm4, %v3135_v32, %v3137_v49  ;;  %v3450_v2 = vsel %vm710_vm3, %v3447_v0, %v3449_v4  ;;  %v4128_v38 = vmul.f32 %v7222_v52, %v8331_v43  ;;  %v2773_v7 = vmul.f32 %v7148_v18, %v8198_v21 }
 0x23c   : > { %v4078_v8 = vadd.f32 %v4004_v35, %v3834_v24  ;;  %v3211_v46 = vadd.f32 %v3138_v29, %v2967_v28  ;;  %v4005_v1 = vrot.slane %v3884_v51, 1  ;;  %v2774_v17 = vmul.f32 %v7148_v18, %v8200_v10 }
 0x23d   : > { %v3694_v58 = vsel %vm955_vm4, %v3691_v33, %v3693_v22  ;;  %v2895_v23 = vrot.slane %v2773_v7, 1  ;;  %v3017_v32 = vmul.f32 %v7151_v15, %v8198_v21  ;;  %v8372_v0 = vmul.f32 %v7151_v15, %v8200_v10 }
 0x23e   : > { %v4322_v55 = vadd.f32 %v4248_v25, %v4078_v8  ;;  %v3279_v37 = vadd.f32 %v3247_v13, %v3211_v46  ;;  %v2692_v9 = vmul.f32 %v7143_v14, %v8198_v21  ;;  %v2896_v63 = vrot.slane %v2774_v17, 1  ;;  %v8390_v21 = vld [vmem:[#allocation2 + $0x170] sm:$0xff] }
 0x23f   : > { %v8376_v12 = vpop.f32.mrb[32].mxu0  ;;  %v3139_v16 = vrot.slane %v3017_v32, 2  ;;  %v3140_v48 = vrot.slane %v8372_v0, 2  ;;  %v3329_v33 = vmul.f32 %v7168_v42, %v8292_v44  ;;  %v8383_v50 = vmul.f32 %v7168_v42, %v8299_v40 }
 0x240   : > { %v8385_v20 = vpop.f32.mrb[33].mxu0  ;;  %5464 = vmatprep.mubr.msk.f32.mxu1 %vm331_vm0, %v4322_v55  ;;  %v3523_v54 = vadd.f32 %v3450_v2, %v3279_v37  ;;  %v2897_v6 = vsel %vm710_vm3, %v2895_v23, %v2896_v63  ;;  %v3573_v47 = vmul.f32 %v7179_v27, %v8292_v44  ;;  %v8397_v53 = vmul.f32 %v7179_v27, %v8299_v40 }
 0x241   : > { %v4249_v57 = vrot.slane %v4128_v38, 2  ;;  %v2968_v61 = vadd.f32 %v2897_v6, %v2692_v9  ;;  %v3451_v31 = vrot.slane %v3329_v33, 1  ;;  %v3452_v45 = vrot.slane %v8383_v50, 1 }
 0x242   : > { %v3767_v49 = vadd.f32 %v3694_v58, %v3523_v54  ;;  %v3141_v11 = vsel %vm955_vm4, %v3139_v16, %v3140_v48  ;;  %v3695_v5 = vrot.slane %v3573_v47, 2  ;;  %v3696_v62 = vrot.slane %v8397_v53, 2 }
 0x243   : > { %v3212_v4 = vadd.f32 %v3141_v11, %v2968_v61  ;;  %v3248_v51 = vmul.f32 %v7157_v3, %v8292_v44  ;;  %v3885_v35 = vmul.f32 %v7216_v19, %v8388_v36  ;;  %v8408_v56 = vmul.f32 %v7216_v19, %v8390_v21 }
 0x244   : > { %v3835_v13 = vadd.f32 %v3803_v59, %v3767_v49  ;;  %v4006_v22 = vsel %vm710_vm3, %v4003_v39, %v4005_v1  ;;  %v4129_v24 = vmul.f32 %v7222_v52, %v8388_v36  ;;  %v8417_v25 = vmul.f32 %v7222_v52, %v8390_v21 }
 0x245   : > { %v4250_v28 = vsel %vm955_vm4, %v4247_v60, %v4249_v57  ;;  %v3280_v29 = vadd.f32 %v3248_v51, %v3212_v4  ;;  %v3453_v2 = vsel %vm710_vm3, %v3451_v31, %v3452_v45  ;;  %v3804_v59 = vmul.f32 %v7188_v41, %v8388_v36 }
 0x246   : > { %v4079_v34 = vadd.f32 %v4006_v22, %v3835_v13  ;;  %v3697_v39 = vsel %vm955_vm4, %v3695_v5, %v3696_v62  ;;  %v4007_v38 = vrot.slane %v3885_v35, 1  ;;  %v2775_v7 = vmul.f32 %v7148_v18, %v8239_v26 }
 0x247   : > { %v3524_v8 = vadd.f32 %v3453_v2, %v3280_v29  ;;  %v4008_v46 = vrot.slane %v8408_v56, 1  ;;  %v4251_v1 = vrot.slane %v4129_v24, 2  ;;  %v3019_v60 = vmul.f32 %v7151_v15, %v8239_v26 }
 0x248   : > { %v4323_v17 = vadd.f32 %v4250_v28, %v4079_v34  ;;  %v4252_v58 = vrot.slane %v8417_v25, 2  ;;  %v2898_v23 = vrot.slane %v2775_v7, 1  ;;  %v3331_v32 = vmul.f32 %v7168_v42, %v8331_v43  ;;  %v8473_v34 = vld [vmem:[#allocation2 + $0x180] sm:$0xff] }
 0x249   : > { %v3768_v0 = vadd.f32 %v3697_v39, %v3524_v8  ;;  %v2693_v55 = vmul.f32 %v7143_v14, %v8200_v10  ;;  %v3142_v37 = vrot.slane %v3019_v60, 2  ;;  %v3575_v9 = vmul.f32 %v7179_v27, %v8331_v43  ;;  %v8475_v39 = vld [vmem:[#allocation2 + $0x188] sm:$0xff] }
 0x24a   : > { %5465 = vmatmul.mubr.msk.f32.gmra.mrb[8].mxu1 %vm331_vm0, %v4323_v17  ;;  %v2899_v16 = vsel %vm710_vm3, %v2896_v63, %v2898_v23  ;;  %v3454_v26 = vrot.slane %v3331_v32, 1  ;;  %v3887_v33 = vmul.f32 %v7216_v19, %v8429_v30  ;;  %v4131_v50 = vmul.f32 %v7222_v52, %v8429_v30 }
 0x24b   : > { %v3836_v54 = vadd.f32 %v3804_v59, %v3768_v0  ;;  %v4009_v6 = vsel %vm710_vm3, %v4007_v38, %v4008_v46  ;;  %v2969_v47 = vadd.f32 %v2899_v16, %v2693_v55  ;;  %v3249_v10 = vmul.f32 %v7157_v3, %v8299_v40 }
 0x24c   : > { %v4253_v53 = vsel %vm955_vm4, %v4251_v1, %v4252_v58  ;;  %v3143_v57 = vsel %vm955_vm4, %v3140_v48, %v3142_v37  ;;  %v3698_v61 = vrot.slane %v3575_v9, 2  ;;  %v3805_v63 = vmul.f32 %v7188_v41, %v8390_v21 }
 0x24d   : > { %v4080_v31 = vadd.f32 %v4009_v6, %v3836_v54  ;;  %v3213_v49 = vadd.f32 %v3143_v57, %v2969_v47  ;;  %v3455_v11 = vsel %vm710_vm3, %v3452_v45, %v3454_v26  ;;  %v2776_v5 = vmul.f32 %v7148_v18, %v8292_v44 }
 0x24e   : > { %v4010_v4 = vrot.slane %v3887_v33, 1  ;;  %v4254_v51 = vrot.slane %v4131_v50, 2  ;;  %v8458_v35 = vmul.f32 %v7148_v18, %v8299_v40  ;;  %v3020_v48 = vmul.f32 %v7151_v15, %v8292_v44 }
 0x24f   : > { %v4324_v56 = vadd.f32 %v4253_v53, %v4080_v31  ;;  %v3281_v13 = vadd.f32 %v3249_v10, %v3213_v49  ;;  %v2900_v22 = vrot.slane %v2776_v5, 1  ;;  %v8464_v24 = vmul.f32 %v7151_v15, %v8299_v40 }
 0x250   : > { %v2694_v45 = vmul.f32 %v7143_v14, %v8292_v44  ;;  %v2901_v25 = vrot.slane %v8458_v35, 1  ;;  %v3144_v28 = vrot.slane %v3020_v48, 2  ;;  %v3332_v29 = vmul.f32 %v7168_v42, %v8388_v36 }
 0x251   : > { %5467 = vmatprep.mubr.msk.f32.mxu1 %vm331_vm0, %v4324_v56  ;;  %v3525_v2 = vadd.f32 %v3455_v11, %v3281_v13  ;;  %v3699_v59 = vsel %vm955_vm4, %v3696_v62, %v3698_v61  ;;  %v3145_v38 = vrot.slane %v8464_v24, 2  ;;  %v3333_v44 = vmul.f32 %v7168_v42, %v8390_v21  ;;  %v8510_v11 = vld [vmem:[#allocation2 + $0x190] sm:$0x3] }
 0x252   : > { %v4011_v7 = vsel %vm710_vm3, %v4008_v46, %v4010_v4  ;;  %v2902_v8 = vsel %vm710_vm3, %v2900_v22, %v2901_v25  ;;  %v3576_v1 = vmul.f32 %v7179_v27, %v8388_v36  ;;  %v3577_v60 = vmul.f32 %v7179_v27, %v8390_v21  ;;  %v8486_v62 = vpop.f32.mrb[34].mxu0 }
 0x253   : > { %v3769_v17 = vadd.f32 %v3699_v59, %v3525_v2  ;;  %v2970_v23 = vadd.f32 %v2902_v8, %v2694_v45  ;;  %v3456_v32 = vrot.slane %v3332_v29, 1  ;;  %v3457_v0 = vrot.slane %v3333_v44, 1  ;;  %v8488_v55 = vpop.f32.mrb[35].mxu0 }
 0x254   : > { %v4255_v37 = vsel %vm955_vm4, %v4252_v58, %v4254_v51  ;;  %v3146_v46 = vsel %vm955_vm4, %v3144_v28, %v3145_v38  ;;  %v3888_v9 = vmul.f32 %v7216_v19, %v8473_v34  ;;  %v8496_v16 = vmul.f32 %v7216_v19, %v8475_v39 }
 0x255   : > { %v3837_v26 = vadd.f32 %v3805_v63, %v3769_v17  ;;  %v3214_v33 = vadd.f32 %v3146_v46, %v2970_v23  ;;  %v3250_v50 = vmul.f32 %v7157_v3, %v8388_v36  ;;  %v4132_v54 = vmul.f32 %v7222_v52, %v8473_v34 }
 0x256   : > { %v3700_v6 = vrot.slane %v3576_v1, 2  ;;  %v3701_v47 = vrot.slane %v3577_v60, 2  ;;  %v3806_v58 = vmul.f32 %v7188_v41, %v8473_v34  ;;  %v8506_v10 = vmul.f32 %v7222_v52, %v8475_v39 }
 0x257   : > { %v4081_v53 = vadd.f32 %v4011_v7, %v3837_v26  ;;  %v3282_v57 = vadd.f32 %v3250_v50, %v3214_v33  ;;  %v3458_v61 = vsel %vm710_vm3, %v3456_v32, %v3457_v0  ;;  %v4012_v63 = vrot.slane %v3888_v9, 1 }
 0x258   : > { %v4013_v31 = vrot.slane %v8496_v16, 1  ;;  %v4256_v49 = vrot.slane %v4132_v54, 2  ;;  %v2778_v5 = vmul.f32 %v7148_v18, %v8331_v43  ;;  %v3022_v4 = vmul.f32 %v7151_v15, %v8331_v43 }
 0x259   : > { %v4325_v51 = vadd.f32 %v4255_v37, %v4081_v53  ;;  %v3526_v35 = vadd.f32 %v3458_v61, %v3282_v57  ;;  %v4257_v48 = vrot.slane %v8506_v10, 2  ;;  %v3334_v56 = vmul.f32 %v7168_v42, %v8429_v30 }
 0x25a   : > { %v3702_v13 = vsel %vm955_vm4, %v3700_v6, %v3701_v47  ;;  %v2903_v22 = vrot.slane %v2778_v5, 1  ;;  %v3147_v24 = vrot.slane %v3022_v4, 2  ;;  %v3578_v45 = vmul.f32 %v7179_v27, %v8429_v30  ;;  %v2656_v4 = vld [vmem:[#allocation2 + $0x198] sm:$0xff] }
 0x25b   : > { %5468 = vmatmul.mubr.msk.f32.gmra.mrb[10].mxu1 %vm331_vm0, %v4325_v51  ;;  %v3770_v28 = vadd.f32 %v3702_v13, %v3526_v35  ;;  %v2695_v43 = vmul.f32 %v7143_v14, %v8299_v40  ;;  %v3459_v29 = vrot.slane %v3334_v56, 1  ;;  %v3890_v2 = vmul.f32 %v7216_v19, %v8510_v11  ;;  %v8561_v51 = vld [vmem:[#allocation2 + $0x1a0] sm:$0xff] }
 0x25c   : > { %v4014_v59 = vsel %vm710_vm3, %v4012_v63, %v4013_v31  ;;  %v2904_v44 = vsel %vm710_vm3, %v2901_v25, %v2903_v22  ;;  %v3251_v7 = vmul.f32 %v7157_v3, %v8390_v21  ;;  %v3703_v8 = vrot.slane %v3578_v45, 2 }
 0x25d   : > { %v3838_v1 = vadd.f32 %v3806_v58, %v3770_v28  ;;  %v4258_v60 = vsel %vm955_vm4, %v4256_v49, %v4257_v48  ;;  %v2971_v40 = vadd.f32 %v2904_v44, %v2695_v43  ;;  %v3807_v17 = vmul.f32 %v7188_v41, %v8475_v39 }
 0x25e   : > { %v3148_v23 = vsel %vm955_vm4, %v3145_v38, %v3147_v24  ;;  %v3460_v32 = vsel %vm710_vm3, %v3457_v0, %v3459_v29  ;;  %v4134_v25 = vmul.f32 %v7222_v52, %v8510_v11  ;;  %v2779_v37 = vmul.f32 %v7148_v18, %v8388_v36 }
 0x25f   : > { %v4082_v46 = vadd.f32 %v4014_v59, %v3838_v1  ;;  %v3215_v9 = vadd.f32 %v3148_v23, %v2971_v40  ;;  %v4015_v26 = vrot.slane %v3890_v2, 1  ;;  %v2780_v33 = vmul.f32 %v7148_v18, %v8390_v21 }
 0x260   : > { %v3704_v50 = vsel %vm955_vm4, %v3701_v47, %v3703_v8  ;;  %v2905_v54 = vrot.slane %v2779_v37, 1  ;;  %v3023_v38 = vmul.f32 %v7151_v15, %v8388_v36  ;;  %v8551_v0 = vmul.f32 %v7151_v15, %v8390_v21 }
 0x261   : > { %v4326_v6 = vadd.f32 %v4258_v60, %v4082_v46  ;;  %v3283_v58 = vadd.f32 %v3251_v7, %v3215_v9  ;;  %v2696_v53 = vmul.f32 %v7143_v14, %v8388_v36  ;;  %v2906_v57 = vrot.slane %v2780_v33, 1 }
 0x262   : > { %v3149_v61 = vrot.slane %v3023_v38, 2  ;;  %v3150_v63 = vrot.slane %v8551_v0, 2  ;;  %v3335_v47 = vmul.f32 %v7168_v42, %v8473_v34  ;;  %v3336_v49 = vmul.f32 %v7168_v42, %v8475_v39 }
 0x263   : > { %5470 = vmatprep.mubr.msk.f32.mxu1 %vm331_vm0, %v4326_v6  ;;  %v3527_v5 = vadd.f32 %v3460_v32, %v3283_v58  ;;  %v2907_v35 = vsel %vm710_vm3, %v2905_v54, %v2906_v57  ;;  %v3579_v36 = vmul.f32 %v7179_v27, %v8473_v34  ;;  %v8568_v56 = vmul.f32 %v7179_v27, %v8475_v39 }
 0x264   : > { %v4259_v13 = vrot.slane %v4134_v25, 2  ;;  %v2972_v22 = vadd.f32 %v2907_v35, %v2696_v53  ;;  %v3461_v24 = vrot.slane %v3335_v47, 1  ;;  %v3462_v45 = vrot.slane %v3336_v49, 1  ;;  %v2658_v53 = vld [vmem:[#allocation2 + $0x1a8] sm:$0x3] }
 0x265   : > { %v8570_v28 = vpop.f32.mrb[36].mxu0  ;;  %v3771_v43 = vadd.f32 %v3704_v50, %v3527_v5  ;;  %v3151_v29 = vsel %vm955_vm4, %v3149_v61, %v3150_v63  ;;  %v3252_v2 = vmul.f32 %v7157_v3, %v8473_v34  ;;  %v3705_v59 = vrot.slane %v3579_v36, 2 }
 0x266   : > { %v8575_v44 = vpop.f32.mrb[37].mxu0  ;;  %v3216_v7 = vadd.f32 %v3151_v29, %v2972_v22  ;;  %v3706_v8 = vrot.slane %v8568_v56, 2  ;;  %v3891_v1 = vmul.f32 %v7216_v19, %v2656_v4  ;;  %v3892_v60 = vmul.f32 %v7216_v19, %v8561_v51 }
 0x267   : > { %v3839_v40 = vadd.f32 %v3807_v17, %v3771_v43  ;;  %v3463_v23 = vsel %vm710_vm3, %v3461_v24, %v3462_v45  ;;  %v4135_v32 = vmul.f32 %v7222_v52, %v2656_v4  ;;  %v4136_v25 = vmul.f32 %v7222_v52, %v8561_v51 }
 0x268   : > { %v4016_v34 = vsel %vm710_vm3, %v4013_v31, %v4015_v26  ;;  %v4260_v37 = vsel %vm955_vm4, %v4257_v48, %v4259_v13  ;;  %v3284_v46 = vadd.f32 %v3252_v2, %v3216_v7  ;;  %v3808_v9 = vmul.f32 %v7188_v41, %v2656_v4 }
 0x269   : > { %v4083_v33 = vadd.f32 %v4016_v34, %v3839_v40  ;;  %v4017_v17 = vrot.slane %v3891_v1, 1  ;;  %v4018_v50 = vrot.slane %v3892_v60, 1  ;;  %v2781_v54 = vmul.f32 %v7148_v18, %v8429_v30  ;;  %v4663_v60 = vld [vmem:[%s5907_s16 + $0x18] sm:$0xff]  ;;  %v4664_v40 = vld [vmem:[%s5907_s16 + $0x20] sm:$0xff] }
 0x26a   : > { %v3528_v38 = vadd.f32 %v3463_v23, %v3284_v46  ;;  %v3707_v0 = vsel %vm955_vm4, %v3705_v59, %v3706_v8  ;;  %v4261_v6 = vrot.slane %v4135_v32, 2  ;;  %v3025_v16 = vmul.f32 %v7151_v15, %v8429_v30  ;;  %v4665_v23 = vld [vmem:[%s5907_s16 + $0x28] sm:$0xff]  ;;  %v4666_v32 = vld [vmem:[%s5907_s16 + $0x30] sm:$0xff]  ;;  %v4668_v46 = vld [vmem:[%s5907_s16 + $0x40] sm:$0xff] }
 0x26b   : > { %v4327_v31 = vadd.f32 %v4260_v37, %v4083_v33  ;;  %v4262_v10 = vrot.slane %v4136_v25, 2  ;;  %v2908_v26 = vrot.slane %v2781_v54, 1  ;;  %v3337_v48 = vmul.f32 %v7168_v42, %v8510_v11  ;;  %v4667_v37 = vld [vmem:[%s5907_s16 + $0x38] sm:$0xff]  ;;  %v4670_v33 = vld [vmem:[%s5907_s16 + $0x50] sm:$0xff]  ;;  %v4673_v54 = vld [vmem:[%s5907_s16 + $0x68] sm:$0xff] }
 0x26c   : > { %v3772_v58 = vadd.f32 %v3707_v0, %v3528_v38  ;;  %v2697_v61 = vmul.f32 %v7143_v14, %v8390_v21  ;;  %v3152_v47 = vrot.slane %v3025_v16, 2  ;;  %v4019_v18 = vsel %vm710_vm3, %v4017_v17, %v4018_v50  ;;  %v4671_v17 = vld [vmem:[%s5907_s16 + $0x58] sm:$0xff]  ;;  %v4674_v38 = vld [vmem:[%s5907_s16 + $0x70] sm:$0xff]  ;;  %v4676_v16 = vld [vmem:[%s5907_s16 + $0x80] sm:$0xff] }
 0x26d   : > { %5471 = vmatmul.mubr.msk.f32.gmra.mrb[12].mxu1 %vm331_vm0, %v4327_v31  ;;  %v2909_v49 = vsel %vm710_vm3, %v2906_v57, %v2908_v26  ;;  %v3464_v5 = vrot.slane %v3337_v48, 1  ;;  %v3581_v15 = vmul.f32 %v7179_v27, %v8510_v11  ;;  %v4263_v42 = vsel %vm955_vm4, %v4261_v6, %v4262_v10  ;;  %v4675_v0 = vld [vmem:[%s5907_s16 + $0x78] sm:$0xff]  ;;  %v4678_v26 = vld [vmem:[%s5907_s16 + $0x90] sm:$0xff] }
 0x26e   : > { %v3840_v30 = vadd.f32 %v3808_v9, %v3772_v58  ;;  %v2973_v4 = vadd.f32 %v2909_v49, %v2697_v61  ;;  %v3153_v35 = vsel %vm955_vm4, %v3150_v63, %v3152_v47  ;;  %v3893_v36 = vmul.f32 %v7216_v19, %v2658_v53  ;;  %v4669_v9 = vld [vmem:[%s5907_s16 + $0x48] sm:$0xff]  ;;  %v4679_v48 = vld [vmem:[%s5907_s16 + $0x98] sm:$0xff]  ;;  %v4680_v58 = vld [vmem:[%s5907_s16 + $0xa0] sm:$0xff] }
 0x26f   : > { %v3253_v56 = vmul.f32 %v7157_v3, %v8475_v39  ;;  %v3465_v13 = vsel %vm710_vm3, %v3462_v45, %v3464_v5  ;;  %v3708_v57 = vrot.slane %v3581_v15, 2  ;;  %v4137_v22 = vmul.f32 %v7222_v52, %v2658_v53  ;;  %v4681_v53 = vld [vmem:[%s5907_s16 + $0xa8] sm:$0xff]  ;;  %v4682_v61 = vld [vmem:[%s5907_s16 + $0xb0] sm:$0xff]  ;;  %v4683_v47 = vld [vmem:[%s5907_s16 + $0xb8] sm:$0xff] }
 0x270   : > { %v4084_v14 = vadd.f32 %v4019_v18, %v3840_v30  ;;  %v3217_v21 = vadd.f32 %v3153_v35, %v2973_v4  ;;  %v4020_v11 = vrot.slane %v3893_v36, 1  ;;  %v3809_v19 = vmul.f32 %v7188_v41, %v8561_v51  ;;  %v4660_v41 = vld [vmem:[%s5907_s16] sm:$0xff]  ;;  %v4661_v51 = vld [vmem:[%s5907_s16 + $0x8] sm:$0xff]  ;;  %v4686_v30 = vld [vmem:[%s5907_s16 + $0xd0] sm:$0xff] }
 0x271   : > { %v3709_v43 = vsel %vm955_vm4, %v3706_v8, %v3708_v57  ;;  %v4264_v3 = vrot.slane %v4137_v22, 2  ;;  %v4662_v8 = vld [vmem:[%s5907_s16 + $0x10] sm:$0xff]  ;;  %v4684_v18 = vld [vmem:[%s5907_s16 + $0xc0] sm:$0xff]  ;;  %v4685_v5 = vld [vmem:[%s5907_s16 + $0xc8] sm:$0xff] }
 0x272   : > { %v4328_v24 = vadd.f32 %v4263_v42, %v4084_v14  ;;  %v3285_v27 = vadd.f32 %v3253_v56, %v3217_v21  ;;  %v4021_v52 = vsel %vm710_vm3, %v4018_v50, %v4020_v11  ;;  %v4672_v50 = vld [vmem:[%s5907_s16 + $0x60] sm:$0xff]  ;;  %v4687_v4 = vld [vmem:[%s5907_s16 + $0xd8] sm:$0xff]  ;;  %v4689_v35 = vld [vmem:[%s5907_s16 + $0xe8] sm:$0xff] }
 0x273   : > { %v4265_v59 = vsel %vm955_vm4, %v4262_v10, %v4264_v3  ;;  %v4677_v10 = vld [vmem:[%s5907_s16 + $0x88] sm:$0xff]  ;;  %v4688_v42 = vld [vmem:[%s5907_s16 + $0xe0] sm:$0xff]  ;;  %v4690_v36 = vld [vmem:[%s5907_s16 + $0xf0] sm:$0xff] }
 0x274   : > { %5473 = vmatprep.mubr.msk.f32.mxu1 %vm331_vm0, %v4328_v24  ;;  %v3529_v63 = vadd.f32 %v3465_v13, %v3285_v27  ;;  %v4691_v14 = vld [vmem:[%s5907_s16 + $0xf8] sm:$0xff]  ;;  %v8707_v13 = vld [vmem:[%s8891_s6] ss:$0 sm:$0xff]  ;;  %s5165_s16 = sshll.u32 %s323_s29, 8 }
 0x275   : > { %v4507_v57 = vadd.f32 %v8376_v12, %v8707_v13  ;;  %v4517_v22 = vadd.f32 %v8486_v62, %v8707_v13  ;;  %v4502_v24 = vadd.f32 %v8707_v13, %v8385_v20  ;;  %v4512_v27 = vadd.f32 %v8707_v13, %v8488_v55  ;;  %s8733_s21 = scalar_lea.vmem [#allocation3], %s5165_s16  ;;  %s5675_s16 = sshll.u32 %s5736_s28, 4  ;;  %s5676_s16 = int_to_ptr.vmem [resolvable:$false] %s5675_s16 }
 0x276   : > { %v3773_v39 = vadd.f32 %v3709_v43, %v3529_v63  ;;  %v8723_v63 = vld [vmem:[%s8893_s8] ss:$0 sm:$0xff]  ;;  %v4527_v62 = vadd.f32 %v8570_v28, %v8707_v13  ;;  %v4522_v20 = vadd.f32 %v8707_v13, %v8575_v44  ;;  %s5099_s23 = sshll.u32 %s8733_s21, 4  ;;  %s5677_s14 = scalar_lea.vmem %s5676_s16, 8192  ;;  %s8836_s23 = int_to_ptr.vmem [resolvable:$true] %s5099_s23 }
 0x277   : > { %v8617_v45 = vpop.f32.mrb[38].mxu0  ;;  %s5671_s27 = scalar_lea.vmem %s8836_s23, 4096  ;;  %p5678_p0 = scmp.lt.s32.totalorder %s8836_s23, %s5676_s16 }
 0x278   : > { %v8620_v29 = vpop.f32.mrb[39].mxu0  ;;  %v3841_v2 = vadd.f32 %v3809_v19, %v3773_v39  ;;  %v5539_v39 = vadd.f32 %v8723_v63, %v4517_v22  ;;  %v5582_v22 = vadd.f32 %v8723_v63, %v8707_v13  ;;  %p5672_p11 = scmp.ne.s32.totalorder %s8836_s23, %s5671_s27  ;;  %p5679_p1 = scmp.lt.s32.totalorder %s5677_s14, %s5671_s27 }
 0x27a   : > { %v4085_v7 = vadd.f32 %v4021_v52, %v3841_v2  ;;  %v5542_v2 = vadd.f32 %v8723_v63, %v4512_v27  ;;  %p5673_p12 = pnand %p5672_p11, %p5827_p5  ;;  %p5680_p2 = por %p5679_p1, %p5678_p0 }
 0x27c   : > { %v4329_v1 = vadd.f32 %v4265_v59, %v4085_v7  ;;  %v4537_v7 = vadd.f32 %v8617_v45, %v8707_v13  ;;  %p5674_p13 = pneg %p5673_p12 }
 0x27e   : > { %5474 = vmatmul.mubr.msk.f32.gmra.mrb[14].mxu1 %vm331_vm0, %v4329_v1  ;;  %v5545_v1 = vadd.f32 %v8723_v63, %v4527_v62  ;;  %p5681_p3 = pnand %p5680_p2, %p5674_p13 }
 0x27f   : > { %5478 = vmatprep.mubr.msk.f32.mxu1 %vm452_vm2, %v4660_v41  ;;  %v4532_v41 = vadd.f32 %v8707_v13, %v8620_v29 }
 0x282   : > { %5479 = vmatmul.mubr.msk.f32.vlgmr.msra.gmra.mrb[16].mxu1 %vm452_vm2, %v4661_v51 }
 0x283   : > { %5481 = vmatprep.mubr.msk.f32.mxu1 %vm452_vm2, %v4662_v8  ;;  %v5548_v8 = vadd.f32 %v8723_v63, %v4522_v20 }
 0x286   : > { %5482 = vmatmul.mubr.msk.f32.gmra.mrb[18].mxu1 %vm452_vm2, %v4663_v60 }
 0x287   : > { %5484 = vmatprep.mubr.msk.f32.mxu1 %vm452_vm2, %v4664_v40 }
 0x289   : > { %v8636_v25 = vpop.f32.mrb[40].mxu0 }
 0x28a   : > { %5485 = vmatmul.mubr.msk.f32.gmra.mrb[20].mxu1 %vm452_vm2, %v4665_v23  ;;  %v8639_v34 = vpop.f32.mrb[41].mxu0  ;;  %v4547_v45 = vadd.f32 %v8636_v25, %v8707_v13 }
 0x28b   : > { %5487 = vmatprep.mubr.msk.f32.mxu1 %vm452_vm2, %v4666_v32  ;;  %v5551_v32 = vadd.f32 %v8723_v63, %v4537_v7  ;;  %v4542_v29 = vadd.f32 %v8707_v13, %v8639_v34 }
 0x28e   : > { %5488 = vmatmul.mubr.msk.f32.gmra.mrb[22].mxu1 %vm452_vm2, %v4667_v37 }
 0x28f   : > { %5490 = vmatprep.mubr.msk.f32.mxu1 %vm452_vm2, %v4668_v46  ;;  %v5554_v46 = vadd.f32 %v8723_v63, %v4532_v41 }
 0x292   : > { %5491 = vmatmul.mubr.msk.f32.gmra.mrb[24].mxu1 %vm452_vm2, %v4669_v9 }
 0x293   : > { %5493 = vmatprep.mubr.msk.f32.mxu1 %vm452_vm2, %v4670_v33 }
 0x296   : > { %5494 = vmatmul.mubr.msk.f32.gmra.mrb[26].mxu1 %vm452_vm2, %v4671_v17 }
 0x297   : > { %5496 = vmatprep.mubr.msk.f32.mxu1 %vm452_vm2, %v4672_v50  ;;  %v5557_v50 = vadd.f32 %v8723_v63, %v4547_v45 }
 0x29a   : > { %5497 = vmatmul.mubr.msk.f32.gmra.mrb[28].mxu1 %vm452_vm2, %v4673_v54 }
 0x29b   : > { %5499 = vmatprep.mubr.msk.f32.mxu1 %vm452_vm2, %v4674_v38  ;;  %v5560_v38 = vadd.f32 %v8723_v63, %v4542_v29 }
 0x29c   : > { %v8659_v6 = vpop.f32.mrb[42].mxu0 }
 0x29d   : > { %v8662_v31 = vpop.f32.mrb[43].mxu0  ;;  %v4557_v25 = vadd.f32 %v8659_v6, %v8707_v13 }
 0x29e   : > { %5500 = vmatmul.mubr.msk.f32.gmra.mrb[30].mxu1 %vm452_vm2, %v4675_v0  ;;  %v4552_v34 = vadd.f32 %v8707_v13, %v8662_v31 }
 0x29f   : > { %5502 = vmatprep.mubr.msk.f32.mxu1 %vm452_vm2, %v4676_v16 }
 0x2a2   : > { %5503 = vmatmul.mubr.msk.f32.gmra.mrb[0].mxu1 %vm452_vm2, %v4677_v10 }
 0x2a3   : > { %5505 = vmatprep.mubr.msk.f32.mxu1 %vm452_vm2, %v4678_v26  ;;  %v5563_v26 = vadd.f32 %v8723_v63, %v4557_v25 }
 0x2a6   : > { %5506 = vmatmul.mubr.msk.f32.gmra.mrb[2].mxu1 %vm452_vm2, %v4679_v48 }
 0x2a7   : > { %5508 = vmatprep.mubr.msk.f32.mxu1 %vm452_vm2, %v4680_v58  ;;  %v5566_v58 = vadd.f32 %v8723_v63, %v4552_v34 }
 0x2aa   : > { %5509 = vmatmul.mubr.msk.f32.gmra.mrb[4].mxu1 %vm452_vm2, %v4681_v53 }
 0x2ab   : > { %5511 = vmatprep.mubr.msk.f32.mxu1 %vm452_vm2, %v4682_v61 }
 0x2ae   : > { %5512 = vmatmul.mubr.msk.f32.gmra.mrb[6].mxu1 %vm452_vm2, %v4683_v47  ;;  %v8681_v49 = vpop.f32.mrb[44].mxu0 }
 0x2af   : > { %5514 = vmatprep.mubr.msk.f32.mxu1 %vm452_vm2, %v4684_v18  ;;  %v8685_v15 = vpop.f32.mrb[45].mxu0  ;;  %v4567_v6 = vadd.f32 %v8681_v49, %v8707_v13 }
 0x2b0   : > { %v4562_v31 = vadd.f32 %v8707_v13, %v8685_v15 }
 0x2b1   : > { %v5569_v49 = vadd.f32 %v8723_v63, %v4567_v6 }
 0x2b2   : > { %5515 = vmatmul.mubr.msk.f32.gmra.mrb[8].mxu1 %vm452_vm2, %v4685_v5 }
 0x2b3   : > { %5517 = vmatprep.mubr.msk.f32.mxu1 %vm452_vm2, %v4686_v30  ;;  %v5572_v30 = vadd.f32 %v8723_v63, %v4562_v31 }
 0x2b6   : > { %5518 = vmatmul.mubr.msk.f32.gmra.mrb[10].mxu1 %vm452_vm2, %v4687_v4 }
 0x2b7   : > { %5520 = vmatprep.mubr.msk.f32.mxu1 %vm452_vm2, %v4688_v42 }
 0x2ba   : > { %5521 = vmatmul.mubr.msk.f32.gmra.mrb[12].mxu1 %vm452_vm2, %v4689_v35 }
 0x2bb   : > { %5523 = vmatprep.mubr.msk.f32.mxu1 %vm452_vm2, %v4690_v36 }
 0x2be   : > { %5524 = vmatmul.mubr.msk.f32.gmra.mrb[14].mxu1 %vm452_vm2, %v4691_v14 }
 0x2c1   : > { %v8700_v21 = vpop.f32.mrb[46].mxu0 }
 0x2c2   : > { %v8702_v56 = vpop.f32.mrb[47].mxu0  ;;  %v4577_v18 = vadd.f32 %v8700_v21, %v8707_v13 }
 0x2c3   : > { %v4572_v5 = vadd.f32 %v8707_v13, %v8702_v56 }
 0x2c4   : > { %v5575_v36 = vadd.f32 %v8723_v63, %v4577_v18 }
 0x2c5   : > { %v5578_v21 = vadd.f32 %v8723_v63, %v4572_v5 }
 0x355   : > { %v5480_v11 = vpop.f32.mrb[16].mxu1 }
 0x356   : > { %v5533_v19 = vadd.f32 %v5480_v11, %v4507_v57  ;;  %v4862_v43 = vpop.f32.mrb[17].mxu1 }
 0x357   : > { %v5536_v12 = vadd.f32 %v4862_v43, %v4502_v24 }
 0x358   : > { %v5534_v3 = vadd.f32 %v5533_v19, %v8723_v63 }
 0x359   : > { %v5537_v55 = vadd.f32 %v5536_v12, %v8723_v63  ;;  %v5483_v52 = vpop.f32.mrb[18].mxu1 }
 0x35a   : > { %5054 = vst.msk [vmem:[%s8733_s21 + $0x8] sm:$0xff] %vm331_vm0, %v5534_v3  ;;  %v5540_v28 = vadd.f32 %v5539_v39, %v5483_v52  ;;  %v4872_v59 = vpop.f32.mrb[19].mxu1 }
 0x35b   : > { %5053 = vst.msk [vmem:[%s8733_s21] sm:$0xff] %vm331_vm0, %v5537_v55  ;;  %v5543_v44 = vadd.f32 %v5542_v2, %v4872_v59 }
 0x35c   : > { %5056 = vst.msk [vmem:[%s8733_s21 + $0x18] sm:$0xff] %vm331_vm0, %v5540_v28 }
 0x35d   : > { %5055 = vst.msk [vmem:[%s8733_s21 + $0x10] sm:$0xff] %vm331_vm0, %v5543_v44  ;;  %v5486_v51 = vpop.f32.mrb[20].mxu1 }
 0x35e   : > { %v5546_v60 = vadd.f32 %v5545_v1, %v5486_v51  ;;  %v4882_v40 = vpop.f32.mrb[21].mxu1 }
 0x35f   : > { %v5549_v23 = vadd.f32 %v5548_v8, %v4882_v40 }
 0x360   : > { %5058 = vst.msk [vmem:[%s8733_s21 + $0x28] sm:$0xff] %vm331_vm0, %v5546_v60 }
 0x361   : > { %5057 = vst.msk [vmem:[%s8733_s21 + $0x20] sm:$0xff] %vm331_vm0, %v5549_v23  ;;  %v5489_v37 = vpop.f32.mrb[22].mxu1 }
 0x362   : > { %v5552_v9 = vadd.f32 %v5551_v32, %v5489_v37  ;;  %v4892_v33 = vpop.f32.mrb[23].mxu1 }
 0x363   : > { %v5555_v17 = vadd.f32 %v5554_v46, %v4892_v33 }
 0x364   : > { %5060 = vst.msk [vmem:[%s8733_s21 + $0x38] sm:$0xff] %vm331_vm0, %v5552_v9 }
 0x365   : > { %5059 = vst.msk [vmem:[%s8733_s21 + $0x30] sm:$0xff] %vm331_vm0, %v5555_v17  ;;  %v5492_v54 = vpop.f32.mrb[24].mxu1 }
 0x366   : > { %v5558_v0 = vadd.f32 %v5557_v50, %v5492_v54  ;;  %v4902_v16 = vpop.f32.mrb[25].mxu1 }
 0x367   : > { %v5561_v10 = vadd.f32 %v5560_v38, %v4902_v16 }
 0x368   : > { %5062 = vst.msk [vmem:[%s8733_s21 + $0x48] sm:$0xff] %vm331_vm0, %v5558_v0 }
 0x369   : > { %5061 = vst.msk [vmem:[%s8733_s21 + $0x40] sm:$0xff] %vm331_vm0, %v5561_v10  ;;  %v5495_v48 = vpop.f32.mrb[26].mxu1 }
 0x36a   : > { %v5564_v53 = vadd.f32 %v5563_v26, %v5495_v48  ;;  %v4912_v61 = vpop.f32.mrb[27].mxu1 }
 0x36b   : > { %v5567_v47 = vadd.f32 %v5566_v58, %v4912_v61 }
 0x36c   : > { %5064 = vst.msk [vmem:[%s8733_s21 + $0x58] sm:$0xff] %vm331_vm0, %v5564_v53 }
 0x36d   : > { %5063 = vst.msk [vmem:[%s8733_s21 + $0x50] sm:$0xff] %vm331_vm0, %v5567_v47  ;;  %v5498_v15 = vpop.f32.mrb[28].mxu1 }
 0x36e   : > { %v5570_v4 = vadd.f32 %v5569_v49, %v5498_v15  ;;  %v4922_v42 = vpop.f32.mrb[29].mxu1 }
 0x36f   : > { %v5573_v35 = vadd.f32 %v5572_v30, %v4922_v42 }
 0x370   : > { %5066 = vst.msk [vmem:[%s8733_s21 + $0x68] sm:$0xff] %vm331_vm0, %v5570_v4 }
 0x371   : > { %5065 = vst.msk [vmem:[%s8733_s21 + $0x60] sm:$0xff] %vm331_vm0, %v5573_v35  ;;  %v5501_v14 = vpop.f32.mrb[30].mxu1 }
 0x372   : > { %v5576_v56 = vadd.f32 %v5575_v36, %v5501_v14  ;;  %v4932_v57 = vpop.f32.mrb[31].mxu1 }
 0x373   : > { %v5579_v24 = vadd.f32 %v5578_v21, %v4932_v57 }
 0x374   : > { %5068 = vst.msk [vmem:[%s8733_s21 + $0x78] sm:$0xff] %vm331_vm0, %v5576_v56 }
 0x375   : > { %5067 = vst.msk [vmem:[%s8733_s21 + $0x70] sm:$0xff] %vm331_vm0, %v5579_v24  ;;  %v5504_v27 = vpop.f32.mrb[0].mxu1 }
 0x376   : > { %v5581_v11 = vadd.f32 %v5582_v22, %v5504_v27  ;;  %v4942_v19 = vpop.f32.mrb[1].mxu1 }
 0x377   : > { %v5583_v43 = vadd.f32 %v5582_v22, %v4942_v19 }
 0x378   : > { %5070 = vst.msk [vmem:[%s8733_s21 + $0x88] sm:$0xff] %vm331_vm0, %v5581_v11 }
 0x379   : > { %5069 = vst.msk [vmem:[%s8733_s21 + $0x80] sm:$0xff] %vm331_vm0, %v5583_v43  ;;  %v5507_v12 = vpop.f32.mrb[2].mxu1 }
 0x37a   : > { %v5585_v62 = vadd.f32 %v5582_v22, %v5507_v12  ;;  %v4952_v13 = vpop.f32.mrb[3].mxu1 }
 0x37b   : > { %v5587_v63 = vadd.f32 %v5582_v22, %v4952_v13 }
 0x37c   : > { %5072 = vst.msk [vmem:[%s8733_s21 + $0x98] sm:$0xff] %vm331_vm0, %v5585_v62 }
 0x37d   : > { %5071 = vst.msk [vmem:[%s8733_s21 + $0x90] sm:$0xff] %vm331_vm0, %v5587_v63  ;;  %v5510_v3 = vpop.f32.mrb[4].mxu1 }
 0x37e   : > { %v5589_v39 = vadd.f32 %v5582_v22, %v5510_v3  ;;  %v4962_v20 = vpop.f32.mrb[5].mxu1 }
 0x37f   : > { %v5591_v55 = vadd.f32 %v5582_v22, %v4962_v20 }
 0x380   : > { %5074 = vst.msk [vmem:[%s8733_s21 + $0xa8] sm:$0xff] %vm331_vm0, %v5589_v39 }
 0x381   : > { %5073 = vst.msk [vmem:[%s8733_s21 + $0xa0] sm:$0xff] %vm331_vm0, %v5591_v55  ;;  %v5513_v52 = vpop.f32.mrb[6].mxu1 }
 0x382   : > { %v5593_v2 = vadd.f32 %v5582_v22, %v5513_v52  ;;  %v4972_v28 = vpop.f32.mrb[7].mxu1 }
 0x383   : > { %v5595_v59 = vadd.f32 %v5582_v22, %v4972_v28 }
 0x384   : > { %5076 = vst.msk [vmem:[%s8733_s21 + $0xb8] sm:$0xff] %vm331_vm0, %v5593_v2 }
 0x385   : > { %5075 = vst.msk [vmem:[%s8733_s21 + $0xb0] sm:$0xff] %vm331_vm0, %v5595_v59  ;;  %v5516_v44 = vpop.f32.mrb[8].mxu1 }
 0x386   : > { %v5597_v7 = vadd.f32 %v5582_v22, %v5516_v44  ;;  %v4982_v1 = vpop.f32.mrb[9].mxu1 }
 0x387   : > { %v5599_v41 = vadd.f32 %v5582_v22, %v4982_v1 }
 0x388   : > { %5078 = vst.msk [vmem:[%s8733_s21 + $0xc8] sm:$0xff] %vm331_vm0, %v5597_v7 }
 0x389   : > { %5077 = vst.msk [vmem:[%s8733_s21 + $0xc0] sm:$0xff] %vm331_vm0, %v5599_v41  ;;  %v5519_v51 = vpop.f32.mrb[10].mxu1 }
 0x38a   : > { %v5601_v8 = vadd.f32 %v5582_v22, %v5519_v51  ;;  %v4992_v60 = vpop.f32.mrb[11].mxu1 }
 0x38b   : > { %v5603_v40 = vadd.f32 %v5582_v22, %v4992_v60 }
 0x38c   : > { %5080 = vst.msk [vmem:[%s8733_s21 + $0xd8] sm:$0xff] %vm331_vm0, %v5601_v8 }
 0x38d   : > { %5079 = vst.msk [vmem:[%s8733_s21 + $0xd0] sm:$0xff] %vm331_vm0, %v5603_v40  ;;  %v5522_v23 = vpop.f32.mrb[12].mxu1 }
 0x38e   : > { %v5605_v45 = vadd.f32 %v5582_v22, %v5522_v23  ;;  %v5002_v32 = vpop.f32.mrb[13].mxu1 }
 0x38f   : > { %v5607_v29 = vadd.f32 %v5582_v22, %v5002_v32 }
 0x390   : > { %5082 = vst.msk [vmem:[%s8733_s21 + $0xe8] sm:$0xff] %vm331_vm0, %v5605_v45 }
 0x391   : > { %5081 = vst.msk [vmem:[%s8733_s21 + $0xe0] sm:$0xff] %vm331_vm0, %v5607_v29  ;;  %v5525_v37 = vpop.f32.mrb[14].mxu1 }
 0x392   : > { %v5609_v46 = vadd.f32 %v5582_v22, %v5525_v37  ;;  %v5012_v9 = vpop.f32.mrb[15].mxu1 }
 0x393   : > { %v5611_v33 = vadd.f32 %v5582_v22, %v5012_v9 }
 0x394   : > { %5084 = vst.msk [vmem:[%s8733_s21 + $0xf8] sm:$0xff] %vm331_vm0, %v5609_v46 }
 0x395   : > { %5083 = vst.msk [vmem:[%s8733_s21 + $0xf0] sm:$0xff] %vm331_vm0, %v5611_v33 }
 0x396   : > { %5684 = shalt.err (!%p5681_p3)
}
 0x397   : > { %s5685_s29 = scalar_lea.hbm %s8834_s26, 4096  ;;  %s5689_s22 = scalar_lea.hbm %s8894_s9, 8192 }
 0x398   : > { %p5686_p4 = scmp.ne.s32.totalorder %s8834_s26, %s5685_s29  ;;  %p5690_p9 = scmp.lt.u32.totalorder %s8834_s26, %s8894_s9 }
 0x399   : > { %p5691_p10 = scmp.lt.u32.totalorder %s5689_s22, %s5685_s29  ;;  %p5693_p12 = scmp.lt.u32.totalorder %s5685_s29, %s8834_s26 }
 0x39a   : > { %p5687_p7 = pnand %p5686_p4, %p5827_p5 }
 0x39b   : > { %p5692_p11 = por %p5691_p10, %p5690_p9 }
 0x39c   : > { %p5688_p8 = pneg %p5687_p7 }
 0x39d   : > { %p5694_p13 = por %p5693_p12, %p5692_p11 }
 0x39f   : > { %p5695_p0 = pnand %p5694_p13, %p5688_p8 }
 0x3a1   : > { %5698 = shalt.err (!%p5695_p0)
}
 0x3a2   : > { %s5737_s27 = smov 128   ;;  %s5738_s28 = smov 8  }
 0x3a3   : > { %5628 = dma.vmem_to_hbm [thread:$0]  (%p5827_p5), %s8836_s23, 4096, %s8834_s26, %s8844_s13, %s5737_s27, %s5737_s27, %s5738_s28  }
 0x3a4 PF: > { %p5634_p1 = scmp.ge.s32.totalorder %s5733_s12, 2  ;;  %s5114_s16 = sand.u32 1, %s5721_s30  }
 0x3a5   : > { %s5115_s14 = scalar_lea.sflag [#allocation4], %s5114_s16 }
 0x3a6   : > { %p5631_p2 = pnand %p5634_p1, %p5831_p6 }
 0x3a8   : > { %5716 = dma.done.wait (!%p5631_p2), %s5115_s14, 4096  }
 0x3a9   : > { %5718 = vsyncadd (!%p5631_p2), %s5115_s14, 4294963200  ;;  %p19_p3 = scmp.ge.s32.totalorder %s5814_s15, 4   ;;  %s8897_s30 = smov %s5725_s10 }
 0x3aa   : > { %s8898_s10 = smov %s5729_s11  ;;  %s8899_s11 = smov %s5825_s18 }
 0x3ab   : > { %s8900_s12 = smov %s5814_s15  ;;  %21 = sbr.rel (!%p19_p3) target bundleno = 3 (0x3), region = 92 }
 0x3b2   :  { %5120 = vsyncpa [#allocation4], 1 }
 0x3b3   :  { %5122 = vsyncpa [#allocation4 + $0x1], 1 }

</bundles_post_ra>
